<compile_context>
chip_gen: v5e
topology: v5e:2x2
jax: 0.10.0
libtpu: 0.0.40
codegen_flags: <defaults>
</compile_context>

<pallas_src>
import functools

import jax
import jax.numpy as jnp
from jax.experimental import pallas as pl
from jax.experimental.pallas import tpu as pltpu


# ----------------------------------------------------------------------------
# helpers
# ----------------------------------------------------------------------------
def _round_up(x, m):
    return (x + m - 1) // m * m


def _target_cp():
    """Target packed channel width: 128 on v5-family MXUs, 256 elsewhere."""
    try:
        kind = jax.devices()[0].device_kind.lower()
    except Exception:
        return 256
    return 128 if "v5" in kind else 256


def _choose_packing(c, h2, w2, target_cp):
    """Pick (ph, pw) even s2d factors so cp = ph*pw*c ~= target_cp."""
    best, best_key = (2, 2), None
    for ph in (2, 4, 8):
        if h2 % ph:
            continue
        for pw in (2, 4, 8):
            if w2 % pw:
                continue
            cp = ph * pw * c
            if cp > 512:
                continue
            key = (abs(cp - target_cp), cp, pw, ph)   # prefer target, then wide rows
            if best_key is None or key < best_key:
                best_key, best = key, (ph, pw)
    return best


def _pick_th(hc, wp, cp, k1, n, itemsize, budget=12 * 2**20):
    """Largest divisor of hc whose per-step VMEM estimate fits; prefer >=2 grid steps."""
    def vmem_est(th):
        tw = th * wp
        win = ((th + 2) * wp + 8) * cp
        slab = tw * 9 * cp
        io = 2 * ((tw + 2 * wp) * (k1 + cp) + tw * cp)            # double-buffered in/out
        wts = 2 * ((k1 + cp + 9 * cp + 1) * cp + wp * cp)         # weights (double-buffered)
        est = (win + slab + io + wts) * itemsize
        est += 2 * tw * cp * 4 + (th + 2) * wp * cp * 4           # f32 temporaries headroom
        return est

    divs = sorted((d for d in range(1, hc + 1) if hc % d == 0), reverse=True)
    cand = [d for d in divs if vmem_est(d) <= budget] or [1]
    pref = [d for d in cand if n * (hc // d) >= 2]                # v7x: both TCs busy
    return (pref or cand)[0]


# ----------------------------------------------------------------------------
# fused weight construction (all math on the ph x pw space-to-depth layout)
# ----------------------------------------------------------------------------
def _build_up_weight(wt, ci, c, ph, pw):
    """ConvTranspose2d(2,2,s2) as a (K1, Cp) GEMM on packed coarse cells."""
    qh, qw = ph // 2, pw // 2
    wu = jnp.zeros((qh, qw, ci, ph, pw, c), jnp.float32)
    for py in range(ph):
        for px in range(pw):
            wu = wu.at[py // 2, px // 2, :, py, px, :].set(wt[:, :, py % 2, px % 2])
    return wu.reshape(qh * qw * ci, ph * pw * c)


def _build_conv3_weight(w3, c, ph, pw):
    """Fine 3x3 conv as a coarse 3x3 conv; returns the concatenated (9*Cp, Cp) weight."""
    cp = ph * pw * c
    w9 = jnp.zeros((3, 3, ph, pw, c, ph, pw, c), jnp.float32)
    for py in range(ph):
        for px in range(pw):
            for u in (-1, 0, 1):
                for v in (-1, 0, 1):
                    dr, pyi = divmod(py + u, ph)
                    dc, pxi = divmod(px + v, pw)
                    w9 = w9.at[dr + 1, dc + 1, pyi, pxi, :, py, px, :].set(
                        w3[:, :, u + 1, v + 1].T)
    return w9.reshape(9, cp, cp).reshape(9 * cp, cp)


# ----------------------------------------------------------------------------
# Fused kernel: (ConvTranspose + 1x1 conv + add)  ->  3x3 conv  ->  GN partial sums
# Inputs are pre-packed, zero-padded (1 coarse row/col) and row-flattened; the grid is
# (N, row-tiles).  Everything between the inputs and y stays in VMEM.
# ----------------------------------------------------------------------------
def _fused_deform_up_kernel(x1m_ref, x1a_ref, x1b_ref,
                            x2m_ref, x2a_ref, x2b_ref,
                            wu_ref, wpw_ref, bwin_ref, wcat_ref, b3_ref,
                            y_ref, s1_ref, s2_ref,
                            win_ref, slab_ref,
                            *, th, wc, wp, cp):
    hi = pl.program_id(1)
    nt = pl.num_programs(1)
    tw = th * wp
    wrows = (th + 2) * wp
    f32 = jnp.float32
    dt = win_ref.dtype

    wu = wu_ref[...]
    wpw = wpw_ref[...]
    bwin = bwin_ref[...]                                   # (wp, cp): zero on pad columns

    # ---- stage 1: s = ConvTranspose(x1) + 1x1conv(x2) + bias, written to the window ----
    sm = (jnp.dot(x1m_ref[0], wu, preferred_element_type=f32)
          + jnp.dot(x2m_ref[0], wpw, preferred_element_type=f32))
    sm = (sm.reshape(th, wp, cp) + bwin[None]).reshape(tw, cp)
    win_ref[pl.ds(0, tw), :] = sm.astype(dt)

    sa = (jnp.dot(x1a_ref[0], wu, preferred_element_type=f32)
          + jnp.dot(x2a_ref[0], wpw, preferred_element_type=f32) + bwin)
    win_ref[pl.ds(tw, wp), :] = sa.astype(dt)

    sb = (jnp.dot(x1b_ref[0], wu, preferred_element_type=f32)
          + jnp.dot(x2b_ref[0], wpw, preferred_element_type=f32) + bwin)
    win_ref[pl.ds(tw + wp, wp), :] = sb.astype(dt)

    win_ref[pl.ds(wrows, 8), :] = jnp.zeros((8, cp), dt)   # slack rows for shifted reads

    # image-boundary halo rows are conv zero-padding, not bias
    @pl.when(hi == 0)
    def _():
        win_ref[pl.ds(0, wp), :] = jnp.zeros((wp, cp), dt)

    @pl.when(hi == nt - 1)
    def _():
        win_ref[pl.ds((th + 1) * wp, wp), :] = jnp.zeros((wp, cp), dt)

    # ---- stage 2: 3x3 conv as ONE concatenated-K matmul (K = 9*cp) ----
    for t in range(9):
        dh, dw = divmod(t, 3)
        off = dh * wp + dw
        slab_ref[:, t * cp:(t + 1) * cp] = win_ref[pl.ds(off, tw), :]
    acc = jnp.dot(slab_ref[...], wcat_ref[...], preferred_element_type=f32)
    acc = acc + b3_ref[...]
    y_ref[0] = acc.astype(y_ref.dtype)

    # ---- stage 3: GroupNorm partial sums over the real (non pad) columns ----
    colmask = (jax.lax.broadcasted_iota(jnp.int32, (1, wp, 1), 1) < wc).astype(f32)
    masked = acc.reshape(th, wp, cp) * colmask
    s1_ref[0, 0] = jnp.sum(masked, axis=(0, 1))[None, :]
    s2_ref[0, 0] = jnp.sum(masked * masked, axis=(0, 1))[None, :]


def _fused_call(x1f, x2f, wu, wpw, bwin, wcat, b3,
                *, n, hc, wc, wp, cp, k1, th, out_dtype):
    nt = hc // th
    tw = th * wp
    kern = functools.partial(_fused_deform_up_kernel, th=th, wc=wc, wp=wp, cp=cp)
    itemsize = jnp.dtype(out_dtype).itemsize
    flops = int(2 * n * hc * wp * ((k1 + cp) + 9 * cp) * cp)
    bytes_acc = int(x1f.size * x1f.dtype.itemsize + x2f.size * x2f.dtype.itemsize
                    + n * hc * wp * cp * itemsize
                    + (wu.size + wpw.size + wcat.size) * wu.dtype.itemsize
                    + 2 * n * nt * cp * 4)
    return pl.pallas_call(
        kern,
        out_shape=(
            jax.ShapeDtypeStruct((n, hc * wp, cp), out_dtype),       # conv output y
            jax.ShapeDtypeStruct((n, nt, 1, cp), jnp.float32),       # per-tile sum
            jax.ShapeDtypeStruct((n, nt, 1, cp), jnp.float32),       # per-tile sum of squares
        ),
        grid=(n, nt),
        in_specs=[
            pl.BlockSpec((1, tw, k1), lambda ni, hi: (ni, hi, 0)),
            pl.BlockSpec((1, wp, k1), lambda ni, hi: (ni, hi * th + th, 0)),
            pl.BlockSpec((1, wp, k1), lambda ni, hi: (ni, hi * th + th + 1, 0)),
            pl.BlockSpec((1, tw, cp), lambda ni, hi: (ni, hi, 0)),
            pl.BlockSpec((1, wp, cp), lambda ni, hi: (ni, hi * th + th, 0)),
            pl.BlockSpec((1, wp, cp), lambda ni, hi: (ni, hi * th + th + 1, 0)),
            pl.BlockSpec((k1, cp), lambda ni, hi: (0, 0)),
            pl.BlockSpec((cp, cp), lambda ni, hi: (0, 0)),
            pl.BlockSpec((wp, cp), lambda ni, hi: (0, 0)),
            pl.BlockSpec((9 * cp, cp), lambda ni, hi: (0, 0)),
            pl.BlockSpec((1, cp), lambda ni, hi: (0, 0)),
        ],
        out_specs=(
            pl.BlockSpec((1, tw, cp), lambda ni, hi: (ni, hi, 0)),
            pl.BlockSpec((1, 1, 1, cp), lambda ni, hi: (ni, hi, 0, 0)),
            pl.BlockSpec((1, 1, 1, cp), lambda ni, hi: (ni, hi, 0, 0)),
        ),
        scratch_shapes=[
            pltpu.VMEM(((th + 2) * wp + 8, cp), x2f.dtype),          # s window
            pltpu.VMEM((tw, 9 * cp), x2f.dtype),                     # concatenated-K slab
        ],
        compiler_params=pltpu.CompilerParams(
            dimension_semantics=("parallel", "parallel"),
            vmem_limit_bytes=32 * 1024 * 1024),
        cost_estimate=pl.CostEstimate(flops=flops, transcendentals=0,
                                      bytes_accessed=bytes_acc),
    )(x1f, x1f, x1f, x2f, x2f, x2f, wu, wpw, bwin, wcat, b3)


# ----------------------------------------------------------------------------
# deform_up forward (in_ch, out_ch, innermost=False, bilinear=False, p=0)
# ----------------------------------------------------------------------------
def deform_up_forward(x1_nchw, x2_nchw, params, *, compute_dtype=jnp.bfloat16):
    f32 = jnp.float32
    x1_nchw = x1_nchw.astype(f32)
    x2_nchw = x2_nchw.astype(f32)
    n, ci, h, w = x1_nchw.shape
    n2, c, h2, w2 = x2_nchw.shape
    co = params["wt"].shape[1]
    assert n2 == n and co == c, "deform_up requires in_ch // 2 == out_ch"
    # TODO(synk): general F.pad alignment (x2 spatial != exactly 2x of x1) is not handled
    # by the fused space-to-depth path; this module configuration always hits the 2x case.
    assert h2 == 2 * h and w2 == 2 * w, "fused path assumes x2 is exactly 2x of x1"
    groups = 16
    assert c % groups == 0, "GroupNorm(16, out_ch) needs out_ch % 16 == 0"

    ph, pw = _choose_packing(c, h2, w2, _target_cp())
    qh, qw = ph // 2, pw // 2
    hc, wc = h2 // ph, w2 // pw
    wp = _round_up(wc + 2, 8)                 # padded coarse width (>=1 zero col each side)
    cp = ph * pw * c
    k1 = qh * qw * ci

    # ---- input packing (space-to-depth) + 1 zero coarse row/col of padding ----
    x1p = (x1_nchw.astype(compute_dtype)
           .reshape(n, ci, hc, qh, wc, qw)
           .transpose(0, 2, 4, 3, 5, 1)
           .reshape(n, hc, wc, k1))
    x2p = (x2_nchw.astype(compute_dtype)
           .reshape(n, c, hc, ph, wc, pw)
           .transpose(0, 2, 4, 3, 5, 1)
           .reshape(n, hc, wc, cp))
    x1f = jnp.pad(x1p, ((0, 0), (1, 1), (1, wp - wc - 1), (0, 0))).reshape(
        n, (hc + 2) * wp, k1)
    x2f = jnp.pad(x2p, ((0, 0), (1, 1), (1, wp - wc - 1), (0, 0))).reshape(
        n, (hc + 2) * wp, cp)

    # ---- fused weights ----
    wt = params["wt"].astype(f32)                                   # (ci, c, 2, 2)
    wu = _build_up_weight(wt, ci, c, ph, pw).astype(compute_dtype)  # (k1, cp)
    w2m = params["w2"][:, :, 0, 0].astype(f32)                      # (cout, cin)
    wpw = jnp.kron(jnp.eye(ph * pw, dtype=f32), w2m.T).astype(compute_dtype)
    bias_s = jnp.tile(params["bt"].astype(f32) + params["b2"].astype(f32), ph * pw)
    bwin = jnp.zeros((wp, cp), f32).at[1:wc + 1, :].set(bias_s[None, :])
    wcat = _build_conv3_weight(params["w3"].astype(f32), c, ph, pw).astype(compute_dtype)
    b3 = jnp.tile(params["b3"].astype(f32), ph * pw).reshape(1, cp)

    th = _pick_th(hc, wp, cp, k1, n, jnp.dtype(compute_dtype).itemsize)

    # ---- one fused Pallas kernel: up + 1x1 + add + 3x3 conv + GN partial sums ----
    y, ps1, ps2 = _fused_call(x1f, x2f, wu, wpw, bwin, wcat, b3,
                              n=n, hc=hc, wc=wc, wp=wp, cp=cp, k1=k1, th=th,
                              out_dtype=compute_dtype)

    # ---- GroupNorm statistics (tiny, plain JAX on (N, Cp) sums) ----
    s1 = jnp.sum(ps1[:, :, 0, :], axis=1)                  # (n, cp)
    s2 = jnp.sum(ps2[:, :, 0, :], axis=1)
    mg = ((jnp.arange(cp) % c)[:, None] // (c // groups)
          == jnp.arange(groups)[None, :]).astype(f32)
    cnt = float(h2 * w2 * (c // groups))
    gmean = (s1 @ mg) / cnt
    gvar = jnp.maximum((s2 @ mg) / cnt - gmean * gmean, 0.0)   # clamp (review concern)
    ginv = jax.lax.rsqrt(gvar + 1e-5)
    mean_c = gmean @ mg.T
    inv_c = ginv @ mg.T
    gamma = jnp.tile(params["gn_w"].astype(f32), ph * pw)
    beta = jnp.tile(params["gn_b"].astype(f32), ph * pw)
    scale_c = gamma[None, :] * inv_c
    shift_c = beta[None, :] - mean_c * scale_c

    # ---- epilogue: affine + ReLU folded into the single depth-to-space/NCHW pass ----
    z = jnp.maximum(y.astype(f32) * scale_c[:, None, :] + shift_c[:, None, :], 0.0)
    z = z.reshape(n, hc, wp, ph, pw, c)[:, :, :wc]
    out = z.transpose(0, 5, 1, 3, 2, 4).reshape(n, c, h2, w2)
    return out


# ----------------------------------------------------------------------------
# Pure-JAX reference (mirrors PyTorch semantics), used for the correctness check.
# ----------------------------------------------------------------------------
def ref_forward(x1, x2, p):
    n, ci, h, w = x1.shape
    _, c, h2, w2 = x2.shape
    co = p["wt"].shape[1]
    up = jnp.einsum("nihw,iokl->nohkwl", x1, p["wt"]).reshape(n, co, 2 * h, 2 * w)
    up = up + p["bt"][None, :, None, None]
    dy = h2 - 2 * h
    dx = w2 - 2 * w
    up = jnp.pad(up, ((0, 0), (0, 0), (dy // 2, dy - dy // 2), (dx // 2, dx - dx // 2)))
    pw = jnp.einsum("nihw,oi->nohw", x2, p["w2"][:, :, 0, 0]) + p["b2"][None, :, None, None]
    s = up + pw
    sp = jnp.pad(s, ((0, 0), (0, 0), (1, 1), (1, 1)))
    conv = jnp.broadcast_to(p["b3"][None, :, None, None], (n, c, h2, w2)).astype(jnp.float32)
    for kh in range(3):
        for kw in range(3):
            conv = conv + jnp.einsum(
                "nihw,oi->nohw", sp[:, :, kh:kh + h2, kw:kw + w2], p["w3"][:, :, kh, kw])
    groups = 16
    cgrp = conv.reshape(n, groups, c // groups, h2, w2)
    mu = cgrp.mean(axis=(2, 3, 4), keepdims=True)
    var = cgrp.var(axis=(2, 3, 4), keepdims=True)
    norm = ((cgrp - mu) / jnp.sqrt(var + 1e-5)).reshape(n, c, h2, w2)
    return jnp.maximum(norm * p["gn_w"][None, :, None, None] + p["gn_b"][None, :, None, None], 0.0)


if __name__ == "__main__":
    # deform_up(in_ch=32, out_ch=16, innermost=False, bilinear=False, p=0)
    in_ch, out_ch = 32, 16
    N, H, W = 2, 8, 8                  # x1 spatial; x2 spatial is 2x
    key = jax.random.PRNGKey(0)
    ks = jax.random.split(key, 10)
    params = {
        "wt": 0.1 * jax.random.normal(ks[0], (in_ch, in_ch // 2, 2, 2), jnp.float32),
        "bt": 0.1 * jax.random.normal(ks[1], (in_ch // 2,), jnp.float32),
        "w2": 0.1 * jax.random.normal(ks[2], (out_ch, out_ch, 1, 1), jnp.float32),
        "b2": 0.1 * jax.random.normal(ks[3], (out_ch,), jnp.float32),
        "w3": 0.1 * jax.random.normal(ks[4], (out_ch, out_ch, 3, 3), jnp.float32),
        "b3": 0.1 * jax.random.normal(ks[5], (out_ch,), jnp.float32),
        "gn_w": 1.0 + 0.1 * jax.random.normal(ks[6], (out_ch,), jnp.float32),
        "gn_b": 0.1 * jax.random.normal(ks[7], (out_ch,), jnp.float32),
    }
    x1 = jax.random.normal(ks[8], (N, in_ch, H, W), jnp.float32)
    x2 = jax.random.normal(ks[9], (N, out_ch, 2 * H, 2 * W), jnp.float32)

    ref = ref_forward(x1, x2, params)

    # exact-math check: f32 operands end to end
    fwd_f32 = jax.jit(functools.partial(deform_up_forward, compute_dtype=jnp.float32))
    out_f32 = jax.block_until_ready(fwd_f32(x1, x2, params))
    assert out_f32.shape == ref.shape == (N, out_ch, 2 * H, 2 * W)
    err32 = float(jnp.max(jnp.abs(out_f32 - ref)))
    assert err32 < 3e-3, f"f32 max abs err {err32}"

    # performance configuration: bf16 MXU operands, f32 accumulation / epilogue
    fwd_bf16 = jax.jit(functools.partial(deform_up_forward, compute_dtype=jnp.bfloat16))
    out_bf16 = jax.block_until_ready(fwd_bf16(x1, x2, params))
    err16 = float(jnp.max(jnp.abs(out_bf16 - ref)))
    assert err16 < 7e-2, f"bf16 max abs err {err16}"

    print("KERNEL_OK")
</pallas_src>

<mosaic_0001>
module attributes {stable_mosaic.version = 11 : i64} {
  func.func @_fused_deform_up_kernel(%arg0: i32, %arg1: i32, %arg2: memref<1x32x128xf32, #tpu.memory_space<vmem>>, %arg3: memref<1x16x128xf32, #tpu.memory_space<vmem>>, %arg4: memref<1x16x128xf32, #tpu.memory_space<vmem>>, %arg5: memref<1x32x256xf32, #tpu.memory_space<vmem>>, %arg6: memref<1x16x256xf32, #tpu.memory_space<vmem>>, %arg7: memref<1x16x256xf32, #tpu.memory_space<vmem>>, %arg8: memref<128x256xf32, #tpu.memory_space<vmem>>, %arg9: memref<256x256xf32, #tpu.memory_space<vmem>>, %arg10: memref<16x256xf32, #tpu.memory_space<vmem>>, %arg11: memref<2304x256xf32, #tpu.memory_space<vmem>>, %arg12: memref<1x256xf32, #tpu.memory_space<vmem>>, %arg13: memref<1x32x256xf32, #tpu.memory_space<vmem>>, %arg14: memref<1x1x1x256xf32, #tpu.memory_space<vmem>>, %arg15: memref<1x1x1x256xf32, #tpu.memory_space<vmem>>, %arg16: memref<72x256xf32, #tpu.memory_space<vmem>>, %arg17: memref<32x2304xf32, #tpu.memory_space<vmem>>) attributes {dimension_semantics = [#tpu.dimension_semantics<parallel>, #tpu.dimension_semantics<parallel>], iteration_bounds = array<i64: 2, 1>, scalar_prefetch = 0 : i64, scratch_operands = 2 : i64, tpu.core_type = #tpu.core_type<tc>, window_params = [{transform_indices = @transform_0, window_bounds = array<i64: 1, 32, 128>}, {transform_indices = @transform_1, window_bounds = array<i64: 1, 16, 128>}, {transform_indices = @transform_2, window_bounds = array<i64: 1, 16, 128>}, {transform_indices = @transform_3, window_bounds = array<i64: 1, 32, 256>}, {transform_indices = @transform_4, window_bounds = array<i64: 1, 16, 256>}, {transform_indices = @transform_5, window_bounds = array<i64: 1, 16, 256>}, {pipeline_mode = #tpu.pipeline_mode<synchronous>, transform_indices = @transform_6, window_bounds = array<i64: 128, 256>}, {pipeline_mode = #tpu.pipeline_mode<synchronous>, transform_indices = @transform_7, window_bounds = array<i64: 256, 256>}, {pipeline_mode = #tpu.pipeline_mode<synchronous>, transform_indices = @transform_8, window_bounds = array<i64: 16, 256>}, {pipeline_mode = #tpu.pipeline_mode<synchronous>, transform_indices = @transform_9, window_bounds = array<i64: 2304, 256>}, {pipeline_mode = #tpu.pipeline_mode<synchronous>, transform_indices = @transform_10, window_bounds = array<i64: 1, 256>}, {transform_indices = @transform_11, window_bounds = array<i64: 1, 32, 256>}, {transform_indices = @transform_12, window_bounds = array<i64: 1, 1, 1, 256>}, {transform_indices = @transform_13, window_bounds = array<i64: 1, 1, 1, 256>}]} {
    %c0 = arith.constant 0 : index
    %c0_0 = arith.constant 0 : index
    %0 = vector.load %arg8[%c0, %c0_0] : memref<128x256xf32, #tpu.memory_space<vmem>>, vector<128x256xf32>
    %c0_1 = arith.constant 0 : index
    %c0_2 = arith.constant 0 : index
    %1 = vector.load %arg9[%c0_1, %c0_2] : memref<256x256xf32, #tpu.memory_space<vmem>>, vector<256x256xf32>
    %c0_3 = arith.constant 0 : index
    %c0_4 = arith.constant 0 : index
    %2 = vector.load %arg10[%c0_3, %c0_4] : memref<16x256xf32, #tpu.memory_space<vmem>>, vector<16x256xf32>
    %c0_5 = arith.constant 0 : index
    %c0_6 = arith.constant 0 : index
    %c0_7 = arith.constant 0 : index
    %3 = vector.load %arg2[%c0_5, %c0_6, %c0_7] : memref<1x32x128xf32, #tpu.memory_space<vmem>>, vector<1x32x128xf32>
    %4 = vector.shape_cast %3 : vector<1x32x128xf32> to vector<32x128xf32>
    %cst = arith.constant dense<0.000000e+00> : vector<32x256xf32>
    %5 = tpu.matmul %4, %0, %cst {dimension_numbers = #tpu.dot_dimension_numbers<[1], [0], [0], [1], [0, 0, 1, 1], [], []>} : vector<32x128xf32>, vector<128x256xf32>, vector<32x256xf32> -> vector<32x256xf32>
    %c0_8 = arith.constant 0 : index
    %c0_9 = arith.constant 0 : index
    %c0_10 = arith.constant 0 : index
    %6 = vector.load %arg5[%c0_8, %c0_9, %c0_10] : memref<1x32x256xf32, #tpu.memory_space<vmem>>, vector<1x32x256xf32>
    %7 = vector.shape_cast %6 : vector<1x32x256xf32> to vector<32x256xf32>
    %cst_11 = arith.constant dense<0.000000e+00> : vector<32x256xf32>
    %8 = tpu.matmul %7, %1, %cst_11 {dimension_numbers = #tpu.dot_dimension_numbers<[1], [0], [0], [1], [0, 0, 1, 1], [], []>} : vector<32x256xf32>, vector<256x256xf32>, vector<32x256xf32> -> vector<32x256xf32>
    %9 = arith.addf %5, %8 : vector<32x256xf32>
    %10 = vector.shape_cast %9 : vector<32x256xf32> to vector<2x16x256xf32>
    %11 = vector.shape_cast %2 : vector<16x256xf32> to vector<1x16x256xf32>
    %12 = vector.broadcast %11 : vector<1x16x256xf32> to vector<2x16x256xf32>
    %13 = arith.addf %10, %12 : vector<2x16x256xf32>
    %14 = vector.shape_cast %13 : vector<2x16x256xf32> to vector<32x256xf32>
    %c0_12 = arith.constant 0 : index
    %c0_13 = arith.constant 0 : index
    %15 = vector.load %arg16[%c0_12, %c0_13] : memref<72x256xf32, #tpu.memory_space<vmem>>, vector<32x256xf32>
    tpu.vector_store %arg16[%c0_12, %c0_13], %14 {strides = array<i32>} : memref<72x256xf32, #tpu.memory_space<vmem>>, vector<32x256xf32>,
    %c0_14 = arith.constant 0 : index
    %c0_15 = arith.constant 0 : index
    %c0_16 = arith.constant 0 : index
    %16 = vector.load %arg3[%c0_14, %c0_15, %c0_16] : memref<1x16x128xf32, #tpu.memory_space<vmem>>, vector<1x16x128xf32>
    %17 = vector.shape_cast %16 : vector<1x16x128xf32> to vector<16x128xf32>
    %cst_17 = arith.constant dense<0.000000e+00> : vector<16x256xf32>
    %18 = tpu.matmul %17, %0, %cst_17 {dimension_numbers = #tpu.dot_dimension_numbers<[1], [0], [0], [1], [0, 0, 1, 1], [], []>} : vector<16x128xf32>, vector<128x256xf32>, vector<16x256xf32> -> vector<16x256xf32>
    %c0_18 = arith.constant 0 : index
    %c0_19 = arith.constant 0 : index
    %c0_20 = arith.constant 0 : index
    %19 = vector.load %arg6[%c0_18, %c0_19, %c0_20] : memref<1x16x256xf32, #tpu.memory_space<vmem>>, vector<1x16x256xf32>
    %20 = vector.shape_cast %19 : vector<1x16x256xf32> to vector<16x256xf32>
    %cst_21 = arith.constant dense<0.000000e+00> : vector<16x256xf32>
    %21 = tpu.matmul %20, %1, %cst_21 {dimension_numbers = #tpu.dot_dimension_numbers<[1], [0], [0], [1], [0, 0, 1, 1], [], []>} : vector<16x256xf32>, vector<256x256xf32>, vector<16x256xf32> -> vector<16x256xf32>
    %22 = arith.addf %18, %21 : vector<16x256xf32>
    %23 = arith.addf %22, %2 : vector<16x256xf32>
    %c32 = arith.constant 32 : index
    %c0_22 = arith.constant 0 : index
    %24 = vector.load %arg16[%c32, %c0_22] : memref<72x256xf32, #tpu.memory_space<vmem>>, vector<16x256xf32>
    tpu.vector_store %arg16[%c32, %c0_22], %23 {strides = array<i32>} : memref<72x256xf32, #tpu.memory_space<vmem>>, vector<16x256xf32>,
    %c0_23 = arith.constant 0 : index
    %c0_24 = arith.constant 0 : index
    %c0_25 = arith.constant 0 : index
    %25 = vector.load %arg4[%c0_23, %c0_24, %c0_25] : memref<1x16x128xf32, #tpu.memory_space<vmem>>, vector<1x16x128xf32>
    %26 = vector.shape_cast %25 : vector<1x16x128xf32> to vector<16x128xf32>
    %cst_26 = arith.constant dense<0.000000e+00> : vector<16x256xf32>
    %27 = tpu.matmul %26, %0, %cst_26 {dimension_numbers = #tpu.dot_dimension_numbers<[1], [0], [0], [1], [0, 0, 1, 1], [], []>} : vector<16x128xf32>, vector<128x256xf32>, vector<16x256xf32> -> vector<16x256xf32>
    %c0_27 = arith.constant 0 : index
    %c0_28 = arith.constant 0 : index
    %c0_29 = arith.constant 0 : index
    %28 = vector.load %arg7[%c0_27, %c0_28, %c0_29] : memref<1x16x256xf32, #tpu.memory_space<vmem>>, vector<1x16x256xf32>
    %29 = vector.shape_cast %28 : vector<1x16x256xf32> to vector<16x256xf32>
    %cst_30 = arith.constant dense<0.000000e+00> : vector<16x256xf32>
    %30 = tpu.matmul %29, %1, %cst_30 {dimension_numbers = #tpu.dot_dimension_numbers<[1], [0], [0], [1], [0, 0, 1, 1], [], []>} : vector<16x256xf32>, vector<256x256xf32>, vector<16x256xf32> -> vector<16x256xf32>
    %31 = arith.addf %27, %30 : vector<16x256xf32>
    %32 = arith.addf %31, %2 : vector<16x256xf32>
    %c48 = arith.constant 48 : index
    %c0_31 = arith.constant 0 : index
    %33 = vector.load %arg16[%c48, %c0_31] : memref<72x256xf32, #tpu.memory_space<vmem>>, vector<16x256xf32>
    tpu.vector_store %arg16[%c48, %c0_31], %32 {strides = array<i32>} : memref<72x256xf32, #tpu.memory_space<vmem>>, vector<16x256xf32>,
    %cst_32 = arith.constant 0.000000e+00 : f32
    %34 = vector.broadcast %cst_32 : f32 to vector<8x256xf32>
    %c64 = arith.constant 64 : index
    %c0_33 = arith.constant 0 : index
    %35 = vector.load %arg16[%c64, %c0_33] : memref<72x256xf32, #tpu.memory_space<vmem>>, vector<8x256xf32>
    tpu.vector_store %arg16[%c64, %c0_33], %34 {strides = array<i32>} : memref<72x256xf32, #tpu.memory_space<vmem>>, vector<8x256xf32>,
    %c0_i32 = arith.constant 0 : i32
    %36 = arith.cmpi eq, %arg1, %c0_i32 : i32
    %37 = arith.extui %36 : i1 to i32
    %c0_i32_34 = arith.constant 0 : i32
    %38 = arith.cmpi ne, %37, %c0_i32_34 : i32
    scf.if %38 {
      %cst_78 = arith.constant 0.000000e+00 : f32
      %88 = vector.broadcast %cst_78 : f32 to vector<16x256xf32>
      %c0_79 = arith.constant 0 : index
      %c0_80 = arith.constant 0 : index
      %89 = vector.load %arg16[%c0_79, %c0_80] : memref<72x256xf32, #tpu.memory_space<vmem>>, vector<16x256xf32>
      tpu.vector_store %arg16[%c0_79, %c0_80], %88 {strides = array<i32>} : memref<72x256xf32, #tpu.memory_space<vmem>>, vector<16x256xf32>,
    } else {
    }
    %c0_i32_35 = arith.constant 0 : i32
    %39 = arith.cmpi eq, %arg1, %c0_i32_35 : i32
    %40 = arith.extui %39 : i1 to i32
    %c0_i32_36 = arith.constant 0 : i32
    %41 = arith.cmpi ne, %40, %c0_i32_36 : i32
    scf.if %41 {
      %cst_78 = arith.constant 0.000000e+00 : f32
      %88 = vector.broadcast %cst_78 : f32 to vector<16x256xf32>
      %c48_79 = arith.constant 48 : index
      %c0_80 = arith.constant 0 : index
      %89 = vector.load %arg16[%c48_79, %c0_80] : memref<72x256xf32, #tpu.memory_space<vmem>>, vector<16x256xf32>
      tpu.vector_store %arg16[%c48_79, %c0_80], %88 {strides = array<i32>} : memref<72x256xf32, #tpu.memory_space<vmem>>, vector<16x256xf32>,
    } else {
    }
    %c0_37 = arith.constant 0 : index
    %c0_38 = arith.constant 0 : index
    %42 = vector.load %arg16[%c0_37, %c0_38] : memref<72x256xf32, #tpu.memory_space<vmem>>, vector<32x256xf32>
    %c0_39 = arith.constant 0 : index
    %c0_40 = arith.constant 0 : index
    %43 = vector.load %arg17[%c0_39, %c0_40] : memref<32x2304xf32, #tpu.memory_space<vmem>>, vector<32x256xf32>
    tpu.vector_store %arg17[%c0_39, %c0_40], %42 {strides = array<i32>} : memref<32x2304xf32, #tpu.memory_space<vmem>>, vector<32x256xf32>,
    %c1 = arith.constant 1 : index
    %c0_41 = arith.constant 0 : index
    %44 = vector.load %arg16[%c1, %c0_41] : memref<72x256xf32, #tpu.memory_space<vmem>>, vector<32x256xf32>
    %c0_42 = arith.constant 0 : index
    %c256 = arith.constant 256 : index
    %45 = vector.load %arg17[%c0_42, %c256] : memref<32x2304xf32, #tpu.memory_space<vmem>>, vector<32x256xf32>
    tpu.vector_store %arg17[%c0_42, %c256], %44 {strides = array<i32>} : memref<32x2304xf32, #tpu.memory_space<vmem>>, vector<32x256xf32>,
    %c2 = arith.constant 2 : index
    %c0_43 = arith.constant 0 : index
    %46 = vector.load %arg16[%c2, %c0_43] : memref<72x256xf32, #tpu.memory_space<vmem>>, vector<32x256xf32>
    %c0_44 = arith.constant 0 : index
    %c512 = arith.constant 512 : index
    %47 = vector.load %arg17[%c0_44, %c512] : memref<32x2304xf32, #tpu.memory_space<vmem>>, vector<32x256xf32>
    tpu.vector_store %arg17[%c0_44, %c512], %46 {strides = array<i32>} : memref<32x2304xf32, #tpu.memory_space<vmem>>, vector<32x256xf32>,
    %c16 = arith.constant 16 : index
    %c0_45 = arith.constant 0 : index
    %48 = vector.load %arg16[%c16, %c0_45] : memref<72x256xf32, #tpu.memory_space<vmem>>, vector<32x256xf32>
    %c0_46 = arith.constant 0 : index
    %c768 = arith.constant 768 : index
    %49 = vector.load %arg17[%c0_46, %c768] : memref<32x2304xf32, #tpu.memory_space<vmem>>, vector<32x256xf32>
    tpu.vector_store %arg17[%c0_46, %c768], %48 {strides = array<i32>} : memref<32x2304xf32, #tpu.memory_space<vmem>>, vector<32x256xf32>,
    %c17 = arith.constant 17 : index
    %c0_47 = arith.constant 0 : index
    %50 = vector.load %arg16[%c17, %c0_47] : memref<72x256xf32, #tpu.memory_space<vmem>>, vector<32x256xf32>
    %c0_48 = arith.constant 0 : index
    %c1024 = arith.constant 1024 : index
    %51 = vector.load %arg17[%c0_48, %c1024] : memref<32x2304xf32, #tpu.memory_space<vmem>>, vector<32x256xf32>
    tpu.vector_store %arg17[%c0_48, %c1024], %50 {strides = array<i32>} : memref<32x2304xf32, #tpu.memory_space<vmem>>, vector<32x256xf32>,
    %c18 = arith.constant 18 : index
    %c0_49 = arith.constant 0 : index
    %52 = vector.load %arg16[%c18, %c0_49] : memref<72x256xf32, #tpu.memory_space<vmem>>, vector<32x256xf32>
    %c0_50 = arith.constant 0 : index
    %c1280 = arith.constant 1280 : index
    %53 = vector.load %arg17[%c0_50, %c1280] : memref<32x2304xf32, #tpu.memory_space<vmem>>, vector<32x256xf32>
    tpu.vector_store %arg17[%c0_50, %c1280], %52 {strides = array<i32>} : memref<32x2304xf32, #tpu.memory_space<vmem>>, vector<32x256xf32>,
    %c32_51 = arith.constant 32 : index
    %c0_52 = arith.constant 0 : index
    %54 = vector.load %arg16[%c32_51, %c0_52] : memref<72x256xf32, #tpu.memory_space<vmem>>, vector<32x256xf32>
    %c0_53 = arith.constant 0 : index
    %c1536 = arith.constant 1536 : index
    %55 = vector.load %arg17[%c0_53, %c1536] : memref<32x2304xf32, #tpu.memory_space<vmem>>, vector<32x256xf32>
    tpu.vector_store %arg17[%c0_53, %c1536], %54 {strides = array<i32>} : memref<32x2304xf32, #tpu.memory_space<vmem>>, vector<32x256xf32>,
    %c33 = arith.constant 33 : index
    %c0_54 = arith.constant 0 : index
    %56 = vector.load %arg16[%c33, %c0_54] : memref<72x256xf32, #tpu.memory_space<vmem>>, vector<32x256xf32>
    %c0_55 = arith.constant 0 : index
    %c1792 = arith.constant 1792 : index
    %57 = vector.load %arg17[%c0_55, %c1792] : memref<32x2304xf32, #tpu.memory_space<vmem>>, vector<32x256xf32>
    tpu.vector_store %arg17[%c0_55, %c1792], %56 {strides = array<i32>} : memref<32x2304xf32, #tpu.memory_space<vmem>>, vector<32x256xf32>,
    %c34 = arith.constant 34 : index
    %c0_56 = arith.constant 0 : index
    %58 = vector.load %arg16[%c34, %c0_56] : memref<72x256xf32, #tpu.memory_space<vmem>>, vector<32x256xf32>
    %c0_57 = arith.constant 0 : index
    %c2048 = arith.constant 2048 : index
    %59 = vector.load %arg17[%c0_57, %c2048] : memref<32x2304xf32, #tpu.memory_space<vmem>>, vector<32x256xf32>
    tpu.vector_store %arg17[%c0_57, %c2048], %58 {strides = array<i32>} : memref<32x2304xf32, #tpu.memory_space<vmem>>, vector<32x256xf32>,
    %c0_58 = arith.constant 0 : index
    %c0_59 = arith.constant 0 : index
    %60 = vector.load %arg17[%c0_58, %c0_59] : memref<32x2304xf32, #tpu.memory_space<vmem>>, vector<32x2304xf32>
    %c0_60 = arith.constant 0 : index
    %c0_61 = arith.constant 0 : index
    %61 = vector.load %arg11[%c0_60, %c0_61] : memref<2304x256xf32, #tpu.memory_space<vmem>>, vector<2304x256xf32>
    %cst_62 = arith.constant dense<0.000000e+00> : vector<32x256xf32>
    %62 = tpu.matmul %60, %61, %cst_62 {dimension_numbers = #tpu.dot_dimension_numbers<[1], [0], [0], [1], [0, 0, 1, 1], [], []>} : vector<32x2304xf32>, vector<2304x256xf32>, vector<32x256xf32> -> vector<32x256xf32>
    %c0_63 = arith.constant 0 : index
    %c0_64 = arith.constant 0 : index
    %63 = vector.load %arg12[%c0_63, %c0_64] : memref<1x256xf32, #tpu.memory_space<vmem>>, vector<1x256xf32>
    %64 = vector.broadcast %63 : vector<1x256xf32> to vector<32x256xf32>
    %65 = arith.addf %62, %64 : vector<32x256xf32>
    %c0_65 = arith.constant 0 : index
    %c0_66 = arith.constant 0 : index
    %c0_67 = arith.constant 0 : index
    %66 = vector.load %arg13[%c0_65, %c0_66, %c0_67] : memref<1x32x256xf32, #tpu.memory_space<vmem>>, vector<1x32x256xf32>
    %67 = vector.shape_cast %66 : vector<1x32x256xf32> to vector<32x256xf32>
    %68 = vector.shape_cast %65 : vector<32x256xf32> to vector<1x32x256xf32>
    tpu.vector_store %arg13[%c0_65, %c0_66, %c0_67], %68 {strides = array<i32>} : memref<1x32x256xf32, #tpu.memory_space<vmem>>, vector<1x32x256xf32>,
    %69 = tpu.iota {dimensions = array<i32: 1>} : vector<1x16x1xi32>
    %c8_i32 = arith.constant 8 : i32
    %70 = vector.broadcast %c8_i32 : i32 to vector<1x16x1xi32>
    %71 = arith.cmpi slt, %69, %70 : vector<1x16x1xi32>
    %72 = arith.extui %71 : vector<1x16x1xi1> to vector<1x16x1xi32>
    %73 = arith.sitofp %72 : vector<1x16x1xi32> to vector<1x16x1xf32>
    %74 = vector.shape_cast %65 : vector<32x256xf32> to vector<2x16x256xf32>
    %75 = vector.broadcast %73 : vector<1x16x1xf32> to vector<2x16x256xf32>
    %76 = arith.mulf %74, %75 : vector<2x16x256xf32>
    %cst_68 = arith.constant dense<0.000000e+00> : vector<256xf32>
    %77 = vector.multi_reduction <add>, %76, %cst_68 [0, 1] : vector<2x16x256xf32> to vector<256xf32>
    %78 = vector.shape_cast %77 : vector<256xf32> to vector<1x256xf32>
    %c0_69 = arith.constant 0 : index
    %c0_70 = arith.constant 0 : index
    %c0_71 = arith.constant 0 : index
    %c0_72 = arith.constant 0 : index
    %79 = vector.load %arg14[%c0_69, %c0_70, %c0_71, %c0_72] : memref<1x1x1x256xf32, #tpu.memory_space<vmem>>, vector<1x1x1x256xf32>
    %80 = vector.shape_cast %79 : vector<1x1x1x256xf32> to vector<1x256xf32>
    %81 = vector.shape_cast %78 : vector<1x256xf32> to vector<1x1x1x256xf32>
    tpu.vector_store %arg14[%c0_69, %c0_70, %c0_71, %c0_72], %81 {strides = array<i32>} : memref<1x1x1x256xf32, #tpu.memory_space<vmem>>, vector<1x1x1x256xf32>,
    %82 = arith.mulf %76, %76 : vector<2x16x256xf32>
    %cst_73 = arith.constant dense<0.000000e+00> : vector<256xf32>
    %83 = vector.multi_reduction <add>, %82, %cst_73 [0, 1] : vector<2x16x256xf32> to vector<256xf32>
    %84 = vector.shape_cast %83 : vector<256xf32> to vector<1x256xf32>
    %c0_74 = arith.constant 0 : index
    %c0_75 = arith.constant 0 : index
    %c0_76 = arith.constant 0 : index
    %c0_77 = arith.constant 0 : index
    %85 = vector.load %arg15[%c0_74, %c0_75, %c0_76, %c0_77] : memref<1x1x1x256xf32, #tpu.memory_space<vmem>>, vector<1x1x1x256xf32>
    %86 = vector.shape_cast %85 : vector<1x1x1x256xf32> to vector<1x256xf32>
    %87 = vector.shape_cast %84 : vector<1x256xf32> to vector<1x1x1x256xf32>
    tpu.vector_store %arg15[%c0_74, %c0_75, %c0_76, %c0_77], %87 {strides = array<i32>} : memref<1x1x1x256xf32, #tpu.memory_space<vmem>>, vector<1x1x1x256xf32>,
    return
  }
  func.func @transform_0(%arg0: i32, %arg1: i32) -> (i32, i32, i32) {
    %c0_i32 = arith.constant 0 : i32
    %c0_i32_0 = arith.constant 0 : i32
    return %arg0, %arg1, %c0_i32 : i32, i32, i32
  }
  func.func @transform_1(%arg0: i32, %arg1: i32) -> (i32, i32, i32) {
    %c2_i32 = arith.constant 2 : i32
    %0 = arith.muli %arg1, %c2_i32 : i32
    %c2_i32_0 = arith.constant 2 : i32
    %1 = arith.addi %0, %c2_i32_0 : i32
    %c0_i32 = arith.constant 0 : i32
    %c0_i32_1 = arith.constant 0 : i32
    return %arg0, %1, %c0_i32 : i32, i32, i32
  }
  func.func @transform_2(%arg0: i32, %arg1: i32) -> (i32, i32, i32) {
    %c2_i32 = arith.constant 2 : i32
    %0 = arith.muli %arg1, %c2_i32 : i32
    %c2_i32_0 = arith.constant 2 : i32
    %1 = arith.addi %0, %c2_i32_0 : i32
    %c1_i32 = arith.constant 1 : i32
    %2 = arith.addi %1, %c1_i32 : i32
    %c0_i32 = arith.constant 0 : i32
    %c0_i32_1 = arith.constant 0 : i32
    return %arg0, %2, %c0_i32 : i32, i32, i32
  }
  func.func @transform_3(%arg0: i32, %arg1: i32) -> (i32, i32, i32) {
    %c0_i32 = arith.constant 0 : i32
    %c0_i32_0 = arith.constant 0 : i32
    return %arg0, %arg1, %c0_i32 : i32, i32, i32
  }
  func.func @transform_4(%arg0: i32, %arg1: i32) -> (i32, i32, i32) {
    %c2_i32 = arith.constant 2 : i32
    %0 = arith.muli %arg1, %c2_i32 : i32
    %c2_i32_0 = arith.constant 2 : i32
    %1 = arith.addi %0, %c2_i32_0 : i32
    %c0_i32 = arith.constant 0 : i32
    %c0_i32_1 = arith.constant 0 : i32
    return %arg0, %1, %c0_i32 : i32, i32, i32
  }
  func.func @transform_5(%arg0: i32, %arg1: i32) -> (i32, i32, i32) {
    %c2_i32 = arith.constant 2 : i32
    %0 = arith.muli %arg1, %c2_i32 : i32
    %c2_i32_0 = arith.constant 2 : i32
    %1 = arith.addi %0, %c2_i32_0 : i32
    %c1_i32 = arith.constant 1 : i32
    %2 = arith.addi %1, %c1_i32 : i32
    %c0_i32 = arith.constant 0 : i32
    %c0_i32_1 = arith.constant 0 : i32
    return %arg0, %2, %c0_i32 : i32, i32, i32
  }
  func.func @transform_6(%arg0: i32, %arg1: i32) -> (i32, i32) {
    %c0_i32 = arith.constant 0 : i32
    %c0_i32_0 = arith.constant 0 : i32
    %c0_i32_1 = arith.constant 0 : i32
    return %c0_i32, %c0_i32_0 : i32, i32
  }
  func.func @transform_7(%arg0: i32, %arg1: i32) -> (i32, i32) {
    %c0_i32 = arith.constant 0 : i32
    %c0_i32_0 = arith.constant 0 : i32
    %c0_i32_1 = arith.constant 0 : i32
    return %c0_i32, %c0_i32_0 : i32, i32
  }
  func.func @transform_8(%arg0: i32, %arg1: i32) -> (i32, i32) {
    %c0_i32 = arith.constant 0 : i32
    %c0_i32_0 = arith.constant 0 : i32
    %c0_i32_1 = arith.constant 0 : i32
    return %c0_i32, %c0_i32_0 : i32, i32
  }
  func.func @transform_9(%arg0: i32, %arg1: i32) -> (i32, i32) {
    %c0_i32 = arith.constant 0 : i32
    %c0_i32_0 = arith.constant 0 : i32
    %c0_i32_1 = arith.constant 0 : i32
    return %c0_i32, %c0_i32_0 : i32, i32
  }
  func.func @transform_10(%arg0: i32, %arg1: i32) -> (i32, i32) {
    %c0_i32 = arith.constant 0 : i32
    %c0_i32_0 = arith.constant 0 : i32
    %c0_i32_1 = arith.constant 0 : i32
    return %c0_i32, %c0_i32_0 : i32, i32
  }
  func.func @transform_11(%arg0: i32, %arg1: i32) -> (i32, i32, i32) {
    %c0_i32 = arith.constant 0 : i32
    %c0_i32_0 = arith.constant 0 : i32
    return %arg0, %arg1, %c0_i32 : i32, i32, i32
  }
  func.func @transform_12(%arg0: i32, %arg1: i32) -> (i32, i32, i32, i32) {
    %c0_i32 = arith.constant 0 : i32
    %c0_i32_0 = arith.constant 0 : i32
    %c0_i32_1 = arith.constant 0 : i32
    return %arg0, %arg1, %c0_i32, %c0_i32_0 : i32, i32, i32, i32
  }
  func.func @transform_13(%arg0: i32, %arg1: i32) -> (i32, i32, i32, i32) {
    %c0_i32 = arith.constant 0 : i32
    %c0_i32_0 = arith.constant 0 : i32
    %c0_i32_1 = arith.constant 0 : i32
    return %arg0, %arg1, %c0_i32, %c0_i32_0 : i32, i32, i32, i32
  }
}

</mosaic_0001>

<bundles_post_ra>
// kernel: tile.23
= control target key start
LH: loop header
LB: loop body
LE: loop exit
PB: predicated region body
PF: predicated region fallthrough
CT: control target
= control target key end

     0   :  { %s28_s0 = inlined_call_operand.vmem [shape: f32[16], index: 0, kind: input, shape index: {}]   ;;  %s29_s1 = inlined_call_operand.vmem [shape: f32[16,16], index: 1, kind: output, shape index: {}]  }
   0x1   :  { %v4_v0 = vld [vmem:[%s28_s0] ss:$0 sm:$0xff] }
   0x2   :  { %5 = vst [vmem:[%s29_s1] sm:$0xff] %v4_v0 }
   0x3   :  { %8 = vst [vmem:[%s29_s1 + $0x8] sm:$0xff] %v4_v0 }

// kernel: tile.29
= control target key start
LH: loop header
LB: loop body
LE: loop exit
PB: predicated region body
PF: predicated region fallthrough
CT: control target
= control target key end

     0   :  { %s7_s6 = smov 3  ;;  %s21_s9 = smov 3  ;;  %vm4_vm0 = vcmask 130048   ;;  %vm11_vm1 = vcmask 1048448   ;;  %vm18_vm2 = vcmask 917248   ;;  %vm25_vm3 = vcmask 786048   ;;  %s129_s0 = inlined_call_operand.vmem [shape: f32[16,16], index: 0, kind: input, shape index: {}]   ;;  %s130_s1 = inlined_call_operand.vmem [shape: f32[1,256], index: 1, kind: output, shape index: {}]  }
   0x1   :  { %v67_v0 = vld [vmem:[%s129_s0 + $0x7] ss:$8 sm:%s7_s6]   ;;  %s82_s10 = smov 112   ;;  %v69_v1 = vld [vmem:[%s129_s0 + $0x5] ss:$8 sm:%s21_s9]   ;;  %s83_s13 = smov 80  }
   0x2   :  { %9 = vrot.lane.b32.xlu0 %v67_v0, %s82_s10  ;;  %23 = vrot.lane.b32.xlu1 %v69_v1, %s83_s13  ;;  %s14_s14 = smov 3  ;;  %s28_s15 = smov 3  ;;  %vm32_vm4 = vcmask 654848   ;;  %vm39_vm5 = vcmask 523648   ;;  %vm46_vm6 = vcmask 392448   ;;  %vm53_vm7 = vcmask 261248  }
   0x3   :  { %s35_s16 = smov 3  ;;  %v68_v3 = vld [vmem:[%s129_s0 + $0x6] ss:$8 sm:%s14_s14]   ;;  %s84_s21 = smov 48   ;;  %v70_v4 = vld [vmem:[%s129_s0 + $0x4] ss:$8 sm:%s28_s15]  }
   0x4   :  { %v71_v2 = vld [vmem:[%s129_s0 + $0x3] ss:$8 sm:%s35_s16]   ;;  %s42_s24 = smov 3  ;;  %s85_s25 = smov 96  }
   0x5   :  { %37 = vrot.lane.b32.xlu2 %v71_v2, %s84_s21  ;;  %s86_s26 = smov 64   ;;  %s49_s27 = smov 3  ;;  %v72_v5 = vld [vmem:[%s129_s0 + $0x2] ss:$8 sm:%s42_s24]  }
   0x6   :  { %v73_v6 = vld [vmem:[%s129_s0 + $0x1] ss:$8 sm:%s49_s27]   ;;  %s87_s3 = smov 32   ;;  %s88_s4 = smov 16  }
   0x7   :  { %s2_s5 = smov 3 }
   0x8   :  { %v3_v7 = vld [vmem:[%s129_s0] ss:$8 sm:%s2_s5]  }
   0x9   :  { %5 = vst.msk [vmem:[#allocation0] ss:$8 sm:$0x3] %vm4_vm0, %v3_v7  }
   0xa   :  { %16 = vrot.lane.b32.xlu0 %v68_v3, %s85_s25  ;;  %30 = vrot.lane.b32.xlu1 %v70_v4, %s86_s26 }
   0xd   :  { %44 = vrot.lane.b32.xlu2 %v72_v5, %s87_s3 }
  0x12   :  { %51 = vrot.lane.b32.xlu0 %v73_v6, %s88_s4 }
  0x5f   :  { %v38_v8 = vpop.permute.xlu2 %37  }
  0x67   :  { %v45_v9 = vpop.permute.xlu2 %44  }
  0x74   :  { %v10_v10 = vpop.permute.xlu0 %9   ;;  %v24_v11 = vpop.permute.xlu1 %23  }
  0x75   :  { %12 = vst.msk [vmem:[#allocation0] ss:$8 sm:$0x3] %vm11_vm1, %v10_v10  }
  0x7c   :  { %v17_v12 = vpop.permute.xlu0 %16   ;;  %v31_v13 = vpop.permute.xlu1 %30  }
  0x7d   :  { %19 = vst.msk [vmem:[#allocation0] ss:$8 sm:$0x3] %vm18_vm2, %v17_v12  }
  0x7e   :  { %26 = vst.msk [vmem:[#allocation0] ss:$8 sm:$0x3] %vm25_vm3, %v24_v11  }
  0x7f   :  { %33 = vst.msk [vmem:[#allocation0] ss:$8 sm:$0x3] %vm32_vm4, %v31_v13  }
  0x80   :  { %40 = vst.msk [vmem:[#allocation0] ss:$8 sm:$0x3] %vm39_vm5, %v38_v8  }
  0x81   :  { %47 = vst.msk [vmem:[#allocation0] ss:$8 sm:$0x3] %vm46_vm6, %v45_v9  }
  0x84   :  { %v52_v14 = vpop.permute.xlu0 %51  }
  0x85   :  { %54 = vst.msk [vmem:[#allocation0] ss:$8 sm:$0x3] %vm53_vm7, %v52_v14  }
  0x8c   :  { %v57_v15 = vld [vmem:[#allocation0] sm:$0x1]  ;;  %v62_v16 = vld [vmem:[#allocation0 + $0x8] sm:$0x1] }
  0x8d   :  { %60 = vst [vmem:[%s130_s1] sm:$0x1] %v57_v15 }
  0x8e   :  { %74 = vst [vmem:[%s130_s1 + $0x1] sm:$0x1] %v62_v16 }

// kernel: deform_up_forward.1
= control target key start
LH: loop header
LB: loop body
LE: loop exit
PB: predicated region body
PF: predicated region fallthrough
CT: control target
= control target key end

     0   :  { %s4032_s25 = smov 0   ;;  %s4034_s26 = smov 0   ;;  %s7507_s0 = inlined_call_operand.vmem [shape: f32[2,64,128], index: 0, kind: input, shape index: {}, may-alias: {0,1,2}]   ;;  %s7508_s1 = inlined_call_operand.vmem [shape: f32[2,64,128], index: 1, kind: input, shape index: {}, may-alias: {0,1,2}]   ;;  %s7509_s2 = inlined_call_operand.vmem [shape: f32[2,64,128], index: 2, kind: input, shape index: {}, may-alias: {0,1,2}]   ;;  %s7510_s3 = inlined_call_operand.vmem [shape: f32[2,64,256], index: 3, kind: input, shape index: {}, may-alias: {3,4,5}]   ;;  %s7511_s4 = inlined_call_operand.vmem [shape: f32[2,64,256], index: 4, kind: input, shape index: {}, may-alias: {3,4,5}]   ;;  %s7512_s5 = inlined_call_operand.vmem [shape: f32[2,64,256], index: 5, kind: input, shape index: {}, may-alias: {3,4,5}]   ;;  %s7513_s6 = inlined_call_operand.vmem [shape: f32[128,256], index: 6, kind: input, shape index: {}]   ;;  %s7514_s7 = inlined_call_operand.vmem [shape: f32[256,256], index: 7, kind: input, shape index: {}]   ;;  %s7515_s8 = inlined_call_operand.vmem [shape: f32[16,256], index: 8, kind: input, shape index: {}]   ;;  %s7516_s9 = inlined_call_operand.vmem [shape: f32[2304,256], index: 9, kind: input, shape index: {}]   ;;  %s7517_s10 = inlined_call_operand.vmem [shape: f32[1,256], index: 10, kind: input, shape index: {}]   ;;  %s7518_s11 = inlined_call_operand.vmem [shape: f32[2,32,256], index: 11, kind: output, shape index: {0}]   ;;  %s7519_s12 = inlined_call_operand.vmem [shape: f32[2,1,1,256], index: 12, kind: output, shape index: {1}]   ;;  %s7520_s13 = inlined_call_operand.vmem [shape: f32[2,1,1,256], index: 13, kind: output, shape index: {2}]  }
   0x1   :  { %s4036_s27 = smov 0  }
   0x2 LB: > { %s36_s28 = sadd.s32 1, %s3955_s26  ;;  %p3836_p0 = scmp.ge.s32.totalorder %s3959_s27, 1  ;;  %s3959_s27 = sphi %s4036_s27, %s24_s27   ;;  %s3955_s26 = sphi %s4034_s26, %s7776_s26   ;;  %s3951_s25 = sphi %s4032_s25, %s7775_s25  }
   0x3   : > { %p38_p1 = scmp.ge.s32.totalorder %s36_s28, 2  ;;  %p537_p2 = scmp.lt.s32.totalorder %s3959_s27, 3 }
   0x5   : > { %s7778_s28 = smov (%p38_p1, %s36_s28), 0  ;;  %p538_p3 = pnand %p3836_p0, %p537_p2 }
   0x7   : > { %541 = sbr.rel (%p538_p3) target bundleno = 729 (0x2d9), region = 64 }
   0xc   : > { %v4055_v0 = vld [vmem:[%s7514_s7 + $0xf0] sm:$0xff]  ;;  %v4065_v2 = vld [vmem:[%s7514_s7 + $0xf8] sm:$0xff]  ;;  %v4077_v4 = vld [vmem:[%s7514_s7 + $0xe0] sm:$0xff]  ;;  %p663_p4 = scmp.lt.s32.totalorder %s3951_s25, 1  ;;  %vm1424_vm0 = vcmask 1046528   ;;  %vm1479_vm1 = vcmask 1045504  }
   0xd   : > { %7611 = vst [vmem:[#allocation4_spill] sm:$0xff] %v4055_v0  ;;  %v4060_v1 = vld [vmem:[%s7514_s7 + $0x1f0] sm:$0xff]  ;;  %880 = vmatpush.msra.mxu0 %v4055_v0  ;;  %v4072_v3 = vld [vmem:[%s7514_s7 + $0x1f8] sm:$0xff]  ;;  %v4082_v5 = vld [vmem:[%s7514_s7 + $0x1e0] sm:$0xff]  ;;  %938 = vmatpush.msra.mxu2 %v4065_v2  ;;  %vm3506_vm2 = vcmask 1040384  }
   0xe   : > { %7612 = vst [vmem:[#allocation5_spill] sm:$0xff] %v4060_v1  ;;  %909 = vmatpush.msra.mxu1 %v4060_v1  ;;  %967 = vmatpush.msra.mxu3 %v4072_v3  ;;  %v4089_v6 = vld [vmem:[%s7514_s7 + $0xe8] sm:$0xff]  ;;  %v4099_v8 = vld [vmem:[%s7514_s7 + $0xd0] sm:$0xff]  ;;  %v4111_v10 = vld [vmem:[%s7514_s7 + $0xd8] sm:$0xff]  ;;  %s7780_s25 = smov (!%p663_p4, %s3951_s25), 1 }
   0xf   : > { %7613 = vst [vmem:[#allocation6_spill] sm:$0xff] %v4077_v4  ;;  %v4094_v7 = vld [vmem:[%s7514_s7 + $0x1e8] sm:$0xff]  ;;  %881 = vmatpush.msra.mxu0 %v4077_v4  ;;  %v4106_v9 = vld [vmem:[%s7514_s7 + $0x1d0] sm:$0xff]  ;;  %v4116_v11 = vld [vmem:[%s7514_s7 + $0x1d8] sm:$0xff]  ;;  %939 = vmatpush.msra.mxu2 %v4089_v6  ;;  %s4377_s16 = sshll.u32 %s7780_s25, 7  ;;  %s4664_s21 = sshll.u32 %s7780_s25, 6 }
  0x10   : > { %7614 = vst [vmem:[#allocation7_spill] sm:$0xff] %v4082_v5  ;;  %910 = vmatpush.msra.mxu1 %v4082_v5  ;;  %968 = vmatpush.msra.mxu3 %v4094_v7  ;;  %v4123_v12 = vld [vmem:[%s7514_s7 + $0xc0] sm:$0xff]  ;;  %v4135_v14 = vld [vmem:[%s7514_s7 + $0xc8] sm:$0xff]  ;;  %v4147_v16 = vld [vmem:[%s7514_s7 + $0xb0] sm:$0xff]  ;;  %s4419_s19 = scalar_lea.vmem %s7510_s3, %s4377_s16  ;;  %s4686_s14 = scalar_lea.vmem %s7507_s0, %s4664_s21 }
  0x11   : > { %7615 = vst [vmem:[#allocation8_spill] sm:$0xff] %v4099_v8  ;;  %v4128_v13 = vld [vmem:[%s7514_s7 + $0x1c0] sm:$0xff]  ;;  %882 = vmatpush.msra.mxu0 %v4099_v8  ;;  %v4140_v15 = vld [vmem:[%s7514_s7 + $0x1c8] sm:$0xff]  ;;  %940 = vmatpush.msra.mxu2 %v4111_v10  ;;  %v4152_v17 = vld [vmem:[%s7514_s7 + $0x1b0] sm:$0xff]  ;;  %s3862_s15 = sadd.s32 64, %s4377_s16  ;;  %s3857_s22 = sadd.s32 32, %s4664_s21 }
  0x12   : > { %7616 = vst [vmem:[#allocation9_spill] sm:$0xff] %v4106_v9  ;;  %911 = vmatpush.msra.mxu1 %v4106_v9  ;;  %969 = vmatpush.msra.mxu3 %v4116_v11  ;;  %v4159_v18 = vld [vmem:[%s7514_s7 + $0xb8] sm:$0xff]  ;;  %v4171_v20 = vld [vmem:[%s7514_s7 + $0xa0] sm:$0xff]  ;;  %v4183_v22 = vld [vmem:[%s7514_s7 + $0xa8] sm:$0xff]  ;;  %s4720_s20 = scalar_lea.vmem %s7511_s4, %s3862_s15  ;;  %s3864_s29 = sadd.s32 96, %s4377_s16 }
  0x13   : > { %7617 = vst [vmem:[#allocation10_spill] sm:$0xff] %v4123_v12  ;;  %883 = vmatpush.msra.mxu0 %v4123_v12  ;;  %v4164_v19 = vld [vmem:[%s7514_s7 + $0x1b8] sm:$0xff]  ;;  %941 = vmatpush.msra.mxu2 %v4135_v14  ;;  %v4176_v21 = vld [vmem:[%s7514_s7 + $0x1a0] sm:$0xff]  ;;  %v4188_v23 = vld [vmem:[%s7514_s7 + $0x1a8] sm:$0xff]  ;;  %s737_s15 = scalar_lea.vmem %s7512_s5, %s3864_s29 }
  0x14   : > { %7618 = vst [vmem:[#allocation11_spill] sm:$0xff] %v4128_v13  ;;  %912 = vmatpush.msra.mxu1 %v4128_v13  ;;  %970 = vmatpush.msra.mxu3 %v4140_v15  ;;  %v4195_v24 = vld [vmem:[%s7514_s7 + $0x90] sm:$0xff]  ;;  %v4207_v26 = vld [vmem:[%s7514_s7 + $0x98] sm:$0xff]  ;;  %v4219_v28 = vld [vmem:[%s7514_s7 + $0x80] sm:$0xff] }
  0x15   : > { %7619 = vst [vmem:[#allocation12_spill] sm:$0xff] %v4147_v16  ;;  %884 = vmatpush.msra.mxu0 %v4147_v16  ;;  %942 = vmatpush.msra.mxu2 %v4159_v18  ;;  %v4200_v25 = vld [vmem:[%s7514_s7 + $0x190] sm:$0xff]  ;;  %v4212_v27 = vld [vmem:[%s7514_s7 + $0x198] sm:$0xff]  ;;  %v4224_v29 = vld [vmem:[%s7514_s7 + $0x180] sm:$0xff] }
  0x16   : > { %7620 = vst [vmem:[#allocation13_spill] sm:$0xff] %v4152_v17  ;;  %913 = vmatpush.msra.mxu1 %v4152_v17  ;;  %971 = vmatpush.msra.mxu3 %v4164_v19  ;;  %v4231_v30 = vld [vmem:[%s7514_s7 + $0x88] sm:$0xff]  ;;  %v4243_v32 = vld [vmem:[%s7514_s7 + $0x70] sm:$0xff]  ;;  %v4255_v34 = vld [vmem:[%s7514_s7 + $0x78] sm:$0xff] }
  0x17   : > { %7621 = vst [vmem:[#allocation14_spill] sm:$0xff] %v4171_v20  ;;  %885 = vmatpush.msra.mxu0 %v4171_v20  ;;  %943 = vmatpush.msra.mxu2 %v4183_v22  ;;  %v4236_v31 = vld [vmem:[%s7514_s7 + $0x188] sm:$0xff]  ;;  %v4248_v33 = vld [vmem:[%s7514_s7 + $0x170] sm:$0xff]  ;;  %v4260_v35 = vld [vmem:[%s7514_s7 + $0x178] sm:$0xff] }
  0x18   : > { %7622 = vst [vmem:[#allocation15_spill] sm:$0xff] %v4176_v21  ;;  %914 = vmatpush.msra.mxu1 %v4176_v21  ;;  %972 = vmatpush.msra.mxu3 %v4188_v23  ;;  %v4267_v36 = vld [vmem:[%s7514_s7 + $0x60] sm:$0xff]  ;;  %v4280_v38 = vld [vmem:[%s7514_s7 + $0x68] sm:$0xff]  ;;  %v4292_v40 = vld [vmem:[%s7514_s7 + $0x50] sm:$0xff] }
  0x19   : > { %7623 = vst [vmem:[#allocation16_spill] sm:$0xff] %v4200_v25  ;;  %886 = vmatpush.msra.mxu0 %v4195_v24  ;;  %944 = vmatpush.msra.mxu2 %v4207_v26  ;;  %v4272_v37 = vld [vmem:[%s7514_s7 + $0x160] sm:$0xff]  ;;  %v4285_v39 = vld [vmem:[%s7514_s7 + $0x168] sm:$0xff]  ;;  %v4297_v41 = vld [vmem:[%s7514_s7 + $0x150] sm:$0xff] }
  0x1a   : > { %7624 = vst [vmem:[#allocation17_spill] sm:$0xff] %v4219_v28  ;;  %915 = vmatpush.msra.mxu1 %v4200_v25  ;;  %973 = vmatpush.msra.mxu3 %v4212_v27  ;;  %v4304_v42 = vld [vmem:[%s7514_s7 + $0x58] sm:$0xff]  ;;  %v4316_v44 = vld [vmem:[%s7514_s7 + $0x40] sm:$0xff]  ;;  %v4333_v46 = vld [vmem:[%s7514_s7 + $0x48] sm:$0xff] }
  0x1b   : > { %7625 = vst [vmem:[#allocation18_spill] sm:$0xff] %v4224_v29  ;;  %887 = vmatpush.msra.mxu0 %v4219_v28  ;;  %945 = vmatpush.msra.mxu2 %v4231_v30  ;;  %v4309_v43 = vld [vmem:[%s7514_s7 + $0x158] sm:$0xff]  ;;  %v4321_v45 = vld [vmem:[%s7514_s7 + $0x140] sm:$0xff]  ;;  %v4338_v47 = vld [vmem:[%s7514_s7 + $0x148] sm:$0xff] }
  0x1c   : > { %7626 = vst [vmem:[#allocation19_spill] sm:$0xff] %v4243_v32  ;;  %916 = vmatpush.msra.mxu1 %v4224_v29  ;;  %974 = vmatpush.msra.mxu3 %v4236_v31  ;;  %v4345_v48 = vld [vmem:[%s7514_s7 + $0x30] sm:$0xff]  ;;  %v4357_v50 = vld [vmem:[%s7514_s7 + $0x38] sm:$0xff]  ;;  %v4369_v52 = vld [vmem:[%s7514_s7 + $0x20] sm:$0xff] }
  0x1d   : > { %7627 = vst [vmem:[#allocation20_spill] sm:$0xff] %v4248_v33  ;;  %888 = vmatpush.msra.mxu0 %v4243_v32  ;;  %946 = vmatpush.msra.mxu2 %v4255_v34  ;;  %v4350_v49 = vld [vmem:[%s7514_s7 + $0x130] sm:$0xff]  ;;  %v4362_v51 = vld [vmem:[%s7514_s7 + $0x138] sm:$0xff]  ;;  %v4374_v53 = vld [vmem:[%s7514_s7 + $0x120] sm:$0xff] }
  0x1e   : > { %7628 = vst [vmem:[#allocation21_spill] sm:$0xff] %v4267_v36  ;;  %917 = vmatpush.msra.mxu1 %v4248_v33  ;;  %975 = vmatpush.msra.mxu3 %v4260_v35  ;;  %v4384_v54 = vld [vmem:[%s7514_s7 + $0x28] sm:$0xff]  ;;  %v4396_v56 = vld [vmem:[%s7514_s7 + $0x10] sm:$0xff]  ;;  %v4408_v58 = vld [vmem:[%s7514_s7 + $0x18] sm:$0xff] }
  0x1f   : > { %7629 = vst [vmem:[#allocation22_spill] sm:$0xff] %v4272_v37  ;;  %889 = vmatpush.msra.mxu0 %v4267_v36  ;;  %947 = vmatpush.msra.mxu2 %v4280_v38  ;;  %v4389_v55 = vld [vmem:[%s7514_s7 + $0x128] sm:$0xff]  ;;  %v4401_v57 = vld [vmem:[%s7514_s7 + $0x110] sm:$0xff]  ;;  %v4413_v59 = vld [vmem:[%s7514_s7 + $0x118] sm:$0xff] }
  0x20   : > { %7630 = vst [vmem:[#allocation23_spill] sm:$0xff] %v4292_v40  ;;  %918 = vmatpush.msra.mxu1 %v4272_v37  ;;  %976 = vmatpush.msra.mxu3 %v4285_v39  ;;  %v4426_v60 = vld [vmem:[%s7514_s7] sm:$0xff]  ;;  %v4438_v62 = vld [vmem:[%s7514_s7 + $0x8] sm:$0xff] }
  0x21   : > { %7631 = vst [vmem:[#allocation24_spill] sm:$0xff] %v4304_v42  ;;  %890 = vmatpush.msra.mxu0 %v4292_v40  ;;  %948 = vmatpush.msra.mxu2 %v4304_v42  ;;  %v4431_v61 = vld [vmem:[%s7514_s7 + $0x100] sm:$0xff]  ;;  %v4443_v63 = vld [vmem:[%s7514_s7 + $0x108] sm:$0xff]  ;;  %v4575_v42 = vld [vmem:[%s7513_s6 + $0x78] sm:$0xff] }
  0x22   : > { %7632 = vst [vmem:[#allocation25_spill] sm:$0xff] %v4309_v43  ;;  %919 = vmatpush.msra.mxu1 %v4297_v41  ;;  %977 = vmatpush.msra.mxu3 %v4309_v43  ;;  %v4570_v43 = vld [vmem:[%s7513_s6 + $0x70] sm:$0xff] }
  0x23   : > { %7633 = vst [vmem:[#allocation26_spill] sm:$0xff] %v4316_v44  ;;  %891 = vmatpush.msra.mxu0 %v4316_v44  ;;  %949 = vmatpush.msra.mxu2 %v4333_v46 }
  0x24   : > { %7634 = vst [vmem:[#allocation27_spill] sm:$0xff] %v4321_v45  ;;  %920 = vmatpush.msra.mxu1 %v4321_v45  ;;  %978 = vmatpush.msra.mxu3 %v4338_v47 }
  0x25   : > { %7635 = vst [vmem:[#allocation28_spill] sm:$0xff] %v4333_v46  ;;  %892 = vmatpush.msra.mxu0 %v4345_v48  ;;  %950 = vmatpush.msra.mxu2 %v4357_v50  ;;  %v4517_v46 = vld [vmem:[%s7513_s6 + $0xb8] sm:$0xff] }
  0x26   : > { %7636 = vst [vmem:[#allocation29_spill] sm:$0xff] %v4338_v47  ;;  %921 = vmatpush.msra.mxu1 %v4350_v49  ;;  %979 = vmatpush.msra.mxu3 %v4362_v51  ;;  %v4512_v47 = vld [vmem:[%s7513_s6 + $0xb0] sm:$0xff] }
  0x27   : > { %7637 = vst [vmem:[#allocation30_spill] sm:$0xff] %v4345_v48  ;;  %893 = vmatpush.msra.mxu0 %v4369_v52  ;;  %951 = vmatpush.msra.mxu2 %v4384_v54 }
  0x28   : > { %7638 = vst [vmem:[#allocation31_spill] sm:$0xff] %v4350_v49  ;;  %922 = vmatpush.msra.mxu1 %v4374_v53  ;;  %980 = vmatpush.msra.mxu3 %v4389_v55 }
  0x29   : > { %7639 = vst [vmem:[#allocation32_spill] sm:$0xff] %v4357_v50  ;;  %894 = vmatpush.msra.mxu0 %v4396_v56  ;;  %952 = vmatpush.msra.mxu2 %v4408_v58  ;;  %v4459_v50 = vld [vmem:[%s7513_s6 + $0xf8] sm:$0xff] }
  0x2a   : > { %7640 = vst [vmem:[#allocation33_spill] sm:$0xff] %v4362_v51  ;;  %923 = vmatpush.msra.mxu1 %v4401_v57  ;;  %981 = vmatpush.msra.mxu3 %v4413_v59  ;;  %v4454_v51 = vld [vmem:[%s7513_s6 + $0xf0] sm:$0xff] }
  0x2b   : > { %7641 = vst [vmem:[#allocation34_spill] sm:$0xff] %v4374_v53  ;;  %895 = vmatpush.msra.mxu0 %v4426_v60  ;;  %953 = vmatpush.msra.mxu2 %v4438_v62 }
  0x2c   : > { %7642 = vst [vmem:[#allocation35_spill] sm:$0xff] %v4384_v54  ;;  %v873_v54 = vld [vmem:[%s4419_s19 + $0x8] sm:$0xff]  ;;  %924 = vmatpush.msra.mxu1 %v4431_v61  ;;  %982 = vmatpush.msra.mxu3 %v4443_v63 }
  0x2d   : > { %7643 = vst [vmem:[#allocation36_spill] sm:$0xff] %v4389_v55  ;;  %v872_v55 = vld [vmem:[%s4419_s19] sm:$0xff]  ;;  %925 = vmatmul.f32.vlgmr.msra.gmra.mxu1 %v873_v54  ;;  %996 = vmatpush.msrb.mxu0 %v4454_v51 }
  0x2e   : > { %7644 = vst [vmem:[#allocation37_spill] sm:$0xff] %v4408_v58  ;;  %896 = vmatmul.f32.vlgmr.msra.gmra.mxu0 %v872_v55  ;;  %v4471_v58 = vld [vmem:[%s7513_s6 + $0xe8] sm:$0xff]  ;;  %1025 = vmatpush.msrb.mxu1 %v4459_v50 }
  0x2f   : > { %7645 = vst [vmem:[#allocation38_spill] sm:$0xff] %v4413_v59  ;;  %v4466_v59 = vld [vmem:[%s7513_s6 + $0xe0] sm:$0xff]  ;;  %1076 = vmatpush.msrb.mxu2 %v4055_v0  ;;  %1099 = vmatpush.msrb.mxu3 %v4060_v1  ;;  %v4499_v0 = vld [vmem:[%s7513_s6 + $0xc8] sm:$0xff] }
  0x30   : > { %7646 = vst [vmem:[#allocation39_spill] sm:$0xff] %v4438_v62  ;;  %v4485_v62 = vld [vmem:[%s7513_s6 + $0xd8] sm:$0xff]  ;;  %997 = vmatpush.msrb.mxu0 %v4466_v59  ;;  %1026 = vmatpush.msrb.mxu1 %v4471_v58  ;;  %v4494_v1 = vld [vmem:[%s7513_s6 + $0xc0] sm:$0xff] }
  0x31   : > { %7647 = vst [vmem:[#allocation40_spill] sm:$0xff] %v4443_v63  ;;  %v4480_v63 = vld [vmem:[%s7513_s6 + $0xd0] sm:$0xff]  ;;  %1077 = vmatpush.msrb.mxu2 %v4077_v4  ;;  %1100 = vmatpush.msrb.mxu3 %v4082_v5  ;;  %v875_v5 = vld [vmem:[%s4419_s19 + $0x18] sm:$0xff] }
  0x32   : > { %998 = vmatpush.msrb.mxu0 %v4480_v63  ;;  %1027 = vmatpush.msrb.mxu1 %v4485_v62  ;;  %v874_v4 = vld [vmem:[%s4419_s19 + $0x10] sm:$0xff]  ;;  %7651 = vst [vmem:[#allocation44_spill] sm:$0xff] %v4570_v43 }
  0x33   : > { %1078 = vmatpush.msrb.mxu2 %v4099_v8  ;;  %1101 = vmatpush.msrb.mxu3 %v4106_v9  ;;  %v4524_v9 = vld [vmem:[%s7513_s6 + $0xa0] sm:$0xff]  ;;  %v4529_v8 = vld [vmem:[%s7513_s6 + $0xa8] sm:$0xff]  ;;  %7652 = vst [vmem:[#allocation45_spill] sm:$0xff] %v4575_v42 }
  0x34   : > { %999 = vmatpush.msrb.mxu0 %v4494_v1  ;;  %1028 = vmatpush.msrb.mxu1 %v4499_v0 }
  0x35   : > { %1079 = vmatpush.msrb.mxu2 %v4123_v12  ;;  %1102 = vmatpush.msrb.mxu3 %v4128_v13  ;;  %v4538_v13 = vld [vmem:[%s7513_s6 + $0x90] sm:$0xff]  ;;  %v4543_v12 = vld [vmem:[%s7513_s6 + $0x98] sm:$0xff] }
  0x36   : > { %899 = vmatmul.f32.gmra.mxu0 %v874_v4  ;;  %928 = vmatmul.f32.gmra.mxu1 %v875_v5  ;;  %7648 = vst [vmem:[#allocation41_spill] sm:$0xff] %v4543_v12 }
  0x37   : > { %1000 = vmatpush.msrb.mxu0 %v4512_v47  ;;  %1029 = vmatpush.msrb.mxu1 %v4517_v46 }
  0x38   : > { %1080 = vmatpush.msrb.mxu2 %v4147_v16  ;;  %1103 = vmatpush.msrb.mxu3 %v4152_v17  ;;  %v4554_v17 = vld [vmem:[%s7513_s6 + $0x80] sm:$0xff]  ;;  %v4559_v16 = vld [vmem:[%s7513_s6 + $0x88] sm:$0xff] }
  0x39   : > { %1001 = vmatpush.msrb.mxu0 %v4524_v9  ;;  %1030 = vmatpush.msrb.mxu1 %v4529_v8  ;;  %7649 = vst [vmem:[#allocation42_spill] sm:$0xff] %v4554_v17 }
  0x3a   : > { %1081 = vmatpush.msrb.mxu2 %v4171_v20  ;;  %1104 = vmatpush.msrb.mxu3 %v4176_v21  ;;  %7650 = vst [vmem:[#allocation43_spill] sm:$0xff] %v4559_v16  ;;  %v876_v21 = vld [vmem:[%s4419_s19 + $0x20] sm:$0xff]  ;;  %v877_v20 = vld [vmem:[%s4419_s19 + $0x28] sm:$0xff] }
  0x3b   : > { %1002 = vmatpush.msrb.mxu0 %v4538_v13  ;;  %1031 = vmatpush.msrb.mxu1 %v4543_v12 }
  0x3c   : > { %1082 = vmatpush.msrb.mxu2 %v4195_v24  ;;  %1105 = vmatpush.msrb.mxu3 %v4200_v25  ;;  %v4628_v25 = vld [vmem:[%s7513_s6 + $0x30] sm:$0xff] }
  0x3d   : > { %954 = vmatmul.f32.vlgmr.msra.gmra.mxu2 %v872_v55  ;;  %983 = vmatmul.f32.vlgmr.msra.gmra.mxu3 %v873_v54  ;;  %v4582_v54 = vld [vmem:[%s7513_s6 + $0x60] sm:$0xff]  ;;  %v4587_v55 = vld [vmem:[%s7513_s6 + $0x68] sm:$0xff]  ;;  %7659 = vst [vmem:[#allocation52_spill] sm:$0xff] %v4628_v25 }
  0x3e   : > { %1003 = vmatpush.msrb.mxu0 %v4554_v17  ;;  %1032 = vmatpush.msrb.mxu1 %v4559_v16  ;;  %7653 = vst [vmem:[#allocation46_spill] sm:$0xff] %v4582_v54 }
  0x3f   : > { %1083 = vmatpush.msrb.mxu2 %v4219_v28  ;;  %1106 = vmatpush.msrb.mxu3 %v4224_v29  ;;  %7654 = vst [vmem:[#allocation47_spill] sm:$0xff] %v4587_v55  ;;  %v4596_v29 = vld [vmem:[%s7513_s6 + $0x50] sm:$0xff]  ;;  %v4601_v28 = vld [vmem:[%s7513_s6 + $0x58] sm:$0xff] }
  0x40   : > { %902 = vmatmul.f32.gmra.mxu0 %v876_v21  ;;  %931 = vmatmul.f32.gmra.mxu1 %v877_v20  ;;  %7655 = vst [vmem:[#allocation48_spill] sm:$0xff] %v4596_v29 }
  0x41   : > { %1004 = vmatpush.msrb.mxu0 %v4570_v43  ;;  %1033 = vmatpush.msrb.mxu1 %v4575_v42  ;;  %7656 = vst [vmem:[#allocation49_spill] sm:$0xff] %v4601_v28 }
  0x42   : > { %1084 = vmatpush.msrb.mxu2 %v4243_v32  ;;  %1107 = vmatpush.msrb.mxu3 %v4248_v33  ;;  %v4612_v33 = vld [vmem:[%s7513_s6 + $0x40] sm:$0xff]  ;;  %v4617_v32 = vld [vmem:[%s7513_s6 + $0x48] sm:$0xff] }
  0x43   : > { %1005 = vmatpush.msrb.mxu0 %v4582_v54  ;;  %1034 = vmatpush.msrb.mxu1 %v4587_v55  ;;  %7657 = vst [vmem:[#allocation50_spill] sm:$0xff] %v4612_v33 }
  0x44   : > { %1085 = vmatpush.msrb.mxu2 %v4267_v36  ;;  %1108 = vmatpush.msrb.mxu3 %v4272_v37  ;;  %7658 = vst [vmem:[#allocation51_spill] sm:$0xff] %v4617_v32  ;;  %v878_v37 = vld [vmem:[%s4419_s19 + $0x30] sm:$0xff]  ;;  %v879_v36 = vld [vmem:[%s4419_s19 + $0x38] sm:$0xff]  ;;  %s682_s19 = scalar_lea.vmem %s7508_s1, %s3857_s22  ;;  %s3859_s22 = sadd.s32 48, %s4664_s21 }
  0x45   : > { %1006 = vmatpush.msrb.mxu0 %v4596_v29  ;;  %1035 = vmatpush.msrb.mxu1 %v4601_v28 }
  0x46   : > { %1086 = vmatpush.msrb.mxu2 %v4292_v40  ;;  %1109 = vmatpush.msrb.mxu3 %v4297_v41  ;;  %v4633_v40 = vld [vmem:[%s7513_s6 + $0x38] sm:$0xff] }
  0x47   : > { %957 = vmatmul.f32.gmra.mxu2 %v874_v4  ;;  %986 = vmatmul.f32.gmra.mxu3 %v875_v5  ;;  %7660 = vst [vmem:[#allocation53_spill] sm:$0xff] %v4633_v40  ;;  %v4640_v4 = vld [vmem:[%s7513_s6 + $0x20] sm:$0xff]  ;;  %v4645_v5 = vld [vmem:[%s7513_s6 + $0x28] sm:$0xff] }
  0x48   : > { %1007 = vmatpush.msrb.mxu0 %v4612_v33  ;;  %1036 = vmatpush.msrb.mxu1 %v4617_v32  ;;  %7661 = vst [vmem:[#allocation54_spill] sm:$0xff] %v4640_v4 }
  0x49   : > { %1087 = vmatpush.msrb.mxu2 %v4316_v44  ;;  %1110 = vmatpush.msrb.mxu3 %v4321_v45  ;;  %7662 = vst [vmem:[#allocation55_spill] sm:$0xff] %v4645_v5  ;;  %v4654_v45 = vld [vmem:[%s7513_s6 + $0x10] sm:$0xff]  ;;  %v4659_v44 = vld [vmem:[%s7513_s6 + $0x18] sm:$0xff] }
  0x4a   : > { %905 = vmatmul.f32.gmra.mxu0 %v878_v37  ;;  %934 = vmatmul.f32.gmra.mxu1 %v879_v36  ;;  %7663 = vst [vmem:[#allocation56_spill] sm:$0xff] %v4654_v45 }
  0x4b   : > { %1008 = vmatpush.msrb.mxu0 %v4628_v25  ;;  %1037 = vmatpush.msrb.mxu1 %v4633_v40  ;;  %7664 = vst [vmem:[#allocation57_spill] sm:$0xff] %v4659_v44 }
  0x4c   : > { %1088 = vmatpush.msrb.mxu2 %v4345_v48  ;;  %1111 = vmatpush.msrb.mxu3 %v4350_v49  ;;  %v4673_v49 = vld [vmem:[%s7513_s6] sm:$0xff]  ;;  %v4678_v48 = vld [vmem:[%s7513_s6 + $0x8] sm:$0xff] }
  0x4d   : > { %1009 = vmatpush.msrb.mxu0 %v4640_v4  ;;  %1038 = vmatpush.msrb.mxu1 %v4645_v5  ;;  %7665 = vst [vmem:[#allocation58_spill] sm:$0xff] %v4673_v49 }
  0x4e   : > { %1089 = vmatpush.msrb.mxu2 %v4369_v52  ;;  %1112 = vmatpush.msrb.mxu3 %v4374_v53  ;;  %7666 = vst [vmem:[#allocation59_spill] sm:$0xff] %v4678_v48  ;;  %v868_v53 = vld [vmem:[%s4686_s14] sm:$0xff] }
  0x4f   : > { %1010 = vmatpush.msrb.mxu0 %v4654_v45  ;;  %1039 = vmatpush.msrb.mxu1 %v4659_v44 }
  0x50   : > { %1090 = vmatpush.msrb.mxu2 %v4396_v56  ;;  %1113 = vmatpush.msrb.mxu3 %v4401_v57 }
  0x51   : > { %960 = vmatmul.f32.gmra.mxu2 %v876_v21  ;;  %989 = vmatmul.f32.gmra.mxu3 %v877_v20  ;;  %v869_v20 = vld [vmem:[%s4686_s14 + $0x8] sm:$0xff]  ;;  %v1072_v21 = vld [vmem:[%s4720_s20] sm:$0xff] }
  0x52   : > { %1011 = vmatpush.msrb.mxu0 %v4673_v49  ;;  %1040 = vmatpush.msrb.mxu1 %v4678_v48 }
  0x53   : > { %1091 = vmatpush.msrb.mxu2 %v4426_v60  ;;  %1114 = vmatpush.msrb.mxu3 %v4431_v61 }
  0x54   : > { %1122 = vmatpush.msra.mxu0 %v4065_v2  ;;  %1145 = vmatpush.msra.mxu1 %v4072_v3 }
  0x55   : > { %1168 = vmatpush.msra.mxu2 %v4454_v51  ;;  %1191 = vmatpush.msra.mxu3 %v4459_v50 }
  0x56   : > { %1012 = vmatmul.f32.vlgmr.msrb.gmra.mxu0 %v868_v53  ;;  %1041 = vmatmul.f32.vlgmr.msrb.gmra.mxu1 %v868_v53  ;;  %v7667_v53 = vld [vmem:[#allocation24_spill] sm:$0xff] }
  0x57   : > { %1123 = vmatpush.msra.mxu0 %v4089_v6  ;;  %1146 = vmatpush.msra.mxu1 %v4094_v7 }
  0x58   : > { %1169 = vmatpush.msra.mxu2 %v4466_v59  ;;  %1192 = vmatpush.msra.mxu3 %v4471_v58 }
  0x59   : > { %1124 = vmatpush.msra.mxu0 %v4111_v10  ;;  %1147 = vmatpush.msra.mxu1 %v4116_v11 }
  0x5a   : > { %1170 = vmatpush.msra.mxu2 %v4480_v63  ;;  %1193 = vmatpush.msra.mxu3 %v4485_v62 }
  0x5b   : > { %1125 = vmatpush.msra.mxu0 %v4135_v14  ;;  %1148 = vmatpush.msra.mxu1 %v4140_v15 }
  0x5c   : > { %1171 = vmatpush.msra.mxu2 %v4494_v1  ;;  %1194 = vmatpush.msra.mxu3 %v4499_v0 }
  0x5d   : > { %963 = vmatmul.f32.gmra.mxu2 %v878_v37  ;;  %992 = vmatmul.f32.gmra.mxu3 %v879_v36  ;;  %v1073_v36 = vld [vmem:[%s4720_s20 + $0x8] sm:$0xff]  ;;  %v870_v37 = vld [vmem:[%s4686_s14 + $0x10] sm:$0xff] }
  0x5e   : > { %1126 = vmatpush.msra.mxu0 %v4159_v18  ;;  %1149 = vmatpush.msra.mxu1 %v4164_v19 }
  0x5f   : > { %1172 = vmatpush.msra.mxu2 %v4512_v47  ;;  %1195 = vmatpush.msra.mxu3 %v4517_v46 }
  0x60   : > { %1015 = vmatmul.f32.gmra.mxu0 %v869_v20  ;;  %1044 = vmatmul.f32.gmra.mxu1 %v869_v20  ;;  %v7668_v20 = vld [vmem:[#allocation25_spill] sm:$0xff] }
  0x61   : > { %1127 = vmatpush.msra.mxu0 %v4183_v22  ;;  %1150 = vmatpush.msra.mxu1 %v4188_v23 }
  0x62   : > { %1173 = vmatpush.msra.mxu2 %v4524_v9  ;;  %1196 = vmatpush.msra.mxu3 %v4529_v8 }
  0x63   : > { %1128 = vmatpush.msra.mxu0 %v4207_v26  ;;  %1151 = vmatpush.msra.mxu1 %v4212_v27 }
  0x64   : > { %1174 = vmatpush.msra.mxu2 %v4538_v13  ;;  %1197 = vmatpush.msra.mxu3 %v4543_v12  ;;  %v7683_v12 = vld [vmem:[#allocation8_spill] sm:$0xff] }
  0x65   : > { %1129 = vmatpush.msra.mxu0 %v4231_v30  ;;  %1152 = vmatpush.msra.mxu1 %v4236_v31 }
  0x66   : > { %1175 = vmatpush.msra.mxu2 %v4554_v17  ;;  %1198 = vmatpush.msra.mxu3 %v4559_v16  ;;  %v7670_v16 = vld [vmem:[#allocation29_spill] sm:$0xff] }
  0x67   : > { %1092 = vmatmul.f32.vlgmr.msrb.gmra.mxu2 %v1072_v21  ;;  %1115 = vmatmul.f32.vlgmr.msrb.gmra.mxu3 %v1073_v36  ;;  %v7672_v17 = vld [vmem:[#allocation33_spill] sm:$0xff] }
  0x68   : > { %1130 = vmatpush.msra.mxu0 %v4255_v34  ;;  %1153 = vmatpush.msra.mxu1 %v4260_v35 }
  0x69   : > { %1176 = vmatpush.msra.mxu2 %v4570_v43  ;;  %1199 = vmatpush.msra.mxu3 %v4575_v42  ;;  %v1074_v42 = vld [vmem:[%s4720_s20 + $0x10] sm:$0xff] }
  0x6a   : > { %1018 = vmatmul.f32.gmra.mxu0 %v870_v37  ;;  %1047 = vmatmul.f32.gmra.mxu1 %v870_v37  ;;  %v1075_v37 = vld [vmem:[%s4720_s20 + $0x18] sm:$0xff]  ;;  %v7669_v43 = vld [vmem:[#allocation28_spill] sm:$0xff]  ;;  %s4908_s20 = scalar_lea.vmem %s7509_s2, %s3859_s22 }
  0x6b   : > { %1131 = vmatpush.msra.mxu0 %v4280_v38  ;;  %1154 = vmatpush.msra.mxu1 %v4285_v39 }
  0x6c   : > { %1177 = vmatpush.msra.mxu2 %v4582_v54  ;;  %1200 = vmatpush.msra.mxu3 %v4587_v55  ;;  %v871_v55 = vld [vmem:[%s4686_s14 + $0x18] sm:$0xff]  ;;  %v7671_v54 = vld [vmem:[#allocation32_spill] sm:$0xff]  ;;  %s7145_s14 = scalar_lea.vmem %s7518_s11, %s4664_s21 }
  0x6d   : > { %1132 = vmatpush.msra.mxu0 %v7667_v53  ;;  %1155 = vmatpush.msra.mxu1 %v7668_v20 }
  0x6e   : > { %1178 = vmatpush.msra.mxu2 %v4596_v29  ;;  %1201 = vmatpush.msra.mxu3 %v4601_v28  ;;  %v7673_v28 = vld [vmem:[#allocation35_spill] sm:$0xff]  ;;  %v7674_v29 = vld [vmem:[#allocation36_spill] sm:$0xff] }
  0x6f   : > { %1133 = vmatpush.msra.mxu0 %v7669_v43  ;;  %1156 = vmatpush.msra.mxu1 %v7670_v16 }
  0x70   : > { %1179 = vmatpush.msra.mxu2 %v4612_v33  ;;  %1202 = vmatpush.msra.mxu3 %v4617_v32  ;;  %v7675_v32 = vld [vmem:[#allocation37_spill] sm:$0xff]  ;;  %v7676_v33 = vld [vmem:[#allocation38_spill] sm:$0xff] }
  0x71   : > { %1095 = vmatmul.f32.gmra.mxu2 %v1074_v42  ;;  %1118 = vmatmul.f32.gmra.mxu3 %v1075_v37 }
  0x72   : > { %1134 = vmatpush.msra.mxu0 %v7671_v54  ;;  %1157 = vmatpush.msra.mxu1 %v7672_v17 }
  0x73   : > { %1180 = vmatpush.msra.mxu2 %v4628_v25  ;;  %1203 = vmatpush.msra.mxu3 %v4633_v40  ;;  %v7677_v40 = vld [vmem:[#allocation39_spill] sm:$0xff]  ;;  %v7678_v25 = vld [vmem:[#allocation40_spill] sm:$0xff] }
  0x74   : > { %1021 = vmatmul.f32.gmra.mxu0 %v871_v55  ;;  %1050 = vmatmul.f32.gmra.mxu1 %v871_v55  ;;  %v1070_v55 = vld [vmem:[%s682_s19] sm:$0xff] }
  0x75   : > { %1135 = vmatpush.msra.mxu0 %v7673_v28  ;;  %1158 = vmatpush.msra.mxu1 %v7674_v29 }
  0x76   : > { %1181 = vmatpush.msra.mxu2 %v4640_v4  ;;  %1204 = vmatpush.msra.mxu3 %v4645_v5  ;;  %v7679_v5 = vld [vmem:[#allocation4_spill] sm:$0xff]  ;;  %v7680_v4 = vld [vmem:[#allocation5_spill] sm:$0xff] }
  0x77   : > { %1136 = vmatpush.msra.mxu0 %v7675_v32  ;;  %1159 = vmatpush.msra.mxu1 %v7676_v33 }
  0x78   : > { %1182 = vmatpush.msra.mxu2 %v4654_v45  ;;  %1205 = vmatpush.msra.mxu3 %v4659_v44  ;;  %v7681_v45 = vld [vmem:[#allocation6_spill] sm:$0xff]  ;;  %v7682_v44 = vld [vmem:[#allocation7_spill] sm:$0xff] }
  0x79   : > { %1137 = vmatpush.msra.mxu0 %v7677_v40  ;;  %1160 = vmatpush.msra.mxu1 %v7678_v25 }
  0x7a   : > { %1183 = vmatpush.msra.mxu2 %v4673_v49  ;;  %1206 = vmatpush.msra.mxu3 %v4678_v48  ;;  %v7684_v49 = vld [vmem:[#allocation9_spill] sm:$0xff]  ;;  %v1071_v48 = vld [vmem:[%s682_s19 + $0x8] sm:$0xff] }
  0x7b   : > { %1184 = vmatmul.f32.vlgmr.msra.gmra.mxu2 %v1070_v55  ;;  %1207 = vmatmul.f32.vlgmr.msra.gmra.mxu3 %v1070_v55  ;;  %v7722_v55 = vld [vmem:[#allocation59_spill] sm:$0xff] }
  0x7c   : > { %1228 = vmatpush.msrb.mxu0 %v7679_v5  ;;  %1251 = vmatpush.msrb.mxu1 %v7680_v4  ;;  %v7685_v4 = vld [vmem:[#allocation10_spill] sm:$0xff]  ;;  %v7686_v5 = vld [vmem:[#allocation11_spill] sm:$0xff] }
  0x7d   : > { %1138 = vmatmul.f32.vlgmr.msra.gmra.mxu0 %v1072_v21  ;;  %1161 = vmatmul.f32.vlgmr.msra.gmra.mxu1 %v1073_v36  ;;  %v7720_v21 = vld [vmem:[#allocation57_spill] sm:$0xff]  ;;  %v1222_v36 = vld [vmem:[%s4908_s20] sm:$0xff] }
  0x7e   : > { %1229 = vmatpush.msrb.mxu0 %v7681_v45  ;;  %1252 = vmatpush.msrb.mxu1 %v7682_v44  ;;  %v7687_v44 = vld [vmem:[#allocation12_spill] sm:$0xff]  ;;  %v7693_v45 = vld [vmem:[#allocation18_spill] sm:$0xff] }
  0x7f   : > { %1274 = vmatpush.msrb.mxu2 %v4065_v2  ;;  %1297 = vmatpush.msrb.mxu3 %v4072_v3  ;;  %v7688_v2 = vld [vmem:[#allocation13_spill] sm:$0xff]  ;;  %v7689_v3 = vld [vmem:[#allocation14_spill] sm:$0xff] }
  0x80   : > { %1230 = vmatpush.msrb.mxu0 %v7683_v12  ;;  %1253 = vmatpush.msrb.mxu1 %v7684_v49  ;;  %v7690_v12 = vld [vmem:[#allocation15_spill] sm:$0xff]  ;;  %v1888_v49 = vld [vmem:[%s7516_s9 + $0x1b0] sm:$0xff] }
  0x81   : > { %1275 = vmatpush.msrb.mxu2 %v4089_v6  ;;  %1298 = vmatpush.msrb.mxu3 %v4094_v7  ;;  %v7691_v6 = vld [vmem:[#allocation16_spill] sm:$0xff]  ;;  %v7692_v7 = vld [vmem:[#allocation17_spill] sm:$0xff] }
  0x82   : > { %1231 = vmatpush.msrb.mxu0 %v7685_v4  ;;  %1254 = vmatpush.msrb.mxu1 %v7686_v5  ;;  %v1850_v4 = vld [vmem:[%s7516_s9 + $0x80] sm:$0xff] }
  0x83   : > { %1187 = vmatmul.f32.gmra.mxu2 %v1071_v48  ;;  %1210 = vmatmul.f32.gmra.mxu3 %v1071_v48  ;;  %v1856_v48 = vld [vmem:[%s7516_s9 + $0xb0] sm:$0xff]  ;;  %v1882_v5 = vld [vmem:[%s7516_s9 + $0x180] sm:$0xff] }
  0x84   : > { %1232 = vmatpush.msrb.mxu0 %v7687_v44  ;;  %1255 = vmatpush.msrb.mxu1 %v7688_v2  ;;  %v1926_v44 = vld [vmem:[%s7516_s9 + $0x2e0] sm:$0xff] }
  0x85   : > { %1276 = vmatpush.msrb.mxu2 %v4111_v10  ;;  %1299 = vmatpush.msrb.mxu3 %v4116_v11  ;;  %v7694_v10 = vld [vmem:[#allocation19_spill] sm:$0xff]  ;;  %v7695_v11 = vld [vmem:[#allocation20_spill] sm:$0xff]  ;;  %v1958_v2 = vld [vmem:[%s7516_s9 + $0x3e0] sm:$0xff] }
  0x86   : > { %1233 = vmatpush.msrb.mxu0 %v7689_v3  ;;  %1256 = vmatpush.msrb.mxu1 %v7690_v12  ;;  %v1848_v3 = vld [vmem:[%s7516_s9 + $0x70] sm:$0xff] }
  0x87   : > { %1277 = vmatpush.msrb.mxu2 %v4135_v14  ;;  %1300 = vmatpush.msrb.mxu3 %v4140_v15  ;;  %v7696_v14 = vld [vmem:[#allocation21_spill] sm:$0xff]  ;;  %v7697_v15 = vld [vmem:[#allocation22_spill] sm:$0xff]  ;;  %v1880_v12 = vld [vmem:[%s7516_s9 + $0x170] sm:$0xff] }
  0x88   : > { %1234 = vmatpush.msrb.mxu0 %v4195_v24  ;;  %1257 = vmatpush.msrb.mxu1 %v7691_v6  ;;  %v7702_v24 = vld [vmem:[#allocation31_spill] sm:$0xff]  ;;  %v1924_v6 = vld [vmem:[%s7516_s9 + $0x2d0] sm:$0xff] }
  0x89   : > { %1141 = vmatmul.f32.gmra.mxu0 %v1074_v42  ;;  %1164 = vmatmul.f32.gmra.mxu1 %v1075_v37  ;;  %v7711_v42 = vld [vmem:[#allocation48_spill] sm:$0xff]  ;;  %v7721_v37 = vld [vmem:[#allocation58_spill] sm:$0xff] }
  0x8a   : > { %1235 = vmatpush.msrb.mxu0 %v7692_v7  ;;  %1258 = vmatpush.msrb.mxu1 %v7693_v45  ;;  %v1956_v7 = vld [vmem:[%s7516_s9 + $0x3d0] sm:$0xff]  ;;  %v1846_v45 = vld [vmem:[%s7516_s9 + $0x60] sm:$0xff] }
  0x8b   : > { %1278 = vmatpush.msrb.mxu2 %v4159_v18  ;;  %1301 = vmatpush.msrb.mxu3 %v4164_v19  ;;  %v7698_v18 = vld [vmem:[#allocation23_spill] sm:$0xff]  ;;  %v7699_v19 = vld [vmem:[#allocation26_spill] sm:$0xff] }
  0x8c   : > { %1236 = vmatpush.msrb.mxu0 %v7694_v10  ;;  %1259 = vmatpush.msrb.mxu1 %v7695_v11  ;;  %v1878_v10 = vld [vmem:[%s7516_s9 + $0x160] sm:$0xff] }
  0x8d   : > { %1279 = vmatpush.msrb.mxu2 %v4183_v22  ;;  %1302 = vmatpush.msrb.mxu3 %v4188_v23  ;;  %v7700_v22 = vld [vmem:[#allocation27_spill] sm:$0xff]  ;;  %v7701_v23 = vld [vmem:[#allocation30_spill] sm:$0xff] }
  0x8e   : > { %1237 = vmatpush.msrb.mxu0 %v7696_v14  ;;  %1260 = vmatpush.msrb.mxu1 %v7697_v15  ;;  %v1922_v11 = vld [vmem:[%s7516_s9 + $0x2c0] sm:$0xff]  ;;  %v1223_v15 = vld [vmem:[%s4908_s20 + $0x8] sm:$0xff] }
  0x8f   : > { %1280 = vmatpush.msrb.mxu2 %v4207_v26  ;;  %1303 = vmatpush.msrb.mxu3 %v4212_v27  ;;  %v7703_v26 = vld [vmem:[#allocation34_spill] sm:$0xff] }
  0x90   : > { %1238 = vmatpush.msrb.mxu0 %v7698_v18  ;;  %1261 = vmatpush.msrb.mxu1 %v4297_v41  ;;  %v1224_v27 = vld [vmem:[%s737_s15] sm:$0xff] }
  0x91   : > { %1281 = vmatpush.msrb.mxu2 %v4231_v30  ;;  %1304 = vmatpush.msrb.mxu3 %v4236_v31  ;;  %v1225_v30 = vld [vmem:[%s737_s15 + $0x8] sm:$0xff]  ;;  %v1890_v41 = vld [vmem:[%s7516_s9 + $0x1c0] sm:$0xff] }
  0x92   : > { %1239 = vmatpush.msrb.mxu0 %v7699_v19  ;;  %1262 = vmatpush.msrb.mxu1 %v7700_v22  ;;  %v1954_v14 = vld [vmem:[%s7516_s9 + $0x3c0] sm:$0xff] }
  0x93   : > { %1282 = vmatpush.msrb.mxu2 %v4255_v34  ;;  %1305 = vmatpush.msrb.mxu3 %v4260_v35  ;;  %v1860_v34 = vld [vmem:[%s7516_s9 + $0xd0] sm:$0xff] }
  0x94   : > { %1240 = vmatpush.msrb.mxu0 %v7701_v23  ;;  %1263 = vmatpush.msrb.mxu1 %v7702_v24  ;;  %v1892_v35 = vld [vmem:[%s7516_s9 + $0x1d0] sm:$0xff] }
  0x95   : > { %1283 = vmatpush.msrb.mxu2 %v4280_v38  ;;  %1306 = vmatpush.msrb.mxu3 %v4285_v39  ;;  %v7709_v38 = vld [vmem:[#allocation46_spill] sm:$0xff]  ;;  %v7710_v39 = vld [vmem:[#allocation47_spill] sm:$0xff]  ;;  %v1920_v24 = vld [vmem:[%s7516_s9 + $0x2b0] sm:$0xff] }
  0x96   : > { %1241 = vmatpush.msrb.mxu0 %v4369_v52  ;;  %1264 = vmatpush.msrb.mxu1 %v7703_v26  ;;  %v1844_v26 = vld [vmem:[%s7516_s9 + $0x50] sm:$0xff] }
  0x97   : > { %1284 = vmatpush.msrb.mxu2 %v7667_v53  ;;  %1307 = vmatpush.msrb.mxu3 %v7668_v20  ;;  %v1928_v53 = vld [vmem:[%s7516_s9 + $0x2f0] sm:$0xff] }
  0x98   : > { %1242 = vmatpush.msrb.mxu0 %v4396_v56  ;;  %1265 = vmatpush.msrb.mxu1 %v4401_v57  ;;  %v1854_v57 = vld [vmem:[%s7516_s9 + $0xa0] sm:$0xff]  ;;  %v1960_v20 = vld [vmem:[%s7516_s9 + $0x3f0] sm:$0xff] }
  0x99   : > { %1285 = vmatpush.msrb.mxu2 %v7669_v43  ;;  %1308 = vmatpush.msrb.mxu3 %v7670_v16  ;;  %v1226_v16 = vld [vmem:[%s737_s15 + $0x10] sm:$0xff]  ;;  %v7712_v43 = vld [vmem:[#allocation49_spill] sm:$0xff] }
  0x9a   : > { %1243 = vmatpush.msrb.mxu0 %v4426_v60  ;;  %1266 = vmatpush.msrb.mxu1 %v4431_v61  ;;  %v7717_v60 = vld [vmem:[#allocation54_spill] sm:$0xff]  ;;  %v7718_v61 = vld [vmem:[#allocation55_spill] sm:$0xff] }
  0x9b   : > { %1244 = vmatmul.f32.vlgmr.msrb.gmra.mxu0 %v1224_v27  ;;  %1267 = vmatmul.f32.vlgmr.msrb.gmra.mxu1 %v1225_v30 }
  0x9c   : > { %1320 = vmatpush.msra.mxu0 %v4454_v51  ;;  %1343 = vmatpush.msra.mxu1 %v4459_v50  ;;  %v7715_v50 = vld [vmem:[#allocation52_spill] sm:$0xff]  ;;  %v7716_v51 = vld [vmem:[#allocation53_spill] sm:$0xff] }
  0x9d   : > { %1286 = vmatpush.msrb.mxu2 %v7671_v54  ;;  %1309 = vmatpush.msrb.mxu3 %v7672_v17  ;;  %v1227_v17 = vld [vmem:[%s737_s15 + $0x18] sm:$0xff]  ;;  %v7719_v54 = vld [vmem:[#allocation56_spill] sm:$0xff] }
  0x9e   : > { %1321 = vmatpush.msra.mxu0 %v4466_v59  ;;  %1344 = vmatpush.msra.mxu1 %v4471_v58  ;;  %v1886_v58 = vld [vmem:[%s7516_s9 + $0x1a0] sm:$0xff]  ;;  %v3961_v59 = vmov 0.0  }
  0x9f   : > { %1287 = vmatpush.msrb.mxu2 %v7673_v28  ;;  %1310 = vmatpush.msrb.mxu3 %v7674_v29  ;;  %v1896_v28 = vld [vmem:[%s7516_s9 + $0x1f0] sm:$0xff]  ;;  %1380 = vst [vmem:[#allocation2] sm:$0xff] %v3961_v59 }
  0xa0   : > { %1322 = vmatpush.msra.mxu0 %v4480_v63  ;;  %1345 = vmatpush.msra.mxu1 %v4485_v62  ;;  %v1852_v62 = vld [vmem:[%s7516_s9 + $0x90] sm:$0xff]  ;;  %1374 = vst [vmem:[#allocation2 + $0x68] sm:$0xff] %v3961_v59 }
  0xa1   : > { %1288 = vmatpush.msrb.mxu2 %v7675_v32  ;;  %1311 = vmatpush.msrb.mxu3 %v7676_v33  ;;  %v7707_v32 = vld [vmem:[#allocation44_spill] sm:$0xff]  ;;  %v7708_v33 = vld [vmem:[#allocation45_spill] sm:$0xff]  ;;  %1375 = vst [vmem:[#allocation2 + $0x60] sm:$0xff] %v3961_v59 }
  0xa2   : > { %1323 = vmatpush.msra.mxu0 %v4494_v1  ;;  %1346 = vmatpush.msra.mxu1 %v4499_v0  ;;  %v7704_v0 = vld [vmem:[#allocation41_spill] sm:$0xff]  ;;  %v1864_v1 = vld [vmem:[%s7516_s9 + $0xf0] sm:$0xff]  ;;  %1381 = vst [vmem:[#allocation2 + $0x38] sm:$0xff] %v3961_v59 }
  0xa3   : > { %1289 = vmatpush.msrb.mxu2 %v7677_v40  ;;  %1312 = vmatpush.msrb.mxu3 %v7678_v25  ;;  %v7705_v25 = vld [vmem:[#allocation42_spill] sm:$0xff]  ;;  %v1884_v63 = vld [vmem:[%s7516_s9 + $0x190] sm:$0xff]  ;;  %1384 = vst [vmem:[#allocation2 + $0x10] sm:$0xff] %v3961_v59 }
  0xa4   : > { %1324 = vmatpush.msra.mxu0 %v4512_v47  ;;  %1347 = vmatpush.msra.mxu1 %v4517_v46  ;;  %v1858_v40 = vld [vmem:[%s7516_s9 + $0xc0] sm:$0xff]  ;;  %v7714_v47 = vld [vmem:[#allocation51_spill] sm:$0xff]  ;;  %1385 = vst [vmem:[#allocation2 + $0x48] sm:$0xff] %v3961_v59 }
  0xa5   : > { %1247 = vmatmul.f32.gmra.mxu0 %v1226_v16  ;;  %1270 = vmatmul.f32.gmra.mxu1 %v1227_v17  ;;  %v7713_v46 = vld [vmem:[#allocation50_spill] sm:$0xff] }
  0xa6   : > { %1325 = vmatpush.msra.mxu0 %v4524_v9  ;;  %1348 = vmatpush.msra.mxu1 %v4529_v8  ;;  %v7706_v9 = vld [vmem:[#allocation43_spill] sm:$0xff]  ;;  %v1862_v8 = vld [vmem:[%s7516_s9 + $0xe0] sm:$0xff] }
  0xa7   : > { %1290 = vmatmul.f32.vlgmr.msrb.gmra.mxu2 %v1224_v27  ;;  %1313 = vmatmul.f32.vlgmr.msrb.gmra.mxu3 %v1225_v30  ;;  %v1876_v27 = vld [vmem:[%s7516_s9 + $0x150] sm:$0xff] }
  0xa8   : > { %1326 = vmatpush.msra.mxu0 %v4538_v13  ;;  %1349 = vmatpush.msra.mxu1 %v7704_v0  ;;  %v1894_v13 = vld [vmem:[%s7516_s9 + $0x1e0] sm:$0xff]  ;;  %v1952_v30 = vld [vmem:[%s7516_s9 + $0x3b0] sm:$0xff] }
  0xa9   : > { %2416 = vmatpush.msra.mxu2 %v1864_v1  ;;  %2445 = vmatpush.msra.mxu3 %v1896_v28  ;;  %v1874_v0 = vld [vmem:[%s7516_s9 + $0x140] sm:$0xff]  ;;  %v1916_v28 = vld [vmem:[%s7516_s9 + $0x290] sm:$0xff] }
  0xaa   : > { %1327 = vmatpush.msra.mxu0 %v7705_v25  ;;  %1350 = vmatpush.msra.mxu1 %v7706_v9  ;;  %v926_v31 = vpop.f32.mrf.mxu1  ;;  %v1950_v1 = vld [vmem:[%s7516_s9 + $0x3a0] sm:$0xff]  ;;  %v1840_v25 = vld [vmem:[%s7516_s9 + $0x30] sm:$0xff] }
  0xab   : > { %v897_v29 = vpop.f32.mrf.mxu0  ;;  %2417 = vmatpush.msra.mxu2 %v1862_v8  ;;  %2446 = vmatpush.msra.mxu3 %v1894_v13  ;;  %v1872_v9 = vld [vmem:[%s7516_s9 + $0x130] sm:$0xff]  ;;  %v1914_v13 = vld [vmem:[%s7516_s9 + $0x280] sm:$0xff] }
  0xac   : > { %1328 = vmatpush.msra.mxu0 %v7707_v32  ;;  %1351 = vmatpush.msra.mxu1 %v7708_v33  ;;  %v1948_v8 = vld [vmem:[%s7516_s9 + $0x390] sm:$0xff]  ;;  %v1838_v29 = vld [vmem:[%s7516_s9 + $0x20] sm:$0xff] }
  0xad   : > { %2418 = vmatpush.msra.mxu2 %v1860_v34  ;;  %2447 = vmatpush.msra.mxu3 %v1892_v35  ;;  %v1870_v31 = vld [vmem:[%s7516_s9 + $0x120] sm:$0xff]  ;;  %v1912_v33 = vld [vmem:[%s7516_s9 + $0x270] sm:$0xff] }
  0xae   : > { %1329 = vmatpush.msra.mxu0 %v7709_v38  ;;  %1352 = vmatpush.msra.mxu1 %v7710_v39  ;;  %v1946_v32 = vld [vmem:[%s7516_s9 + $0x380] sm:$0xff]  ;;  %v1836_v34 = vld [vmem:[%s7516_s9 + $0x10] sm:$0xff] }
  0xaf   : > { %2419 = vmatpush.msra.mxu2 %v1858_v40  ;;  %2448 = vmatpush.msra.mxu3 %v1890_v41  ;;  %v1868_v39 = vld [vmem:[%s7516_s9 + $0x110] sm:$0xff] }
  0xb0   : > { %1330 = vmatpush.msra.mxu0 %v7711_v42  ;;  %1353 = vmatpush.msra.mxu1 %v7712_v43  ;;  %v1944_v40 = vld [vmem:[%s7516_s9 + $0x370] sm:$0xff]  ;;  %v1910_v43 = vld [vmem:[%s7516_s9 + $0x260] sm:$0xff] }
  0xb1   : > { %1293 = vmatmul.f32.gmra.mxu2 %v1226_v16  ;;  %1316 = vmatmul.f32.gmra.mxu3 %v1227_v17  ;;  %v1918_v16 = vld [vmem:[%s7516_s9 + $0x2a0] sm:$0xff] }
  0xb2   : > { %1331 = vmatpush.msra.mxu0 %v7713_v46  ;;  %1354 = vmatpush.msra.mxu1 %v7714_v47  ;;  %v1842_v17 = vld [vmem:[%s7516_s9 + $0x40] sm:$0xff] }
  0xb3   : > { %v900_v52 = vpop.f32.mrf.mxu0  ;;  %v929_v56 = vpop.f32.mrf.mxu1  ;;  %2420 = vmatpush.msra.mxu2 %v1856_v48  ;;  %2449 = vmatpush.msra.mxu3 %v1888_v49  ;;  %v1834_v46 = vld [vmem:[%s7516_s9] sm:$0xff]  ;;  %v1908_v49 = vld [vmem:[%s7516_s9 + $0x250] sm:$0xff] }
  0xb4   : > { %1332 = vmatpush.msra.mxu0 %v7715_v50  ;;  %1355 = vmatpush.msra.mxu1 %v7716_v51  ;;  %v1866_v47 = vld [vmem:[%s7516_s9 + $0x100] sm:$0xff]  ;;  %v1940_v50 = vld [vmem:[%s7516_s9 + $0x350] sm:$0xff] }
  0xb5   : > { %2421 = vmatpush.msra.mxu2 %v1854_v57  ;;  %2450 = vmatpush.msra.mxu3 %v1886_v58  ;;  %v1942_v48 = vld [vmem:[%s7516_s9 + $0x360] sm:$0xff]  ;;  %v1992_v51 = vld [vmem:[%s7516_s9 + $0x4f0] sm:$0xff] }
  0xb6   : > { %1333 = vmatpush.msra.mxu0 %v7717_v60  ;;  %1356 = vmatpush.msra.mxu1 %v7718_v61  ;;  %v2024_v52 = vld [vmem:[%s7516_s9 + $0x5f0] sm:$0xff]  ;;  %v1906_v56 = vld [vmem:[%s7516_s9 + $0x240] sm:$0xff] }
  0xb7   : > { %2422 = vmatpush.msra.mxu2 %v1852_v62  ;;  %2451 = vmatpush.msra.mxu3 %v1884_v63  ;;  %v1938_v57 = vld [vmem:[%s7516_s9 + $0x340] sm:$0xff]  ;;  %v1904_v61 = vld [vmem:[%s7516_s9 + $0x230] sm:$0xff] }
  0xb8   : > { %1334 = vmatpush.msra.mxu0 %v7719_v54  ;;  %1357 = vmatpush.msra.mxu1 %v7720_v21  ;;  %v1990_v58 = vld [vmem:[%s7516_s9 + $0x4e0] sm:$0xff]  ;;  %v1936_v62 = vld [vmem:[%s7516_s9 + $0x330] sm:$0xff] }
  0xb9   : > { %2423 = vmatpush.msra.mxu2 %v1850_v4  ;;  %2452 = vmatpush.msra.mxu3 %v1882_v5  ;;  %v2022_v60 = vld [vmem:[%s7516_s9 + $0x5e0] sm:$0xff]  ;;  %v1988_v63 = vld [vmem:[%s7516_s9 + $0x4d0] sm:$0xff] }
  0xba   : > { %1335 = vmatpush.msra.mxu0 %v7721_v37  ;;  %1358 = vmatpush.msra.mxu1 %v7722_v55  ;;  %v2020_v54 = vld [vmem:[%s7516_s9 + $0x5d0] sm:$0xff]  ;;  %v1404_v21 = vld [vmem:[#allocation2] sm:$0xfe]  ;;  %v1405_v55 = vld [vmem:[#allocation2 + $0x38] sm:$0xfe] }
  0xbb   : > { %1336 = vmatmul.f32.vlgmr.msra.gmra.mxu0 %v1222_v36  ;;  %1359 = vmatmul.f32.vlgmr.msra.gmra.mxu1 %v1222_v36  ;;  %v1934_v37 = vld [vmem:[%s7516_s9 + $0x320] sm:$0xff] }
  0xbc   : > { %2474 = vmatpush.msrb.mxu0 %v1928_v53  ;;  %2503 = vmatpush.msrb.mxu1 %v1960_v20  ;;  %v1902_v20 = vld [vmem:[%s7516_s9 + $0x220] sm:$0xff] }
  0xbd   : > { %2424 = vmatpush.msra.mxu2 %v1848_v3  ;;  %2453 = vmatpush.msra.mxu3 %v1880_v12  ;;  %v4972_v18 = vpop.f32.mrf.mxu0  ;;  %v4974_v19 = vpop.f32.mrf.mxu1  ;;  %v1986_v4 = vld [vmem:[%s7516_s9 + $0x4c0] sm:$0xff] }
  0xbe   : > { %2475 = vmatpush.msrb.mxu0 %v1926_v44  ;;  %2504 = vmatpush.msrb.mxu1 %v1958_v2  ;;  %v2018_v5 = vld [vmem:[%s7516_s9 + $0x5c0] sm:$0xff]  ;;  %v1425_v44 = vrot.slane %v1404_v21, 1  ;;  %v5103_v2 = vrot.slane %v3961_v59, 1  ;;  %v2000_v21 = vld [vmem:[%s7516_s9 + $0x530] sm:$0xff] }
  0xbf   : > { %2425 = vmatpush.msra.mxu2 %v1846_v45  ;;  %2454 = vmatpush.msra.mxu3 %v1878_v10  ;;  %v1428_v45 = vrot.slane %v1405_v55, 1  ;;  %v1984_v10 = vld [vmem:[%s7516_s9 + $0x4b0] sm:$0xff] }
  0xc0   : > { %2476 = vmatpush.msrb.mxu0 %v1924_v6  ;;  %2505 = vmatpush.msrb.mxu1 %v1956_v7  ;;  %v955_v22 = vpop.f32.mrf.mxu2  ;;  %v984_v23 = vpop.f32.mrf.mxu3  ;;  %v1900_v6 = vld [vmem:[%s7516_s9 + $0x210] sm:$0xff] }
  0xc1   : > { %2426 = vmatpush.msra.mxu2 %v1844_v26  ;;  %2455 = vmatpush.msra.mxu3 %v1876_v27  ;;  %v1932_v7 = vld [vmem:[%s7516_s9 + $0x310] sm:$0xff]  ;;  %v5131_v22 = vsel %vm1424_vm0, %v1425_v44, %v5103_v2  ;;  %v1982_v23 = vld [vmem:[%s7516_s9 + $0x4a0] sm:$0xff]  ;;  %v5141_v26 = vsel %vm1424_vm0, %v1428_v45, %v5103_v2 }
  0xc2   : > { %2477 = vmatpush.msrb.mxu0 %v1922_v11  ;;  %2506 = vmatpush.msrb.mxu1 %v1954_v14  ;;  %v2016_v11 = vld [vmem:[%s7516_s9 + $0x5b0] sm:$0xff]  ;;  %v1898_v14 = vld [vmem:[%s7516_s9 + $0x200] sm:$0xff] }
  0xc3   : > { %1339 = vmatmul.f32.gmra.mxu0 %v1223_v15  ;;  %1362 = vmatmul.f32.gmra.mxu1 %v1223_v15  ;;  %v1930_v15 = vld [vmem:[%s7516_s9 + $0x300] sm:$0xff]  ;;  %v1980_v27 = vld [vmem:[%s7516_s9 + $0x490] sm:$0xff] }
  0xc4   : > { %2478 = vmatpush.msrb.mxu0 %v1920_v24  ;;  %2507 = vmatpush.msrb.mxu1 %v1952_v30  ;;  %v2014_v24 = vld [vmem:[%s7516_s9 + $0x5a0] sm:$0xff]  ;;  %v2056_v30 = vld [vmem:[%s7516_s9 + $0x6f0] sm:$0xff] }
  0xc5   : > { %2427 = vmatpush.msra.mxu2 %v1842_v17  ;;  %2456 = vmatpush.msra.mxu3 %v1874_v0  ;;  %v2088_v17 = vld [vmem:[%s7516_s9 + $0x7f0] sm:$0xff]  ;;  %v2042_v44 = vld [vmem:[%s7516_s9 + $0x680] sm:$0xff] }
  0xc6   : > { %2479 = vmatpush.msrb.mxu0 %v1918_v16  ;;  %2508 = vmatpush.msrb.mxu1 %v1950_v1  ;;  %v2012_v16 = vld [vmem:[%s7516_s9 + $0x590] sm:$0xff] }
  0xc7   : > { %2428 = vmatpush.msra.mxu2 %v1840_v25  ;;  %2457 = vmatpush.msra.mxu3 %v1872_v9  ;;  %v5030_v35 = vpop.f32.mrf.mxu0  ;;  %v5032_v38 = vpop.f32.mrf.mxu1  ;;  %v2054_v25 = vld [vmem:[%s7516_s9 + $0x6e0] sm:$0xff]  ;;  %v1996_v45 = vld [vmem:[%s7516_s9 + $0x510] sm:$0xff] }
  0xc8   : > { %2480 = vmatpush.msrb.mxu0 %v1916_v28  ;;  %2509 = vmatpush.msrb.mxu1 %v1948_v8  ;;  %v1978_v28 = vld [vmem:[%s7516_s9 + $0x480] sm:$0xff] }
  0xc9   : > { %2429 = vmatpush.msra.mxu2 %v1838_v29  ;;  %2458 = vmatpush.msra.mxu3 %v1870_v31  ;;  %v2010_v9 = vld [vmem:[%s7516_s9 + $0x580] sm:$0xff]  ;;  %v2052_v29 = vld [vmem:[%s7516_s9 + $0x6d0] sm:$0xff] }
  0xca   : > { %2481 = vmatpush.msrb.mxu0 %v1914_v13  ;;  %v958_v41 = vpop.f32.mrf.mxu2  ;;  %v987_v42 = vpop.f32.mrf.mxu3  ;;  %2510 = vmatpush.msrb.mxu1 %v1946_v32  ;;  %v2086_v8 = vld [vmem:[%s7516_s9 + $0x7e0] sm:$0xff]  ;;  %v1976_v13 = vld [vmem:[%s7516_s9 + $0x470] sm:$0xff] }
  0xcb   : > { %2430 = vmatpush.msra.mxu2 %v1836_v34  ;;  %2459 = vmatpush.msra.mxu3 %v1868_v39  ;;  %v2084_v34 = vld [vmem:[%s7516_s9 + $0x7d0] sm:$0xff]  ;;  %v1974_v39 = vld [vmem:[%s7516_s9 + $0x460] sm:$0xff] }
  0xcc   : > { %2482 = vmatpush.msrb.mxu0 %v1912_v33  ;;  %2511 = vmatpush.msrb.mxu1 %v1944_v40  ;;  %v2008_v33 = vld [vmem:[%s7516_s9 + $0x570] sm:$0xff]  ;;  %v2050_v40 = vld [vmem:[%s7516_s9 + $0x6c0] sm:$0xff] }
  0xcd   : > { %2431 = vmatpush.msra.mxu2 %v1834_v46  ;;  %2460 = vmatpush.msra.mxu3 %v1866_v47  ;;  %v2006_v41 = vld [vmem:[%s7516_s9 + $0x560] sm:$0xff]  ;;  %v2048_v46 = vld [vmem:[%s7516_s9 + $0x6b0] sm:$0xff] }
  0xce   : > { %2483 = vmatpush.msrb.mxu0 %v1910_v43  ;;  %2512 = vmatpush.msrb.mxu1 %v1942_v48  ;;  %v2082_v42 = vld [vmem:[%s7516_s9 + $0x7c0] sm:$0xff]  ;;  %v1972_v43 = vld [vmem:[%s7516_s9 + $0x450] sm:$0xff] }
  0xcf   : > { %2432 = vmatmul.f32.vlgmr.msra.gmra.mxu2 %v3961_v59  ;;  %2461 = vmatmul.f32.vlgmr.msra.gmra.mxu3 %v3961_v59  ;;  %v2004_v48 = vld [vmem:[%s7516_s9 + $0x550] sm:$0xff] }
  0xd0   : > { %2484 = vmatpush.msrb.mxu0 %v1908_v49  ;;  %2513 = vmatpush.msrb.mxu1 %v1940_v50  ;;  %v2080_v49 = vld [vmem:[%s7516_s9 + $0x7b0] sm:$0xff]  ;;  %v1970_v50 = vld [vmem:[%s7516_s9 + $0x440] sm:$0xff] }
  0xd1   : > { %2532 = vmatpush.msrb.mxu2 %v1992_v51  ;;  %2561 = vmatpush.msrb.mxu3 %v2024_v52  ;;  %v2046_v51 = vld [vmem:[%s7516_s9 + $0x6a0] sm:$0xff]  ;;  %v933_v52 = vadd.f32 %v4974_v19, %v4972_v18 }
  0xd2   : > { %2485 = vmatpush.msrb.mxu0 %v1906_v56  ;;  %2514 = vmatpush.msrb.mxu1 %v1938_v57  ;;  %v5222_v56 = vld [vmem:[%s7515_s8] sm:$0xff] }
  0xd3   : > { %v1013_v36 = vpop.f32.mrf.mxu0  ;;  %v1042_v53 = vpop.f32.mrf.mxu1  ;;  %2533 = vmatpush.msrb.mxu2 %v1990_v58  ;;  %2562 = vmatpush.msrb.mxu3 %v2022_v60  ;;  %v2002_v57 = vld [vmem:[%s7516_s9 + $0x540] sm:$0xff]  ;;  %v5233_v60 = vld [vmem:[%s7515_s8 + $0x8] sm:$0xff] }
  0xd4   : > { %2486 = vmatpush.msrb.mxu0 %v1904_v61  ;;  %2515 = vmatpush.msrb.mxu1 %v1936_v62  ;;  %v5105_v3 = vpop.f32.mrf.mxu2  ;;  %v5107_v12 = vpop.f32.mrf.mxu3  ;;  %v2078_v58 = vld [vmem:[%s7516_s9 + $0x7a0] sm:$0xff]  ;;  %v1968_v61 = vld [vmem:[%s7516_s9 + $0x430] sm:$0xff] }
  0xd5   : > { %2534 = vmatpush.msrb.mxu2 %v1988_v63  ;;  %2563 = vmatpush.msrb.mxu3 %v2020_v54  ;;  %v991_v47 = vadd.f32 %v5107_v12, %v5105_v3  ;;  %v2044_v62 = vld [vmem:[%s7516_s9 + $0x690] sm:$0xff]  ;;  %v2074_v3 = vld [vmem:[%s7516_s9 + $0x780] sm:$0xff] }
  0xd6   : > { %2487 = vmatpush.msrb.mxu0 %v1902_v20  ;;  %2516 = vmatpush.msrb.mxu1 %v1934_v37  ;;  %v2076_v36 = vld [vmem:[%s7516_s9 + $0x790] sm:$0xff] }
  0xd7   : > { %2535 = vmatpush.msrb.mxu2 %v1986_v4  ;;  %2564 = vmatpush.msrb.mxu3 %v2018_v5  ;;  %v1966_v4 = vld [vmem:[%s7516_s9 + $0x420] sm:$0xff] }
  0xd8   : > { %2435 = vmatmul.f32.gmra.mxu2 %v3961_v59  ;;  %2464 = vmatmul.f32.gmra.mxu3 %v3961_v59  ;;  %v1998_v5 = vld [vmem:[%s7516_s9 + $0x520] sm:$0xff] }
  0xd9   : > { %2488 = vmatpush.msrb.mxu0 %v1900_v6  ;;  %2517 = vmatpush.msrb.mxu1 %v1932_v7  ;;  %v1964_v7 = vld [vmem:[%s7516_s9 + $0x410] sm:$0xff] }
  0xda   : > { %2536 = vmatpush.msrb.mxu2 %v1984_v10  ;;  %2565 = vmatpush.msrb.mxu3 %v2016_v11 }
  0xdb   : > { %2489 = vmatpush.msrb.mxu0 %v1898_v14  ;;  %2518 = vmatpush.msrb.mxu1 %v1930_v15  ;;  %v2040_v15 = vld [vmem:[%s7516_s9 + $0x670] sm:$0xff] }
  0xdc   : > { %2490 = vmatmul.f32.vlgmr.msrb.gmra.mxu0 %v5131_v22  ;;  %2537 = vmatpush.msrb.mxu2 %v1982_v23  ;;  %v2072_v23 = vld [vmem:[%s7516_s9 + $0x770] sm:$0xff] }
  0xdd   : > { %v1016_v0 = vpop.f32.mrf.mxu0  ;;  %v1045_v1 = vpop.f32.mrf.mxu1  ;;  %2566 = vmatpush.msrb.mxu3 %v2014_v24  ;;  %2519 = vmatmul.f32.vlgmr.msrb.gmra.mxu1 %v5141_v26  ;;  %v1962_v24 = vld [vmem:[%s7516_s9 + $0x400] sm:$0xff] }
  0xde   : > { %2538 = vmatpush.msrb.mxu2 %v1980_v27  ;;  %2590 = vmatpush.msra.mxu0 %v2056_v30  ;;  %v936_v27 = vadd.f32 %v5032_v38, %v5030_v35  ;;  %v5314_v30 = vld [vmem:[%s7515_s8 + $0x10] sm:$0xff]  ;;  %v5325_v0 = vld [vmem:[%s7515_s8 + $0x18] sm:$0xff] }
  0xdf   : > { %2567 = vmatpush.msrb.mxu3 %v2012_v16  ;;  %2619 = vmatpush.msra.mxu1 %v2088_v17  ;;  %v2038_v16 = vld [vmem:[%s7516_s9 + $0x660] sm:$0xff]  ;;  %v2120_v1 = vld [vmem:[%s7516_s9 + $0x8f0] sm:$0xff] }
  0xe0   : > { %v5175_v31 = vpop.f32.mrf.mxu2  ;;  %v5177_v32 = vpop.f32.mrf.mxu3  ;;  %2539 = vmatpush.msrb.mxu2 %v1978_v28  ;;  %2591 = vmatpush.msra.mxu0 %v2054_v25  ;;  %v2070_v17 = vld [vmem:[%s7516_s9 + $0x760] sm:$0xff]  ;;  %v2152_v28 = vld [vmem:[%s7516_s9 + $0x9f0] sm:$0xff] }
  0xe1   : > { %2568 = vmatpush.msrb.mxu3 %v2010_v9  ;;  %2620 = vmatpush.msra.mxu1 %v2086_v8  ;;  %v994_v10 = vadd.f32 %v5177_v32, %v5175_v31  ;;  %v2036_v8 = vld [vmem:[%s7516_s9 + $0x650] sm:$0xff] }
  0xe2   : > { %2540 = vmatpush.msrb.mxu2 %v1976_v13  ;;  %2592 = vmatpush.msra.mxu0 %v2052_v29  ;;  %v2068_v13 = vld [vmem:[%s7516_s9 + $0x750] sm:$0xff]  ;;  %v1459_v29 = vld [vmem:[#allocation2] sm:$0xfc] }
  0xe3   : > { %2569 = vmatpush.msrb.mxu3 %v2008_v33  ;;  %2621 = vmatpush.msra.mxu1 %v2084_v34 }
  0xe4   : > { %2541 = vmatpush.msrb.mxu2 %v1974_v39  ;;  %2593 = vmatpush.msra.mxu0 %v2050_v40  ;;  %v1460_v39 = vld [vmem:[#allocation2 + $0x38] sm:$0xfc]  ;;  %v2118_v40 = vld [vmem:[%s7516_s9 + $0x8e0] sm:$0xff] }
  0xe5   : > { %2570 = vmatpush.msrb.mxu3 %v2006_v41  ;;  %2622 = vmatpush.msra.mxu1 %v2082_v42  ;;  %v2150_v41 = vld [vmem:[%s7516_s9 + $0x9e0] sm:$0xff] }
  0xe6   : > { %2542 = vmatpush.msrb.mxu2 %v1972_v43  ;;  %2594 = vmatpush.msra.mxu0 %v2048_v46  ;;  %v2034_v42 = vld [vmem:[%s7516_s9 + $0x640] sm:$0xff] }
  0xe7   : > { %v1019_v18 = vpop.f32.mrf.mxu0  ;;  %v1048_v19 = vpop.f32.mrf.mxu1  ;;  %2571 = vmatpush.msrb.mxu3 %v2004_v48  ;;  %2623 = vmatpush.msra.mxu1 %v2080_v49  ;;  %v2066_v43 = vld [vmem:[%s7516_s9 + $0x740] sm:$0xff]  ;;  %v1480_v48 = vrot.slane %v1459_v29, 2  ;;  %v1483_v49 = vrot.slane %v1460_v39, 2 }
  0xe8   : > { %v1020_v63 = vadd.f32 %v1019_v18, %v933_v52  ;;  %v1049_v54 = vadd.f32 %v1048_v19, %v991_v47  ;;  %2543 = vmatpush.msrb.mxu2 %v1970_v50  ;;  %2595 = vmatpush.msra.mxu0 %v2046_v51  ;;  %v2116_v50 = vld [vmem:[%s7516_s9 + $0x8d0] sm:$0xff]  ;;  %v5398_v19 = vrot.slane %v3961_v59, 2  ;;  %v2062_v59 = vld [vmem:[%s7516_s9 + $0x720] sm:$0xff] }
  0xe9   : > { %2572 = vmatpush.msrb.mxu3 %v2002_v57  ;;  %2624 = vmatpush.msra.mxu1 %v2078_v58  ;;  %v2148_v51 = vld [vmem:[%s7516_s9 + $0x9d0] sm:$0xff] }
  0xea   : > { %v5248_v53 = vadd.f32 %v1020_v63, %v5222_v56  ;;  %v5251_v20 = vadd.f32 %v1049_v54, %v5233_v60  ;;  %v5253_v37 = vpop.f32.mrf.mxu2  ;;  %v5255_v55 = vpop.f32.mrf.mxu3  ;;  %2544 = vmatpush.msrb.mxu2 %v1968_v61  ;;  %2596 = vmatpush.msra.mxu0 %v2044_v62  ;;  %v2032_v58 = vld [vmem:[%s7516_s9 + $0x630] sm:$0xff]  ;;  %v2114_v61 = vld [vmem:[%s7516_s9 + $0x8c0] sm:$0xff] }
  0xeb   : > { %2573 = vmatpush.msrb.mxu3 %v2000_v21  ;;  %2625 = vmatpush.msra.mxu1 %v2076_v36  ;;  %v2064_v18 = vld [vmem:[%s7516_s9 + $0x730] sm:$0xff]  ;;  %v2146_v62 = vld [vmem:[%s7516_s9 + $0x9c0] sm:$0xff] }
  0xec   : > { %1066 = vst [vmem:[#allocation2 + $0x20] sm:$0xff] %v5248_v53  ;;  %2438 = vmatmul.f32.gmra.mxu2 %v5248_v53  ;;  %2467 = vmatmul.f32.gmra.mxu3 %v5251_v20  ;;  %v1431_v12 = vrot.slane %v5248_v53, 1  ;;  %v1433_v6 = vrot.slane %v5251_v20, 1  ;;  %v2030_v21 = vld [vmem:[%s7516_s9 + $0x620] sm:$0xff] }
  0xed   : > { %1067 = vst [vmem:[#allocation2 + $0x8] sm:$0xff] %v5251_v20  ;;  %2545 = vmatpush.msrb.mxu2 %v1966_v4  ;;  %2574 = vmatpush.msrb.mxu3 %v1998_v5  ;;  %v5414_v4 = vsel %vm1479_vm1, %v1480_v48, %v5398_v19  ;;  %v5418_v5 = vsel %vm1479_vm1, %v1483_v49, %v5398_v19 }
  0xee   : > { %v5287_v11 = vsel %vm1424_vm0, %v5103_v2, %v1431_v12  ;;  %v5293_v14 = vsel %vm1424_vm0, %v5103_v2, %v1433_v6  ;;  %2597 = vmatpush.msra.mxu0 %v2042_v44  ;;  %2626 = vmatpush.msra.mxu1 %v2074_v3  ;;  %v1994_v2 = vld [vmem:[%s7516_s9 + $0x500] sm:$0xff]  ;;  %v2112_v44 = vld [vmem:[%s7516_s9 + $0x8b0] sm:$0xff] }
  0xef   : > { %2493 = vmatmul.f32.gmra.mxu0 %v5287_v11  ;;  %2522 = vmatmul.f32.gmra.mxu1 %v5293_v14  ;;  %v2144_v3 = vld [vmem:[%s7516_s9 + $0x9b0] sm:$0xff] }
  0xf0   : > { %2546 = vmatpush.msrb.mxu2 %v1964_v7  ;;  %2575 = vmatpush.msrb.mxu3 %v1996_v45  ;;  %v2060_v7 = vld [vmem:[%s7516_s9 + $0x710] sm:$0xff] }
  0xf1   : > { %v1022_v35 = vpop.f32.mrf.mxu0  ;;  %v1051_v38 = vpop.f32.mrf.mxu1  ;;  %2598 = vmatpush.msra.mxu0 %v2040_v15  ;;  %2627 = vmatpush.msra.mxu1 %v2072_v23 }
  0xf2   : > { %v1023_v25 = vadd.f32 %v1022_v35, %v936_v27  ;;  %v1052_v9 = vadd.f32 %v1051_v38, %v994_v10  ;;  %2547 = vmatpush.msrb.mxu2 %v1962_v24  ;;  %2576 = vmatpush.msrb.mxu3 %v1994_v2  ;;  %v2026_v24 = vld [vmem:[%s7516_s9 + $0x600] sm:$0xff]  ;;  %v2108_v27 = vld [vmem:[%s7516_s9 + $0x890] sm:$0xff]  ;;  %v1486_v38 = vrot.slane %v5248_v53, 2 }
  0xf3   : > { %2599 = vmatpush.msra.mxu0 %v2038_v16  ;;  %2628 = vmatpush.msra.mxu1 %v2070_v17  ;;  %v2058_v2 = vld [vmem:[%s7516_s9 + $0x700] sm:$0xff]  ;;  %v2140_v16 = vld [vmem:[%s7516_s9 + $0x990] sm:$0xff] }
  0xf4   : > { %v5340_v31 = vadd.f32 %v1023_v25, %v5314_v30  ;;  %v5343_v32 = vadd.f32 %v1052_v9, %v5325_v0  ;;  %v5345_v33 = vpop.f32.mrf.mxu2  ;;  %v5347_v34 = vpop.f32.mrf.mxu3  ;;  %2648 = vmatpush.msra.mxu2 %v2120_v1  ;;  %2677 = vmatpush.msra.mxu3 %v2152_v28  ;;  %v1488_v1 = vrot.slane %v5251_v20, 2  ;;  %v2184_v28 = vld [vmem:[%s7516_s9 + $0xaf0] sm:$0xff]  ;;  %v5488_v29 = vsel %vm1479_vm1, %v5398_v19, %v1486_v38 }
  0xf5   : > { %2600 = vmatpush.msra.mxu0 %v2036_v8  ;;  %2629 = vmatpush.msra.mxu1 %v2068_v13  ;;  %v2216_v25 = vld [vmem:[%s7516_s9 + $0xbf0] sm:$0xff]  ;;  %v1120_v13 = vadd.f32 %v5347_v34, %v5345_v33  ;;  %v2214_v33 = vld [vmem:[%s7516_s9 + $0xbe0] sm:$0xff] }
  0xf6   : > { %1068 = vst [vmem:[#allocation2 + $0x70] sm:$0xff] %v5340_v31  ;;  %2441 = vmatmul.f32.gmra.mxu2 %v5340_v31  ;;  %2470 = vmatmul.f32.gmra.mxu3 %v5343_v32  ;;  %v5365_v46 = vrot.slane %v5340_v31, 1  ;;  %v5368_v47 = vrot.slane %v5343_v32, 1  ;;  %v2104_v9 = vld [vmem:[%s7516_s9 + $0x870] sm:$0xff]  ;;  %v5494_v39 = vsel %vm1479_vm1, %v5398_v19, %v1488_v1 }
  0xf7   : > { %1069 = vst [vmem:[#allocation2 + $0x80] sm:$0xff] %v5343_v32  ;;  %2649 = vmatpush.msra.mxu2 %v2118_v40  ;;  %2678 = vmatpush.msra.mxu3 %v2150_v41  ;;  %v2136_v8 = vld [vmem:[%s7516_s9 + $0x970] sm:$0xff]  ;;  %v2182_v40 = vld [vmem:[%s7516_s9 + $0xae0] sm:$0xff] }
  0xf8   : > { %v5381_v52 = vsel %vm1424_vm0, %v1431_v12, %v5365_v46  ;;  %v5387_v57 = vsel %vm1424_vm0, %v1433_v6, %v5368_v47  ;;  %2601 = vmatpush.msra.mxu0 %v2034_v42  ;;  %2630 = vmatpush.msra.mxu1 %v2066_v43  ;;  %v1117_v12 = vadd.f32 %v5255_v55, %v5253_v37  ;;  %v2028_v6 = vld [vmem:[%s7516_s9 + $0x610] sm:$0xff]  ;;  %v2110_v37 = vld [vmem:[%s7516_s9 + $0x8a0] sm:$0xff] }
  0xf9   : > { %2496 = vmatmul.f32.gmra.mxu0 %v5381_v52  ;;  %2525 = vmatmul.f32.gmra.mxu1 %v5387_v57  ;;  %v2142_v55 = vld [vmem:[%s7516_s9 + $0x9a0] sm:$0xff]  ;;  %v2100_v19 = vld [vmem:[%s7516_s9 + $0x850] sm:$0xff] }
  0xfa   : > { %v1139_v63 = vpop.f32.mrf.mxu0  ;;  %v1162_v54 = vpop.f32.mrf.mxu1  ;;  %2650 = vmatpush.msra.mxu2 %v2116_v50  ;;  %2679 = vmatpush.msra.mxu3 %v2148_v51  ;;  %v2102_v42 = vld [vmem:[%s7516_s9 + $0x860] sm:$0xff]  ;;  %v2180_v51 = vld [vmem:[%s7516_s9 + $0xad0] sm:$0xff] }
  0xfb   : > { %v1163_v36 = vadd.f32 %v1162_v54, %v1139_v63  ;;  %2602 = vmatpush.msra.mxu0 %v2032_v58  ;;  %2631 = vmatpush.msra.mxu1 %v2064_v18  ;;  %v2134_v43 = vld [vmem:[%s7516_s9 + $0x960] sm:$0xff]  ;;  %v2212_v58 = vld [vmem:[%s7516_s9 + $0xbd0] sm:$0xff]  ;;  %v5526_v63 = vrot.slane %v5340_v31, 2 }
  0xfc   : > { %2651 = vmatpush.msra.mxu2 %v2114_v61  ;;  %2680 = vmatpush.msra.mxu3 %v2146_v62  ;;  %v2132_v61 = vld [vmem:[%s7516_s9 + $0x950] sm:$0xff]  ;;  %v2178_v54 = vld [vmem:[%s7516_s9 + $0xac0] sm:$0xff] }
  0xfd   : > { %2603 = vmatpush.msra.mxu0 %v2030_v21  ;;  %2632 = vmatpush.msra.mxu1 %v2062_v59  ;;  %v2210_v21 = vld [vmem:[%s7516_s9 + $0xbc0] sm:$0xff] }
  0xfe   : > { %v1185_v45 = vpop.f32.mrf.mxu2  ;;  %v1208_v10 = vpop.f32.mrf.mxu3  ;;  %2548 = vmatmul.f32.vlgmr.msrb.gmra.mxu2 %v5414_v4  ;;  %2577 = vmatmul.f32.vlgmr.msrb.gmra.mxu3 %v5418_v5 }
  0xff   : > { %v1186_v15 = vadd.f32 %v1185_v45, %v1117_v12  ;;  %v1209_v23 = vadd.f32 %v1208_v10, %v1163_v36  ;;  %2652 = vmatpush.msra.mxu2 %v2112_v44  ;;  %2681 = vmatpush.msra.mxu3 %v2144_v3  ;;  %v5535_v44 = vrot.slane %v5343_v32, 2  ;;  %v2130_v3 = vld [vmem:[%s7516_s9 + $0x940] sm:$0xff] }
 0x100   : > { %2604 = vmatpush.msra.mxu0 %v2028_v6  ;;  %2633 = vmatpush.msra.mxu1 %v2060_v7 }
 0x101   : > { %v5455_v17 = vadd.f32 %v1186_v15, %v5222_v56  ;;  %v5458_v35 = vadd.f32 %v1209_v23, %v5233_v60  ;;  %2653 = vmatpush.msra.mxu2 %v2110_v37  ;;  %2682 = vmatpush.msra.mxu3 %v2142_v55  ;;  %v2106_v56 = vld [vmem:[%s7516_s9 + $0x880] sm:$0xff]  ;;  %v5555_v37 = vsel %vm1479_vm1, %v1486_v38, %v5526_v63  ;;  %v2176_v55 = vld [vmem:[%s7516_s9 + $0xab0] sm:$0xff] }
 0x102   : > { %2605 = vmatpush.msra.mxu0 %v2026_v24  ;;  %2634 = vmatpush.msra.mxu1 %v2058_v2  ;;  %v2138_v60 = vld [vmem:[%s7516_s9 + $0x980] sm:$0xff]  ;;  %v5574_v23 = vsel %vm1479_vm1, %v1488_v1, %v5535_v44  ;;  %v2096_v2 = vld [vmem:[%s7516_s9 + $0x830] sm:$0xff] }
 0x103   : > { %1218 = vst [vmem:[#allocation2 + $0x88] sm:$0xff] %v5455_v17  ;;  %2654 = vmatpush.msra.mxu2 %v2108_v27  ;;  %2683 = vmatpush.msra.mxu3 %v2140_v16  ;;  %v2128_v27 = vld [vmem:[%s7516_s9 + $0x930] sm:$0xff]  ;;  %v2174_v38 = vld [vmem:[%s7516_s9 + $0xaa0] sm:$0xff] }
 0x104   : > { %1219 = vst [vmem:[#allocation2 + $0x40] sm:$0xff] %v5458_v35  ;;  %2706 = vmatpush.msrb.mxu0 %v2184_v28  ;;  %2735 = vmatpush.msrb.mxu1 %v2216_v25  ;;  %v2206_v1 = vld [vmem:[%s7516_s9 + $0xba0] sm:$0xff] }
 0x105   : > { %2655 = vmatpush.msra.mxu2 %v2106_v56  ;;  %2684 = vmatpush.msra.mxu3 %v2138_v60  ;;  %v2094_v28 = vld [vmem:[%s7516_s9 + $0x820] sm:$0xff]  ;;  %v2172_v60 = vld [vmem:[%s7516_s9 + $0xa90] sm:$0xff] }
 0x106   : > { %v1188_v34 = vpop.f32.mrf.mxu2  ;;  %2551 = vmatmul.f32.gmra.mxu2 %v5488_v29  ;;  %2580 = vmatmul.f32.gmra.mxu3 %v5494_v39  ;;  %v1142_v41 = vpop.f32.mrf.mxu0  ;;  %v2126_v25 = vld [vmem:[%s7516_s9 + $0x920] sm:$0xff] }
 0x107   : > { %v1189_v48 = vadd.f32 %v1188_v34, %v1120_v13  ;;  %v1165_v49 = vpop.f32.mrf.mxu1  ;;  %v1211_v50 = vpop.f32.mrf.mxu3  ;;  %2656 = vmatpush.msra.mxu2 %v2104_v9  ;;  %2685 = vmatpush.msra.mxu3 %v2136_v8  ;;  %v2204_v9 = vld [vmem:[%s7516_s9 + $0xb90] sm:$0xff]  ;;  %v2170_v34 = vld [vmem:[%s7516_s9 + $0xa80] sm:$0xff] }
 0x108   : > { %v1166_v18 = vadd.f32 %v1165_v49, %v1142_v41  ;;  %2707 = vmatpush.msrb.mxu0 %v2182_v40  ;;  %2736 = vmatpush.msrb.mxu1 %v2214_v33  ;;  %v2092_v13 = vld [vmem:[%s7516_s9 + $0x810] sm:$0xff]  ;;  %v2202_v41 = vld [vmem:[%s7516_s9 + $0xb80] sm:$0xff] }
 0x109   : > { %v5523_v62 = vadd.f32 %v1189_v48, %v5314_v30  ;;  %2657 = vmatpush.msra.mxu2 %v2102_v42  ;;  %2686 = vmatpush.msra.mxu3 %v2134_v43  ;;  %v2098_v30 = vld [vmem:[%s7516_s9 + $0x840] sm:$0xff]  ;;  %v2124_v40 = vld [vmem:[%s7516_s9 + $0x910] sm:$0xff] }
 0x10a   : > { %v1412_v59 = vld [vmem:[#allocation2 + $0x88] sm:$0x1]  ;;  %v1212_v36 = vadd.f32 %v1211_v50, %v1166_v18  ;;  %2708 = vmatpush.msrb.mxu0 %v2180_v51  ;;  %2737 = vmatpush.msrb.mxu1 %v2212_v58  ;;  %v2090_v43 = vld [vmem:[%s7516_s9 + $0x800] sm:$0xff]  ;;  %v2200_v50 = vld [vmem:[%s7516_s9 + $0xb70] sm:$0xff] }
 0x10b   : > { %1220 = vst [vmem:[#allocation2 + $0x50] sm:$0xff] %v5523_v62  ;;  %v1439_v12 = vrot.slane %v1412_v59, 1  ;;  %v1413_v6 = vld [vmem:[#allocation2 + $0x40] sm:$0x1]  ;;  %2658 = vmatpush.msra.mxu2 %v2100_v19  ;;  %2687 = vmatpush.msra.mxu3 %v2132_v61  ;;  %v1467_v24 = vld [vmem:[#allocation2 + $0x88] sm:$0x3] }
 0x10c   : > { %v1441_v7 = vrot.slane %v1413_v6, 1  ;;  %v5545_v45 = vadd.f32 %v1212_v36, %v5325_v0  ;;  %2709 = vmatpush.msrb.mxu0 %v2178_v54  ;;  %2738 = vmatpush.msrb.mxu1 %v2210_v21  ;;  %v2208_v0 = vld [vmem:[%s7516_s9 + $0xbb0] sm:$0xff]  ;;  %v1468_v16 = vld [vmem:[#allocation2 + $0x40] sm:$0x3]  ;;  %v1494_v56 = vrot.slane %v1467_v24, 2 }
 0x10d   : > { %v5549_v10 = vsel %vm1424_vm0, %v5365_v46, %v1439_v12  ;;  %2659 = vmatpush.msra.mxu2 %v2098_v30  ;;  %2688 = vmatpush.msra.mxu3 %v2130_v3  ;;  %v1496_v8 = vrot.slane %v1468_v16, 2  ;;  %v2122_v48 = vld [vmem:[%s7516_s9 + $0x900] sm:$0xff]  ;;  %v1531_v51 = vld [vmem:[#allocation2 + $0x8] sm:$0xfe]  ;;  %v2248_v58 = vld [vmem:[%s7516_s9 + $0xcf0] sm:$0xff] }
 0x10e   : > { %2499 = vmatmul.f32.gmra.mxu0 %v5549_v10  ;;  %v5566_v15 = vsel %vm1424_vm0, %v5368_v47, %v1441_v7  ;;  %1221 = vst [vmem:[#allocation2 + $0x28] sm:$0xff] %v5545_v45  ;;  %2554 = vmatmul.f32.gmra.mxu2 %v5555_v37  ;;  %v5610_v33 = vsel %vm1479_vm1, %v5526_v63, %v1494_v56  ;;  %v1530_v49 = vld [vmem:[#allocation2 + $0x20] sm:$0xfe]  ;;  %v1553_v59 = vrot.slane %v1531_v51, 1  ;;  %v2164_v12 = vld [vmem:[%s7516_s9 + $0xa50] sm:$0xff] }
 0x10f   : > { %2528 = vmatmul.f32.gmra.mxu1 %v5566_v15  ;;  %2583 = vmatmul.f32.gmra.mxu3 %v5574_v23  ;;  %v5622_v42 = vsel %vm1479_vm1, %v5535_v44, %v1496_v8  ;;  %v1550_v61 = vrot.slane %v1530_v49, 1  ;;  %v2166_v54 = vld [vmem:[%s7516_s9 + $0xa60] sm:$0xff]  ;;  %v2196_v6 = vld [vmem:[%s7516_s9 + $0xb50] sm:$0xff] }
 0x110   : > { %2710 = vmatpush.msrb.mxu0 %v2176_v55  ;;  %2739 = vmatpush.msrb.mxu1 %v2208_v0  ;;  %v2198_v21 = vld [vmem:[%s7516_s9 + $0xb60] sm:$0xff]  ;;  %v5670_v7 = vsel %vm1424_vm0, %v1553_v59, %v5368_v47  ;;  %v2244_v55 = vld [vmem:[%s7516_s9 + $0xcd0] sm:$0xff] }
 0x111   : > { %2660 = vmatpush.msra.mxu2 %v2096_v2  ;;  %2689 = vmatpush.msra.mxu3 %v2128_v27  ;;  %v2246_v36 = vld [vmem:[%s7516_s9 + $0xce0] sm:$0xff]  ;;  %v5658_v3 = vsel %vm1424_vm0, %v1550_v61, %v5365_v46  ;;  %v2276_v0 = vld [vmem:[%s7516_s9 + $0xdd0] sm:$0xff] }
 0x112   : > { %2711 = vmatpush.msrb.mxu0 %v2174_v38  ;;  %2740 = vmatpush.msrb.mxu1 %v2206_v1  ;;  %v2278_v30 = vld [vmem:[%s7516_s9 + $0xde0] sm:$0xff]  ;;  %v2160_v27 = vld [vmem:[%s7516_s9 + $0xa30] sm:$0xff]  ;;  %v1556_v38 = vrot.slane %v5455_v17, 1  ;;  %v1558_v1 = vrot.slane %v5458_v35, 1 }
 0x113   : > { %2661 = vmatpush.msra.mxu2 %v2094_v28  ;;  %2690 = vmatpush.msra.mxu3 %v2126_v25  ;;  %v2194_v24 = vld [vmem:[%s7516_s9 + $0xb40] sm:$0xff]  ;;  %v2192_v16 = vld [vmem:[%s7516_s9 + $0xb30] sm:$0xff] }
 0x114   : > { %2712 = vmatpush.msrb.mxu0 %v2172_v60  ;;  %2741 = vmatpush.msrb.mxu1 %v2204_v9  ;;  %v2242_v2 = vld [vmem:[%s7516_s9 + $0xcc0] sm:$0xff]  ;;  %v2240_v28 = vld [vmem:[%s7516_s9 + $0xcb0] sm:$0xff]  ;;  %v5708_v9 = vsel %vm1424_vm0, %v5365_v46, %v1556_v38 }
 0x115   : > { %2662 = vmatpush.msra.mxu2 %v2092_v13  ;;  %2691 = vmatpush.msra.mxu3 %v2124_v40  ;;  %v2272_v25 = vld [vmem:[%s7516_s9 + $0xdb0] sm:$0xff]  ;;  %v2158_v8 = vld [vmem:[%s7516_s9 + $0xa20] sm:$0xff]  ;;  %v5720_v40 = vsel %vm1424_vm0, %v5368_v47, %v1558_v1 }
 0x116   : > { %2606 = vmatmul.f32.vlgmr.msra.gmra.mxu0 %v5248_v53  ;;  %2557 = vmatmul.f32.gmra.mxu2 %v5610_v33  ;;  %v2168_v53 = vld [vmem:[%s7516_s9 + $0xa70] sm:$0xff]  ;;  %v2190_v13 = vld [vmem:[%s7516_s9 + $0xb20] sm:$0xff] }
 0x117   : > { %2635 = vmatmul.f32.vlgmr.msra.gmra.mxu1 %v5251_v20  ;;  %2586 = vmatmul.f32.gmra.mxu3 %v5622_v42  ;;  %v2280_v20 = vld [vmem:[%s7516_s9 + $0xdf0] sm:$0xff]  ;;  %v2238_v46 = vld [vmem:[%s7516_s9 + $0xca0] sm:$0xff] }
 0x118   : > { %2713 = vmatpush.msrb.mxu0 %v2170_v34  ;;  %2742 = vmatpush.msrb.mxu1 %v2202_v41  ;;  %v1245_v18 = vpop.f32.mrf.mxu0  ;;  %v1268_v19 = vpop.f32.mrf.mxu1  ;;  %v2270_v34 = vld [vmem:[%s7516_s9 + $0xda0] sm:$0xff]  ;;  %v2156_v41 = vld [vmem:[%s7516_s9 + $0xa10] sm:$0xff] }
 0x119   : > { %2663 = vmatpush.msra.mxu2 %v2090_v43  ;;  %2692 = vmatpush.msra.mxu3 %v2122_v48  ;;  %v2188_v47 = vld [vmem:[%s7516_s9 + $0xb10] sm:$0xff]  ;;  %v2154_v49 = vld [vmem:[%s7516_s9 + $0xa00] sm:$0xff] }
 0x11a   : > { %2714 = vmatpush.msrb.mxu0 %v2168_v53  ;;  %2743 = vmatpush.msrb.mxu1 %v2200_v50  ;;  %v2236_v43 = vld [vmem:[%s7516_s9 + $0xc90] sm:$0xff]  ;;  %v2186_v53 = vld [vmem:[%s7516_s9 + $0xb00] sm:$0xff]  ;;  %v5749_v50 = vrot.slane %v5523_v62, 1 }
 0x11b   : > { %2764 = vmatpush.msrb.mxu2 %v2248_v58  ;;  %2793 = vmatpush.msrb.mxu3 %v2280_v20  ;;  %v2268_v48 = vld [vmem:[%s7516_s9 + $0xd90] sm:$0xff]  ;;  %v5758_v20 = vrot.slane %v5545_v45, 1  ;;  %v1584_v59 = vld [vmem:[#allocation2 + $0x20] sm:$0xfc] }
 0x11c   : > { %2715 = vmatpush.msrb.mxu0 %v2166_v54  ;;  %2744 = vmatpush.msrb.mxu1 %v2198_v21  ;;  %v2312_v51 = vld [vmem:[%s7516_s9 + $0xef0] sm:$0xff]  ;;  %v5762_v61 = vsel %vm1424_vm0, %v1556_v38, %v5749_v50  ;;  %v2310_v54 = vld [vmem:[%s7516_s9 + $0xee0] sm:$0xff] }
 0x11d   : > { %2765 = vmatpush.msrb.mxu2 %v2246_v36  ;;  %2794 = vmatpush.msrb.mxu3 %v2278_v30  ;;  %v2344_v58 = vld [vmem:[%s7516_s9 + $0xff0] sm:$0xff]  ;;  %v2342_v21 = vld [vmem:[%s7516_s9 + $0xfe0] sm:$0xff]  ;;  %v5774_v36 = vsel %vm1424_vm0, %v1558_v1, %v5758_v20 }
 0x11e   : > { %2609 = vmatmul.f32.gmra.mxu0 %v5340_v31  ;;  %2664 = vmatmul.f32.vlgmr.msra.gmra.mxu2 %v5658_v3  ;;  %v2162_v31 = vld [vmem:[%s7516_s9 + $0xa40] sm:$0xff] }
 0x11f   : > { %2638 = vmatmul.f32.gmra.mxu1 %v5343_v32  ;;  %2693 = vmatmul.f32.vlgmr.msra.gmra.mxu3 %v5670_v7  ;;  %v2274_v32 = vld [vmem:[%s7516_s9 + $0xdc0] sm:$0xff] }
 0x120   : > { %2716 = vmatpush.msrb.mxu0 %v2164_v12  ;;  %2745 = vmatpush.msrb.mxu1 %v2196_v6  ;;  %v2234_v30 = vld [vmem:[%s7516_s9 + $0xc80] sm:$0xff]  ;;  %v1585_v6 = vld [vmem:[#allocation2 + $0x8] sm:$0xfc] }
 0x121   : > { %2766 = vmatpush.msrb.mxu2 %v2244_v55  ;;  %2795 = vmatpush.msrb.mxu3 %v2276_v0  ;;  %v2266_v12 = vld [vmem:[%s7516_s9 + $0xd80] sm:$0xff]  ;;  %v2308_v55 = vld [vmem:[%s7516_s9 + $0xed0] sm:$0xff] }
 0x122   : > { %2717 = vmatpush.msrb.mxu0 %v2162_v31  ;;  %2746 = vmatpush.msrb.mxu1 %v2194_v24  ;;  %v1248_v56 = vpop.f32.mrf.mxu0  ;;  %v1271_v60 = vpop.f32.mrf.mxu1  ;;  %v2340_v0 = vld [vmem:[%s7516_s9 + $0xfd0] sm:$0xff]  ;;  %v2230_v38 = vld [vmem:[%s7516_s9 + $0xc60] sm:$0xff] }
 0x123   : > { %2767 = vmatpush.msrb.mxu2 %v2242_v2  ;;  %2796 = vmatpush.msrb.mxu3 %v2274_v32  ;;  %v2232_v31 = vld [vmem:[%s7516_s9 + $0xc70] sm:$0xff]  ;;  %v1604_v2 = vrot.slane %v1584_v59, 2  ;;  %v2306_v32 = vld [vmem:[%s7516_s9 + $0xec0] sm:$0xff]  ;;  %v1610_v59 = vrot.slane %v5455_v17, 2 }
 0x124   : > { %2718 = vmatpush.msrb.mxu0 %v2160_v27  ;;  %2747 = vmatpush.msrb.mxu1 %v2192_v16  ;;  %v2264_v24 = vld [vmem:[%s7516_s9 + $0xd70] sm:$0xff]  ;;  %v2338_v27 = vld [vmem:[%s7516_s9 + $0xfc0] sm:$0xff]  ;;  %v1607_v16 = vrot.slane %v1585_v6, 2 }
 0x125   : > { %2768 = vmatpush.msrb.mxu2 %v2240_v28  ;;  %2797 = vmatpush.msrb.mxu3 %v2272_v25  ;;  %v2262_v1 = vld [vmem:[%s7516_s9 + $0xd60] sm:$0xff]  ;;  %v2336_v28 = vld [vmem:[%s7516_s9 + $0xfb0] sm:$0xff]  ;;  %v5816_v60 = vsel %vm1479_vm1, %v1604_v2, %v5526_v63  ;;  %v5873_v2 = vsel %vm1479_vm1, %v5526_v63, %v1610_v59 }
 0x126   : > { %2612 = vmatmul.f32.gmra.mxu0 %v5455_v17  ;;  %2667 = vmatmul.f32.gmra.mxu2 %v5708_v9  ;;  %v2304_v25 = vld [vmem:[%s7516_s9 + $0xeb0] sm:$0xff]  ;;  %v2298_v6 = vld [vmem:[%s7516_s9 + $0xe80] sm:$0xff]  ;;  %7723 = vst [vmem:[#allocation24_spill] sm:$0xff] %v5873_v2 }
 0x127   : > { %2641 = vmatmul.f32.gmra.mxu1 %v5458_v35  ;;  %2696 = vmatmul.f32.gmra.mxu3 %v5720_v40  ;;  %v1538_v56 = vld [vmem:[#allocation2 + $0x10] sm:$0x1]  ;;  %v2222_v63 = vld [vmem:[%s7516_s9 + $0xc20] sm:$0xff] }
 0x128   : > { %2719 = vmatpush.msrb.mxu0 %v2158_v8  ;;  %2748 = vmatpush.msrb.mxu1 %v2190_v13  ;;  %v2334_v8 = vld [vmem:[%s7516_s9 + $0xfa0] sm:$0xff]  ;;  %v2228_v13 = vld [vmem:[%s7516_s9 + $0xc50] sm:$0xff] }
 0x129   : > { %2769 = vmatpush.msrb.mxu2 %v2238_v46  ;;  %2798 = vmatpush.msrb.mxu3 %v2270_v34  ;;  %v1539_v46 = vld [vmem:[#allocation2 + $0x48] sm:$0x1] }
 0x12a   : > { %2720 = vmatpush.msrb.mxu0 %v2156_v41  ;;  %2749 = vmatpush.msrb.mxu1 %v2188_v47  ;;  %v1291_v18 = vpop.f32.mrf.mxu2  ;;  %v1314_v19 = vpop.f32.mrf.mxu3  ;;  %v5827_v47 = vsel %vm1479_vm1, %v1607_v16, %v5535_v44 }
 0x12b   : > { %2770 = vmatpush.msrb.mxu2 %v2236_v43  ;;  %2799 = vmatpush.msrb.mxu3 %v2268_v48  ;;  %v2302_v43 = vld [vmem:[%s7516_s9 + $0xea0] sm:$0xff]  ;;  %v2260_v48 = vld [vmem:[%s7516_s9 + $0xd50] sm:$0xff]  ;;  %v1564_v18 = vrot.slane %v1538_v56, 1 }
 0x12c   : > { %2721 = vmatpush.msrb.mxu0 %v2154_v49  ;;  %2750 = vmatpush.msrb.mxu1 %v2186_v53  ;;  %v2300_v19 = vld [vmem:[%s7516_s9 + $0xe90] sm:$0xff] }
 0x12d   : > { %2771 = vmatpush.msrb.mxu2 %v2234_v30  ;;  %2800 = vmatpush.msrb.mxu3 %v2266_v12  ;;  %v2330_v30 = vld [vmem:[%s7516_s9 + $0xf80] sm:$0xff]  ;;  %v1612_v12 = vrot.slane %v5458_v35, 2  ;;  %v2220_v56 = vld [vmem:[%s7516_s9 + $0xc10] sm:$0xff] }
 0x12e   : > { %2822 = vmatpush.msra.mxu0 %v2312_v51  ;;  %2851 = vmatpush.msra.mxu1 %v2344_v58  ;;  %v2332_v51 = vld [vmem:[%s7516_s9 + $0xf90] sm:$0xff]  ;;  %v2226_v58 = vld [vmem:[%s7516_s9 + $0xc40] sm:$0xff] }
 0x12f   : > { %2615 = vmatmul.f32.gmra.mxu0 %v5523_v62  ;;  %2670 = vmatmul.f32.gmra.mxu2 %v5762_v61  ;;  %v5885_v16 = vsel %vm1479_vm1, %v5535_v44, %v1612_v12  ;;  %v2254_v44 = vld [vmem:[%s7516_s9 + $0xd20] sm:$0xff] }
 0x130   : > { %2644 = vmatmul.f32.gmra.mxu1 %v5545_v45  ;;  %2699 = vmatmul.f32.gmra.mxu3 %v5774_v36  ;;  %7724 = vst [vmem:[#allocation25_spill] sm:$0xff] %v5885_v16 }
 0x131   : > { %2823 = vmatpush.msra.mxu0 %v2310_v54  ;;  %2852 = vmatpush.msra.mxu1 %v2342_v21  ;;  %v2258_v54 = vld [vmem:[%s7516_s9 + $0xd40] sm:$0xff]  ;;  %v1566_v21 = vrot.slane %v1539_v46, 1  ;;  %v2324_v46 = vld [vmem:[%s7516_s9 + $0xf50] sm:$0xff] }
 0x132   : > { %2772 = vmatpush.msrb.mxu2 %v2232_v31  ;;  %2801 = vmatpush.msrb.mxu3 %v2264_v24  ;;  %v2296_v24 = vld [vmem:[%s7516_s9 + $0xe70] sm:$0xff] }
 0x133   : > { %2824 = vmatpush.msra.mxu0 %v2308_v55  ;;  %2853 = vmatpush.msra.mxu1 %v2340_v0  ;;  %v5858_v55 = vsel %vm1424_vm0, %v5749_v50, %v1564_v18  ;;  %v2224_v0 = vld [vmem:[%s7516_s9 + $0xc30] sm:$0xff]  ;;  %v5866_v31 = vsel %vm1424_vm0, %v5758_v20, %v1566_v21  ;;  %v1593_v21 = vld [vmem:[#allocation2 + $0x48] sm:$0x3] }
 0x134   : > { %2773 = vmatpush.msrb.mxu2 %v2230_v38  ;;  %2802 = vmatpush.msrb.mxu3 %v2262_v1  ;;  %v1294_v34 = vpop.f32.mrf.mxu2  ;;  %v1317_v41 = vpop.f32.mrf.mxu3  ;;  %v2294_v38 = vld [vmem:[%s7516_s9 + $0xe60] sm:$0xff]  ;;  %v1592_v18 = vld [vmem:[#allocation2 + $0x10] sm:$0x3] }
 0x135   : > { %2825 = vmatpush.msra.mxu0 %v2306_v32  ;;  %2854 = vmatpush.msra.mxu1 %v2338_v27  ;;  %v2328_v32 = vld [vmem:[%s7516_s9 + $0xf70] sm:$0xff]  ;;  %v1616_v41 = vrot.slane %v5545_v45, 2 }
 0x136   : > { %2774 = vmatpush.msrb.mxu2 %v2228_v13  ;;  %2803 = vmatpush.msrb.mxu3 %v2260_v48  ;;  %v2256_v27 = vld [vmem:[%s7516_s9 + $0xd30] sm:$0xff]  ;;  %v1614_v13 = vrot.slane %v5523_v62, 2  ;;  %v2290_v48 = vld [vmem:[%s7516_s9 + $0xe40] sm:$0xff] }
 0x137   : > { %2722 = vmatmul.f32.vlgmr.msrb.gmra.mxu0 %v5816_v60  ;;  %2855 = vmatpush.msra.mxu1 %v2336_v28  ;;  %v2326_v28 = vld [vmem:[%s7516_s9 + $0xf60] sm:$0xff]  ;;  %v2252_v34 = vld [vmem:[%s7516_s9 + $0xd10] sm:$0xff] }
 0x138   : > { %v1337_v49 = vpop.f32.mrf.mxu0  ;;  %v1360_v53 = vpop.f32.mrf.mxu1  ;;  %2751 = vmatmul.f32.vlgmr.msrb.gmra.mxu1 %v5827_v47  ;;  %2826 = vmatpush.msra.mxu0 %v2304_v25 }
 0x139   : > { %2856 = vmatpush.msra.mxu1 %v2334_v8  ;;  %2775 = vmatpush.msrb.mxu2 %v2226_v58  ;;  %v2292_v8 = vld [vmem:[%s7516_s9 + $0xe50] sm:$0xff]  ;;  %v2322_v49 = vld [vmem:[%s7516_s9 + $0xf40] sm:$0xff]  ;;  %v5931_v58 = vsel %vm1479_vm1, %v1612_v12, %v1616_v41 }
 0x13a   : > { %2827 = vmatpush.msra.mxu0 %v2302_v43  ;;  %2804 = vmatpush.msrb.mxu3 %v2258_v54  ;;  %v2218_v43 = vld [vmem:[%s7516_s9 + $0xc00] sm:$0xff]  ;;  %7726 = vst [vmem:[#allocation29_spill] sm:$0xff] %v5931_v58  ;;  %v2320_v54 = vld [vmem:[%s7516_s9 + $0xf30] sm:$0xff] }
 0x13b   : > { %2857 = vmatpush.msra.mxu1 %v2332_v51  ;;  %2673 = vmatmul.f32.gmra.mxu2 %v5858_v55  ;;  %v2250_v53 = vld [vmem:[%s7516_s9 + $0xd00] sm:$0xff]  ;;  %v5927_v51 = vsel %vm1479_vm1, %v1610_v59, %v1614_v13  ;;  %v2376_v59 = vld [vmem:[%s7516_s9 + $0x10f0] sm:$0xff] }
 0x13c   : > { %2828 = vmatpush.msra.mxu0 %v2300_v19  ;;  %2702 = vmatmul.f32.gmra.mxu3 %v5866_v31  ;;  %7725 = vst [vmem:[#allocation28_spill] sm:$0xff] %v5927_v51  ;;  %v2288_v19 = vld [vmem:[%s7516_s9 + $0xe30] sm:$0xff]  ;;  %v2286_v12 = vld [vmem:[%s7516_s9 + $0xe20] sm:$0xff] }
 0x13d   : > { %2858 = vmatpush.msra.mxu1 %v2330_v30  ;;  %2776 = vmatpush.msrb.mxu2 %v2224_v0  ;;  %v2408_v30 = vld [vmem:[%s7516_s9 + $0x11f0] sm:$0xff]  ;;  %v1618_v0 = vrot.slane %v1592_v18, 2  ;;  %v2366_v18 = vld [vmem:[%s7516_s9 + $0x10a0] sm:$0xff] }
 0x13e   : > { %2829 = vmatpush.msra.mxu0 %v2298_v6  ;;  %2805 = vmatpush.msrb.mxu3 %v2256_v27  ;;  %v2318_v6 = vld [vmem:[%s7516_s9 + $0xf20] sm:$0xff]  ;;  %v2316_v27 = vld [vmem:[%s7516_s9 + $0xf10] sm:$0xff] }
 0x13f   : > { %2725 = vmatmul.f32.gmra.mxu0 %v5873_v2  ;;  %2859 = vmatpush.msra.mxu1 %v2328_v32  ;;  %v2284_v32 = vld [vmem:[%s7516_s9 + $0xe10] sm:$0xff] }
 0x140   : > { %v1340_v1 = vpop.f32.mrf.mxu0  ;;  %2754 = vmatmul.f32.gmra.mxu1 %v5885_v16  ;;  %2830 = vmatpush.msra.mxu0 %v2296_v24  ;;  %v1363_v25 = vpop.f32.mrf.mxu1  ;;  %v2374_v24 = vld [vmem:[%s7516_s9 + $0x10e0] sm:$0xff]  ;;  %v2053_v16 = vld [vmem:[%s7516_s9 + $0x6d8] sm:$0xff] }
 0x141   : > { %2777 = vmatpush.msrb.mxu2 %v2222_v63  ;;  %2860 = vmatpush.msra.mxu1 %v2326_v28  ;;  %v2372_v63 = vld [vmem:[%s7516_s9 + $0x10d0] sm:$0xff]  ;;  %v5973_v1 = vsel %vm1479_vm1, %v1614_v13, %v1618_v0  ;;  %v2282_v28 = vld [vmem:[%s7516_s9 + $0xe00] sm:$0xff] }
 0x142   : > { %2831 = vmatpush.msra.mxu0 %v2294_v38  ;;  %2806 = vmatpush.msrb.mxu3 %v2254_v44  ;;  %v2404_v38 = vld [vmem:[%s7516_s9 + $0x11d0] sm:$0xff]  ;;  %7727 = vst [vmem:[#allocation32_spill] sm:$0xff] %v5973_v1  ;;  %v2314_v44 = vld [vmem:[%s7516_s9 + $0xf00] sm:$0xff] }
 0x143   : > { %2778 = vmatpush.msrb.mxu2 %v2220_v56  ;;  %2861 = vmatpush.msra.mxu1 %v2324_v46  ;;  %v2370_v56 = vld [vmem:[%s7516_s9 + $0x10c0] sm:$0xff] }
 0x144   : > { %2832 = vmatpush.msra.mxu0 %v2292_v8  ;;  %2807 = vmatpush.msrb.mxu3 %v2252_v34  ;;  %v1654_v8 = vld [vmem:[#allocation2 + $0x88] sm:$0xfe]  ;;  %v2402_v13 = vld [vmem:[%s7516_s9 + $0x11c0] sm:$0xff]  ;;  %v2368_v34 = vld [vmem:[%s7516_s9 + $0x10b0] sm:$0xff] }
 0x145   : > { %2779 = vmatpush.msrb.mxu2 %v2218_v43  ;;  %2862 = vmatpush.msra.mxu1 %v2322_v49  ;;  %v1655_v46 = vld [vmem:[#allocation2 + $0x40] sm:$0xfe]  ;;  %v1674_v43 = vrot.slane %v1654_v8, 1  ;;  %v2400_v49 = vld [vmem:[%s7516_s9 + $0x11b0] sm:$0xff] }
 0x146   : > { %2833 = vmatpush.msra.mxu0 %v2290_v48  ;;  %2808 = vmatpush.msrb.mxu3 %v2250_v53  ;;  %v1897_v48 = vld [vmem:[%s7516_s9 + $0x1f8] sm:$0xff]  ;;  %v1677_v53 = vrot.slane %v1655_v46, 1  ;;  %v2362_v0 = vld [vmem:[%s7516_s9 + $0x1080] sm:$0xff]  ;;  %v2392_v8 = vld [vmem:[%s7516_s9 + $0x1170] sm:$0xff] }
 0x147   : > { %2728 = vmatmul.f32.gmra.mxu0 %v5927_v51  ;;  %2780 = vmatmul.f32.vlgmr.msrb.gmra.mxu2 %v5455_v17  ;;  %v2406_v17 = vld [vmem:[%s7516_s9 + $0x11e0] sm:$0xff]  ;;  %v1997_v51 = vld [vmem:[%s7516_s9 + $0x518] sm:$0xff] }
 0x148   : > { %2757 = vmatmul.f32.gmra.mxu1 %v5931_v58  ;;  %2809 = vmatmul.f32.vlgmr.msrb.gmra.mxu3 %v5458_v35  ;;  %v1620_v35 = vrot.slane %v1593_v21, 2  ;;  %v2364_v21 = vld [vmem:[%s7516_s9 + $0x1090] sm:$0xff]  ;;  %v2358_v46 = vld [vmem:[%s7516_s9 + $0x1060] sm:$0xff] }
 0x149   : > { %2834 = vmatpush.msra.mxu0 %v2288_v19  ;;  %2863 = vmatpush.msra.mxu1 %v2320_v54  ;;  %v1863_v19 = vld [vmem:[%s7516_s9 + $0xe8] sm:$0xff] }
 0x14a   : > { %2880 = vmatpush.msra.mxu2 %v2376_v59  ;;  %2909 = vmatpush.msra.mxu3 %v2408_v30  ;;  %v5983_v25 = vsel %vm1479_vm1, %v1616_v41, %v1620_v35  ;;  %v1865_v41 = vld [vmem:[%s7516_s9 + $0xf8] sm:$0xff]  ;;  %v1895_v54 = vld [vmem:[%s7516_s9 + $0x1e8] sm:$0xff]  ;;  %v6031_v30 = vsel %vm1424_vm0, %v1677_v53, %v5758_v20  ;;  %v2394_v35 = vld [vmem:[%s7516_s9 + $0x1180] sm:$0xff] }
 0x14b   : > { %2835 = vmatpush.msra.mxu0 %v2286_v12  ;;  %2864 = vmatpush.msra.mxu1 %v2318_v6  ;;  %7728 = vst [vmem:[#allocation33_spill] sm:$0xff] %v5983_v25  ;;  %v1861_v59 = vld [vmem:[%s7516_s9 + $0xd8] sm:$0xff]  ;;  %v2396_v6 = vld [vmem:[%s7516_s9 + $0x1190] sm:$0xff] }
 0x14c   : > { %2881 = vmatpush.msra.mxu2 %v2374_v24  ;;  %2910 = vmatpush.msra.mxu3 %v2406_v17  ;;  %7730 = vst [vmem:[#allocation36_spill] sm:$0xff] %v6031_v30  ;;  %v1893_v12 = vld [vmem:[%s7516_s9 + $0x1d8] sm:$0xff]  ;;  %v1859_v24 = vld [vmem:[%s7516_s9 + $0xc8] sm:$0xff]  ;;  %v2388_v53 = vld [vmem:[%s7516_s9 + $0x1150] sm:$0xff] }
 0x14d   : > { %2836 = vmatpush.msra.mxu0 %v2284_v32  ;;  %2865 = vmatpush.msra.mxu1 %v2316_v27  ;;  %v1891_v17 = vld [vmem:[%s7516_s9 + $0x1c8] sm:$0xff]  ;;  %v6052_v32 = vld [vmem:[#allocation2] sm:$0xff] }
 0x14e   : > { %2882 = vmatpush.msra.mxu2 %v2372_v63  ;;  %2911 = vmatpush.msra.mxu3 %v2404_v38  ;;  %v6055_v27 = vrot.slane %v6052_v32, 1  ;;  %v2360_v63 = vld [vmem:[%s7516_s9 + $0x1070] sm:$0xff]  ;;  %v1857_v38 = vld [vmem:[%s7516_s9 + $0xb8] sm:$0xff] }
 0x14f   : > { %2731 = vmatmul.f32.gmra.mxu0 %v5973_v1  ;;  %2866 = vmatpush.msra.mxu1 %v2314_v44  ;;  %v2003_v1 = vld [vmem:[%s7516_s9 + $0x548] sm:$0xff] }
 0x150   : > { %2760 = vmatmul.f32.gmra.mxu1 %v5983_v25  ;;  %2837 = vmatpush.msra.mxu0 %v2282_v28  ;;  %7731 = vst [vmem:[#allocation37_spill] sm:$0xff] %v6055_v27  ;;  %v1889_v28 = vld [vmem:[%s7516_s9 + $0x1b8] sm:$0xff]  ;;  %v1899_v25 = vld [vmem:[%s7516_s9 + $0x208] sm:$0xff] }
 0x151   : > { %2883 = vmatpush.msra.mxu2 %v2370_v56  ;;  %2912 = vmatpush.msra.mxu3 %v2402_v13  ;;  %v6078_v13 = vsel %vm1424_vm0, %v5749_v50, %v6055_v27 }
 0x152   : > { %2783 = vmatmul.f32.gmra.mxu2 %v5523_v62  ;;  %2812 = vmatmul.f32.gmra.mxu3 %v5545_v45  ;;  %v2398_v62 = vld [vmem:[%s7516_s9 + $0x11a0] sm:$0xff]  ;;  %v6020_v45 = vsel %vm1424_vm0, %v1674_v43, %v5749_v50  ;;  %v6066_v44 = vpop.f32.mrf.mxu2  ;;  %v6068_v56 = vpop.f32.mrf.mxu3  ;;  %7732 = vst [vmem:[#allocation38_spill] sm:$0xff] %v6078_v13  ;;  %v1887_v50 = vld [vmem:[%s7516_s9 + $0x1a8] sm:$0xff] }
 0x153   : > { %2884 = vmatpush.msra.mxu2 %v2368_v34  ;;  %2938 = vmatpush.msrb.mxu0 %v1865_v41  ;;  %7729 = vst [vmem:[#allocation35_spill] sm:$0xff] %v6020_v45  ;;  %v1855_v34 = vld [vmem:[%s7516_s9 + $0xa8] sm:$0xff]  ;;  %v6090_v41 = vsel %vm1424_vm0, %v5758_v20, %v6055_v27  ;;  %v2390_v43 = vld [vmem:[%s7516_s9 + $0x1160] sm:$0xff]  ;;  %v1853_v20 = vld [vmem:[%s7516_s9 + $0x98] sm:$0xff] }
 0x154   : > { %2967 = vmatpush.msrb.mxu1 %v1897_v48  ;;  %2913 = vmatpush.msra.mxu3 %v2400_v49  ;;  %7733 = vst [vmem:[#allocation39_spill] sm:$0xff] %v6090_v41  ;;  %v2356_v48 = vld [vmem:[%s7516_s9 + $0x1050] sm:$0xff]  ;;  %v1885_v49 = vld [vmem:[%s7516_s9 + $0x198] sm:$0xff] }
 0x155   : > { %2885 = vmatpush.msra.mxu2 %v2366_v18  ;;  %2939 = vmatpush.msrb.mxu0 %v1863_v19  ;;  %v2354_v18 = vld [vmem:[%s7516_s9 + $0x1040] sm:$0xff]  ;;  %v1851_v19 = vld [vmem:[%s7516_s9 + $0x88] sm:$0xff] }
 0x156   : > { %2968 = vmatpush.msrb.mxu1 %v1895_v54  ;;  %2914 = vmatpush.msra.mxu3 %v2398_v62  ;;  %v1883_v54 = vld [vmem:[%s7516_s9 + $0x188] sm:$0xff]  ;;  %v2386_v62 = vld [vmem:[%s7516_s9 + $0x1140] sm:$0xff] }
 0x157   : > { %2838 = vmatmul.f32.vlgmr.msra.gmra.mxu0 %v6020_v45  ;;  %2886 = vmatpush.msra.mxu2 %v2364_v21  ;;  %v2352_v21 = vld [vmem:[%s7516_s9 + $0x1030] sm:$0xff]  ;;  %v1973_v45 = vld [vmem:[%s7516_s9 + $0x458] sm:$0xff] }
 0x158   : > { %2867 = vmatmul.f32.vlgmr.msra.gmra.mxu1 %v6031_v30  ;;  %2940 = vmatpush.msrb.mxu0 %v1861_v59  ;;  %v1849_v59 = vld [vmem:[%s7516_s9 + $0x78] sm:$0xff] }
 0x159   : > { %2969 = vmatpush.msrb.mxu1 %v1893_v12  ;;  %2915 = vmatpush.msra.mxu3 %v2396_v6  ;;  %v1662_v12 = vld [vmem:[#allocation2 + $0x68] sm:$0x1] }
 0x15a   : > { %2887 = vmatpush.msra.mxu2 %v2362_v0  ;;  %2941 = vmatpush.msrb.mxu0 %v1859_v24  ;;  %v1881_v24 = vld [vmem:[%s7516_s9 + $0x178] sm:$0xff] }
 0x15b   : > { %2970 = vmatpush.msrb.mxu1 %v1891_v17  ;;  %2916 = vmatpush.msra.mxu3 %v2394_v35  ;;  %v6129_v6 = vpop.f32.mrf.mxu2  ;;  %v6131_v0 = vpop.f32.mrf.mxu3  ;;  %v2384_v17 = vld [vmem:[%s7516_s9 + $0x1130] sm:$0xff]  ;;  %v1663_v35 = vld [vmem:[#allocation2 + $0x60] sm:$0x1] }
 0x15c   : > { %2786 = vmatmul.f32.gmra.mxu2 %v6052_v32  ;;  %2815 = vmatmul.f32.gmra.mxu3 %v6052_v32 }
 0x15d   : > { %2888 = vmatpush.msra.mxu2 %v2360_v63  ;;  %2942 = vmatpush.msrb.mxu0 %v1857_v38  ;;  %v2350_v63 = vld [vmem:[%s7516_s9 + $0x1020] sm:$0xff]  ;;  %v1847_v38 = vld [vmem:[%s7516_s9 + $0x68] sm:$0xff] }
 0x15e   : > { %2971 = vmatpush.msrb.mxu1 %v1889_v28  ;;  %2917 = vmatpush.msra.mxu3 %v2392_v8  ;;  %v6149_v28 = vld [vmem:[#allocation2 + $0x50] sm:$0xff]  ;;  %v1879_v8 = vld [vmem:[%s7516_s9 + $0x168] sm:$0xff] }
 0x15f   : > { %2841 = vmatmul.f32.gmra.mxu0 %v6078_v13  ;;  %2889 = vmatpush.msra.mxu2 %v2358_v46  ;;  %v2382_v46 = vld [vmem:[%s7516_s9 + $0x1120] sm:$0xff]  ;;  %v1909_v13 = vld [vmem:[%s7516_s9 + $0x258] sm:$0xff] }
 0x160   : > { %2870 = vmatmul.f32.gmra.mxu1 %v6090_v41  ;;  %2943 = vmatpush.msrb.mxu0 %v1855_v34  ;;  %v1688_v34 = vrot.slane %v1662_v12, 1  ;;  %v1729_v12 = vrot.slane %v6149_v28, 2  ;;  %v1919_v28 = vld [vmem:[%s7516_s9 + $0x2a8] sm:$0xff] }
 0x161   : > { %2972 = vmatpush.msrb.mxu1 %v1887_v50  ;;  %2918 = vmatpush.msra.mxu3 %v2390_v43  ;;  %v1709_v50 = vld [vmem:[#allocation2 + $0x40] sm:$0xfc]  ;;  %v2348_v43 = vld [vmem:[%s7516_s9 + $0x1010] sm:$0xff]  ;;  %v1943_v41 = vld [vmem:[%s7516_s9 + $0x368] sm:$0xff] }
 0x162   : > { %2890 = vmatpush.msra.mxu2 %v2356_v48  ;;  %2944 = vmatpush.msrb.mxu0 %v1853_v20  ;;  %v1845_v48 = vld [vmem:[%s7516_s9 + $0x58] sm:$0xff]  ;;  %v1690_v20 = vrot.slane %v1663_v35, 1 }
 0x163   : > { %2973 = vmatpush.msrb.mxu1 %v1885_v49  ;;  %2919 = vmatpush.msra.mxu3 %v2388_v53  ;;  %v6163_v49 = vld [vmem:[#allocation2 + $0x28] sm:$0xff]  ;;  %v1877_v53 = vld [vmem:[%s7516_s9 + $0x158] sm:$0xff] }
 0x164   : > { %2891 = vmatpush.msra.mxu2 %v2354_v18  ;;  %2945 = vmatpush.msrb.mxu0 %v1851_v19  ;;  %v2380_v18 = vld [vmem:[%s7516_s9 + $0x1110] sm:$0xff]  ;;  %v2346_v19 = vld [vmem:[%s7516_s9 + $0x1000] sm:$0xff]  ;;  %v6188_v35 = vsel %vm1424_vm0, %v6055_v27, %v1690_v20 }
 0x165   : > { %2974 = vmatpush.msrb.mxu1 %v1883_v54  ;;  %2920 = vmatpush.msra.mxu3 %v2386_v62  ;;  %v1843_v54 = vld [vmem:[%s7516_s9 + $0x48] sm:$0xff]  ;;  %7735 = vst [vmem:[#allocation4_spill] sm:$0xff] %v6188_v35 }
 0x166   : > { %2789 = vmatmul.f32.gmra.mxu2 %v6052_v32  ;;  %2818 = vmatmul.f32.gmra.mxu3 %v6052_v32  ;;  %v1708_v62 = vld [vmem:[#allocation2 + $0x88] sm:$0xfc] }
 0x167   : > { %2844 = vmatmul.f32.gmra.mxu0 %v6055_v27  ;;  %2892 = vmatpush.msra.mxu2 %v2352_v21  ;;  %v1875_v21 = vld [vmem:[%s7516_s9 + $0x148] sm:$0xff] }
 0x168   : > { %2873 = vmatmul.f32.gmra.mxu1 %v6055_v27  ;;  %2946 = vmatpush.msrb.mxu0 %v1849_v59  ;;  %v6182_v59 = vsel %vm1424_vm0, %v6055_v27, %v1688_v34  ;;  %v1873_v34 = vld [vmem:[%s7516_s9 + $0x138] sm:$0xff] }
 0x169   : > { %2975 = vmatpush.msrb.mxu1 %v1881_v24  ;;  %2921 = vmatpush.msra.mxu3 %v2384_v17  ;;  %7734 = vst [vmem:[#allocation40_spill] sm:$0xff] %v6182_v59  ;;  %v1731_v24 = vrot.slane %v1709_v50, 2  ;;  %v1732_v17 = vrot.slane %v6163_v49, 2  ;;  %v1929_v49 = vld [vmem:[%s7516_s9 + $0x2f8] sm:$0xff] }
 0x16a   : > { %2893 = vmatpush.msra.mxu2 %v2350_v63  ;;  %2947 = vmatpush.msrb.mxu0 %v1847_v38  ;;  %v2378_v63 = vld [vmem:[%s7516_s9 + $0x1100] sm:$0xff]  ;;  %v1728_v38 = vrot.slane %v1708_v62, 2  ;;  %v1927_v62 = vld [vmem:[%s7516_s9 + $0x2e8] sm:$0xff]  ;;  %v1989_v27 = vld [vmem:[%s7516_s9 + $0x4d8] sm:$0xff] }
 0x16b   : > { %2976 = vmatpush.msrb.mxu1 %v1879_v8  ;;  %2922 = vmatpush.msra.mxu3 %v2382_v46  ;;  %v6193_v8 = vpop.f32.mrf.mxu0  ;;  %v1841_v46 = vld [vmem:[%s7516_s9 + $0x38] sm:$0xff]  ;;  %v6213_v20 = vsel %vm1479_vm1, %v1731_v24, %v1732_v17 }
 0x16c   : > { %2894 = vmatpush.msra.mxu2 %v2348_v43  ;;  %2948 = vmatpush.msrb.mxu0 %v1845_v48  ;;  %v6210_v48 = vsel %vm1479_vm1, %v1728_v38, %v1729_v12  ;;  %7737 = vst [vmem:[#allocation6_spill] sm:$0xff] %v6213_v20  ;;  %v1837_v24 = vld [vmem:[%s7516_s9 + $0x18] sm:$0xff] }
 0x16d   : > { %2977 = vmatpush.msrb.mxu1 %v1877_v53  ;;  %2923 = vmatpush.msra.mxu3 %v2380_v18  ;;  %7736 = vst [vmem:[#allocation5_spill] sm:$0xff] %v6210_v48  ;;  %v1961_v53 = vld [vmem:[%s7516_s9 + $0x3f8] sm:$0xff]  ;;  %v6221_v18 = vpop.f32.mrf.mxu1 }
 0x16e   : > { %2895 = vmatpush.msra.mxu2 %v2346_v19  ;;  %2949 = vmatpush.msrb.mxu0 %v1843_v54  ;;  %v1839_v19 = vld [vmem:[%s7516_s9 + $0x28] sm:$0xff]  ;;  %v1925_v38 = vld [vmem:[%s7516_s9 + $0x2d8] sm:$0xff] }
 0x16f   : > { %2978 = vmatpush.msrb.mxu1 %v1875_v21  ;;  %2847 = vmatmul.f32.gmra.mxu0 %v6182_v59  ;;  %v6202_v50 = vpop.f32.mrf.mxu2  ;;  %v6204_v43 = vpop.f32.mrf.mxu3  ;;  %v1871_v54 = vld [vmem:[%s7516_s9 + $0x128] sm:$0xff]  ;;  %v1917_v59 = vld [vmem:[%s7516_s9 + $0x298] sm:$0xff] }
 0x170   : > { %2876 = vmatmul.f32.gmra.mxu1 %v6188_v35  ;;  %2924 = vmatpush.msra.mxu3 %v2378_v63  ;;  %v1959_v21 = vld [vmem:[%s7516_s9 + $0x3e8] sm:$0xff]  ;;  %v1869_v63 = vld [vmem:[%s7516_s9 + $0x118] sm:$0xff] }
 0x171   : > { %2896 = vmatmul.f32.vlgmr.msra.gmra.mxu2 %v6210_v48  ;;  %2925 = vmatmul.f32.vlgmr.msra.gmra.mxu3 %v6213_v20  ;;  %v1981_v20 = vld [vmem:[%s7516_s9 + $0x498] sm:$0xff]  ;;  %v1907_v48 = vld [vmem:[%s7516_s9 + $0x248] sm:$0xff] }
 0x172   : > { %2950 = vmatpush.msrb.mxu0 %v1841_v46  ;;  %2979 = vmatpush.msrb.mxu1 %v1873_v34  ;;  %v1957_v46 = vld [vmem:[%s7516_s9 + $0x3d8] sm:$0xff]  ;;  %v1835_v34 = vld [vmem:[%s7516_s9 + $0x8] sm:$0xff] }
 0x173   : > { %2996 = vmatpush.msrb.mxu2 %v1929_v49  ;;  %3025 = vmatpush.msrb.mxu3 %v1961_v53  ;;  %v1867_v49 = vld [vmem:[%s7516_s9 + $0x108] sm:$0xff] }
 0x174   : > { %2951 = vmatpush.msrb.mxu0 %v1839_v19  ;;  %2980 = vmatpush.msrb.mxu1 %v1871_v54  ;;  %v1923_v53 = vld [vmem:[%s7516_s9 + $0x2c8] sm:$0xff]  ;;  %v6259_v19 = vrot.slane %v6052_v32, 2 }
 0x175   : > { %2997 = vmatpush.msrb.mxu2 %v1927_v62  ;;  %3026 = vmatpush.msrb.mxu3 %v1959_v21  ;;  %v1955_v54 = vld [vmem:[%s7516_s9 + $0x3c8] sm:$0xff]  ;;  %v6264_v62 = vpop.f32.mrf.mxu0  ;;  %v1921_v21 = vld [vmem:[%s7516_s9 + $0x2b8] sm:$0xff]  ;;  %v6294_v35 = vpop.f32.mrf.mxu1 }
 0x176   : > { %2952 = vmatpush.msrb.mxu0 %v1837_v24  ;;  %2981 = vmatpush.msrb.mxu1 %v1869_v63  ;;  %7738 = vst [vmem:[#allocation7_spill] sm:$0xff] %v6259_v19  ;;  %v1993_v24 = vld [vmem:[%s7516_s9 + $0x4f8] sm:$0xff] }
 0x177   : > { %2998 = vmatpush.msrb.mxu2 %v1925_v38  ;;  %3027 = vmatpush.msrb.mxu3 %v1957_v46  ;;  %v6282_v46 = vsel %vm1479_vm1, %v1729_v12, %v6259_v19  ;;  %v1991_v12 = vld [vmem:[%s7516_s9 + $0x4e8] sm:$0xff] }
 0x178   : > { %2953 = vmatpush.msrb.mxu0 %v1835_v34  ;;  %2982 = vmatpush.msrb.mxu1 %v1867_v49  ;;  %7739 = vst [vmem:[#allocation8_spill] sm:$0xff] %v6282_v46  ;;  %v6286_v34 = vsel %vm1479_vm1, %v1732_v17, %v6259_v19  ;;  %v2025_v49 = vld [vmem:[%s7516_s9 + $0x5f8] sm:$0xff]  ;;  %v2023_v17 = vld [vmem:[%s7516_s9 + $0x5e8] sm:$0xff] }
 0x179   : > { %2999 = vmatpush.msrb.mxu2 %v1923_v53  ;;  %2954 = vmatmul.f32.vlgmr.msrb.gmra.mxu0 %v6052_v32  ;;  %v6273_v63 = vpop.f32.mrf.mxu2  ;;  %v6275_v38 = vpop.f32.mrf.mxu3  ;;  %7740 = vst [vmem:[#allocation9_spill] sm:$0xff] %v6286_v34  ;;  %v1953_v53 = vld [vmem:[%s7516_s9 + $0x3b8] sm:$0xff] }
 0x17a   : > { %2983 = vmatmul.f32.vlgmr.msrb.gmra.mxu1 %v6052_v32  ;;  %3028 = vmatpush.msrb.mxu3 %v1955_v54  ;;  %v1951_v54 = vld [vmem:[%s7516_s9 + $0x3a8] sm:$0xff] }
 0x17b   : > { %2899 = vmatmul.f32.gmra.mxu2 %v6282_v46  ;;  %2928 = vmatmul.f32.gmra.mxu3 %v6286_v34  ;;  %v1717_v34 = vld [vmem:[#allocation2 + $0x60] sm:$0x3]  ;;  %v2015_v46 = vld [vmem:[%s7516_s9 + $0x5a8] sm:$0xff] }
 0x17c   : > { %3000 = vmatpush.msrb.mxu2 %v1921_v21  ;;  %3054 = vmatpush.msra.mxu0 %v1993_v24  ;;  %v2021_v21 = vld [vmem:[%s7516_s9 + $0x5d8] sm:$0xff] }
 0x17d   : > { %3083 = vmatpush.msra.mxu1 %v2025_v49  ;;  %3029 = vmatpush.msrb.mxu3 %v1953_v53  ;;  %v1949_v24 = vld [vmem:[%s7516_s9 + $0x398] sm:$0xff]  ;;  %v1915_v49 = vld [vmem:[%s7516_s9 + $0x288] sm:$0xff] }
 0x17e   : > { %3001 = vmatpush.msrb.mxu2 %v1919_v28  ;;  %3055 = vmatpush.msra.mxu0 %v1991_v12  ;;  %v1987_v53 = vld [vmem:[%s7516_s9 + $0x4c8] sm:$0xff] }
 0x17f   : > { %3084 = vmatpush.msra.mxu1 %v2023_v17  ;;  %3030 = vmatpush.msrb.mxu3 %v1951_v54  ;;  %v2019_v28 = vld [vmem:[%s7516_s9 + $0x5c8] sm:$0xff] }
 0x180   : > { %3002 = vmatpush.msrb.mxu2 %v1917_v59  ;;  %3056 = vmatpush.msra.mxu0 %v1989_v27  ;;  %v1947_v12 = vld [vmem:[%s7516_s9 + $0x388] sm:$0xff]  ;;  %v1913_v27 = vld [vmem:[%s7516_s9 + $0x278] sm:$0xff] }
 0x181   : > { %3085 = vmatpush.msra.mxu1 %v2021_v21  ;;  %3031 = vmatpush.msrb.mxu3 %v1949_v24  ;;  %v6334_v17 = vpop.f32.mrf.mxu2  ;;  %v6336_v54 = vpop.f32.mrf.mxu3  ;;  %v1985_v59 = vld [vmem:[%s7516_s9 + $0x4b8] sm:$0xff] }
 0x182   : > { %3003 = vmatpush.msrb.mxu2 %v1915_v49  ;;  %3057 = vmatpush.msra.mxu0 %v1987_v53  ;;  %v6345_v21 = vpop.f32.mrf.mxu0  ;;  %v2017_v24 = vld [vmem:[%s7516_s9 + $0x5b8] sm:$0xff]  ;;  %v6354_v53 = vpop.f32.mrf.mxu1 }
 0x183   : > { %3086 = vmatpush.msra.mxu1 %v2019_v28  ;;  %2957 = vmatmul.f32.gmra.mxu0 %v6052_v32  ;;  %v1945_v49 = vld [vmem:[%s7516_s9 + $0x378] sm:$0xff]  ;;  %v1911_v28 = vld [vmem:[%s7516_s9 + $0x268] sm:$0xff] }
 0x184   : > { %2986 = vmatmul.f32.gmra.mxu1 %v6052_v32  ;;  %3032 = vmatpush.msrb.mxu3 %v1947_v12  ;;  %v1983_v32 = vld [vmem:[%s7516_s9 + $0x4a8] sm:$0xff] }
 0x185   : > { %2902 = vmatmul.f32.gmra.mxu2 %v6259_v19  ;;  %2931 = vmatmul.f32.gmra.mxu3 %v6259_v19  ;;  %v1716_v12 = vld [vmem:[#allocation2 + $0x68] sm:$0x3] }
 0x186   : > { %3004 = vmatpush.msrb.mxu2 %v1913_v27  ;;  %3058 = vmatpush.msra.mxu0 %v1985_v59  ;;  %v2013_v27 = vld [vmem:[%s7516_s9 + $0x598] sm:$0xff] }
 0x187   : > { %3087 = vmatpush.msra.mxu1 %v2017_v24  ;;  %3033 = vmatpush.msrb.mxu3 %v1945_v49  ;;  %v1941_v59 = vld [vmem:[%s7516_s9 + $0x358] sm:$0xff]  ;;  %v1742_v24 = vrot.slane %v1716_v12, 2  ;;  %v1744_v49 = vrot.slane %v1717_v34, 2  ;;  %v2011_v34 = vld [vmem:[%s7516_s9 + $0x588] sm:$0xff] }
 0x188   : > { %3005 = vmatpush.msrb.mxu2 %v1911_v28  ;;  %3059 = vmatpush.msra.mxu0 %v1983_v32  ;;  %v1979_v28 = vld [vmem:[%s7516_s9 + $0x488] sm:$0xff] }
 0x189   : > { %3088 = vmatpush.msra.mxu1 %v2015_v46  ;;  %3034 = vmatpush.msrb.mxu3 %v1943_v41  ;;  %v6388_v32 = vpop.f32.mrf.mxu2  ;;  %v6390_v30 = vpop.f32.mrf.mxu3  ;;  %v1939_v41 = vld [vmem:[%s7516_s9 + $0x348] sm:$0xff]  ;;  %v6402_v12 = vsel %vm1479_vm1, %v6259_v19, %v1742_v24 }
 0x18a   : > { %3006 = vmatpush.msrb.mxu2 %v1909_v13  ;;  %3060 = vmatpush.msra.mxu0 %v1981_v20  ;;  %7741 = vst [vmem:[#allocation10_spill] sm:$0xff] %v6402_v12  ;;  %v6406_v13 = vsel %vm1479_vm1, %v6259_v19, %v1744_v49  ;;  %v6419_v24 = vld [vmem:[#allocation2 + $0x8] sm:$0xff]  ;;  %v2009_v49 = vld [vmem:[%s7516_s9 + $0x578] sm:$0xff] }
 0x18b   : > { %3089 = vmatpush.msra.mxu1 %v2013_v27  ;;  %3035 = vmatpush.msrb.mxu3 %v1941_v59  ;;  %v6398_v46 = vpop.f32.mrf.mxu0  ;;  %7742 = vst [vmem:[#allocation11_spill] sm:$0xff] %v6406_v13  ;;  %v6410_v27 = vld [vmem:[#allocation2 + $0x20] sm:$0xff]  ;;  %v1977_v59 = vld [vmem:[%s7516_s9 + $0x478] sm:$0xff]  ;;  %v2007_v19 = vld [vmem:[%s7516_s9 + $0x568] sm:$0xff] }
 0x18c   : > { %3007 = vmatpush.msrb.mxu2 %v1907_v48  ;;  %3061 = vmatpush.msra.mxu0 %v1979_v28  ;;  %v6408_v20 = vpop.f32.mrf.mxu1  ;;  %v1905_v48 = vld [vmem:[%s7516_s9 + $0x238] sm:$0xff] }
 0x18d   : > { %3090 = vmatpush.msra.mxu1 %v2011_v34  ;;  %2960 = vmatmul.f32.gmra.mxu0 %v6410_v27  ;;  %v1937_v28 = vld [vmem:[%s7516_s9 + $0x338] sm:$0xff]  ;;  %v1903_v34 = vld [vmem:[%s7516_s9 + $0x228] sm:$0xff] }
 0x18e   : > { %2989 = vmatmul.f32.gmra.mxu1 %v6419_v24  ;;  %3036 = vmatpush.msrb.mxu3 %v1939_v41  ;;  %v1975_v41 = vld [vmem:[%s7516_s9 + $0x468] sm:$0xff] }
 0x18f   : > { %2905 = vmatmul.f32.gmra.mxu2 %v6402_v12  ;;  %2934 = vmatmul.f32.gmra.mxu3 %v6406_v13  ;;  %v1935_v12 = vld [vmem:[%s7516_s9 + $0x328] sm:$0xff]  ;;  %v1901_v13 = vld [vmem:[%s7516_s9 + $0x218] sm:$0xff] }
 0x190   : > { %3008 = vmatpush.msrb.mxu2 %v1905_v48  ;;  %3062 = vmatpush.msra.mxu0 %v1977_v59  ;;  %v2005_v59 = vld [vmem:[%s7516_s9 + $0x558] sm:$0xff] }
 0x191   : > { %3091 = vmatpush.msra.mxu1 %v2009_v49  ;;  %3037 = vmatpush.msrb.mxu3 %v1937_v28  ;;  %v6448_v48 = vpop.f32.mrf.mxu2  ;;  %v1933_v49 = vld [vmem:[%s7516_s9 + $0x318] sm:$0xff] }
 0x192   : > { %3009 = vmatpush.msrb.mxu2 %v1903_v34  ;;  %3063 = vmatpush.msra.mxu0 %v1975_v41  ;;  %v6456_v28 = vpop.f32.mrf.mxu3  ;;  %v1971_v34 = vld [vmem:[%s7516_s9 + $0x448] sm:$0xff] }
 0x193   : > { %3092 = vmatpush.msra.mxu1 %v2007_v19  ;;  %3038 = vmatpush.msrb.mxu3 %v1935_v12  ;;  %v6464_v41 = vpop.f32.mrf.mxu0  ;;  %v1931_v19 = vld [vmem:[%s7516_s9 + $0x308] sm:$0xff]  ;;  %v6474_v12 = vld [vmem:[#allocation2 + $0x70] sm:$0xff] }
 0x194   : > { %3010 = vmatpush.msrb.mxu2 %v1901_v13  ;;  %3064 = vmatpush.msra.mxu0 %v1973_v45  ;;  %v6469_v58 = vpop.f32.mrf.mxu1  ;;  %v1969_v45 = vld [vmem:[%s7516_s9 + $0x438] sm:$0xff] }
 0x195   : > { %3093 = vmatpush.msra.mxu1 %v2005_v59  ;;  %3039 = vmatpush.msrb.mxu3 %v1933_v49  ;;  %v2001_v13 = vld [vmem:[%s7516_s9 + $0x538] sm:$0xff]  ;;  %v6483_v59 = vld [vmem:[#allocation2 + $0x80] sm:$0xff]  ;;  %v1967_v49 = vld [vmem:[%s7516_s9 + $0x428] sm:$0xff] }
 0x196   : > { %3011 = vmatpush.msrb.mxu2 %v1899_v25  ;;  %3065 = vmatpush.msra.mxu0 %v1971_v34  ;;  %v2089_v25 = vld [vmem:[%s7516_s9 + $0x7f8] sm:$0xff]  ;;  %v1999_v34 = vld [vmem:[%s7516_s9 + $0x528] sm:$0xff] }
 0x197   : > { %3094 = vmatpush.msra.mxu1 %v2003_v1  ;;  %2963 = vmatmul.f32.gmra.mxu0 %v6474_v12  ;;  %v2057_v1 = vld [vmem:[%s7516_s9 + $0x6f8] sm:$0xff] }
 0x198   : > { %2992 = vmatmul.f32.gmra.mxu1 %v6483_v59  ;;  %3040 = vmatpush.msrb.mxu3 %v1931_v19  ;;  %v2055_v19 = vld [vmem:[%s7516_s9 + $0x6e8] sm:$0xff] }
 0x199   : > { %3012 = vmatmul.f32.vlgmr.msrb.gmra.mxu2 %v5131_v22  ;;  %3041 = vmatmul.f32.vlgmr.msrb.gmra.mxu3 %v5141_v26  ;;  %v2087_v22 = vld [vmem:[%s7516_s9 + $0x7e8] sm:$0xff]  ;;  %v1965_v26 = vld [vmem:[%s7516_s9 + $0x418] sm:$0xff] }
 0x19a   : > { %3066 = vmatpush.msra.mxu0 %v1969_v45  ;;  %3095 = vmatpush.msra.mxu1 %v2001_v13  ;;  %v6514_v13 = vpop.f32.mrf.mxu2  ;;  %v6524_v2 = vpop.f32.mrf.mxu3 }
 0x19b   : > { %3112 = vmatpush.msra.mxu2 %v2057_v1  ;;  %3141 = vmatpush.msra.mxu3 %v2089_v25  ;;  %v6512_v45 = vpop.f32.mrf.mxu0  ;;  %7743 = vst [vmem:[#allocation12_spill] sm:$0xff] %v6514_v13  ;;  %v2085_v1 = vld [vmem:[%s7516_s9 + $0x7d8] sm:$0xff]  ;;  %v1963_v13 = vld [vmem:[%s7516_s9 + $0x408] sm:$0xff] }
 0x19c   : > { %3067 = vmatpush.msra.mxu0 %v1967_v49  ;;  %3096 = vmatpush.msra.mxu1 %v1999_v34  ;;  %v6522_v25 = vpop.f32.mrf.mxu1  ;;  %v1995_v49 = vld [vmem:[%s7516_s9 + $0x508] sm:$0xff] }
 0x19d   : > { %3113 = vmatpush.msra.mxu2 %v2055_v19  ;;  %3142 = vmatpush.msra.mxu3 %v2087_v22  ;;  %v2051_v34 = vld [vmem:[%s7516_s9 + $0x6c8] sm:$0xff]  ;;  %v2049_v22 = vld [vmem:[%s7516_s9 + $0x6b8] sm:$0xff] }
 0x19e   : > { %3068 = vmatpush.msra.mxu0 %v1965_v26  ;;  %3097 = vmatpush.msra.mxu1 %v1997_v51  ;;  %v2083_v19 = vld [vmem:[%s7516_s9 + $0x7c8] sm:$0xff]  ;;  %v2121_v51 = vld [vmem:[%s7516_s9 + $0x8f8] sm:$0xff] }
 0x19f   : > { %3114 = vmatpush.msra.mxu2 %v2053_v16  ;;  %3143 = vmatpush.msra.mxu3 %v2085_v1  ;;  %v2153_v16 = vld [vmem:[%s7516_s9 + $0x9f8] sm:$0xff]  ;;  %v2151_v1 = vld [vmem:[%s7516_s9 + $0x9e8] sm:$0xff] }
 0x1a0   : > { %3069 = vmatpush.msra.mxu0 %v1963_v13  ;;  %3098 = vmatpush.msra.mxu1 %v1995_v49  ;;  %v2081_v26 = vld [vmem:[%s7516_s9 + $0x7b8] sm:$0xff] }
 0x1a1   : > { %3115 = vmatpush.msra.mxu2 %v2051_v34  ;;  %3070 = vmatmul.f32.vlgmr.msra.gmra.mxu0 %v5414_v4  ;;  %v2047_v4 = vld [vmem:[%s7516_s9 + $0x6a8] sm:$0xff]  ;;  %v2045_v49 = vld [vmem:[%s7516_s9 + $0x698] sm:$0xff] }
 0x1a2   : > { %3099 = vmatmul.f32.vlgmr.msra.gmra.mxu1 %v5418_v5  ;;  %3144 = vmatpush.msra.mxu3 %v2083_v19  ;;  %v2119_v5 = vld [vmem:[%s7516_s9 + $0x8e8] sm:$0xff]  ;;  %v2117_v34 = vld [vmem:[%s7516_s9 + $0x8d8] sm:$0xff]  ;;  %v6576_v19 = vpop.f32.mrf.mxu2 }
 0x1a3   : > { %3015 = vmatmul.f32.gmra.mxu2 %v5287_v11  ;;  %3044 = vmatmul.f32.gmra.mxu3 %v5293_v14  ;;  %v6560_v13 = vpop.f32.mrf.mxu0  ;;  %v2079_v11 = vld [vmem:[%s7516_s9 + $0x7a8] sm:$0xff] }
 0x1a4   : > { %3116 = vmatpush.msra.mxu2 %v2049_v22  ;;  %3170 = vmatpush.msrb.mxu0 %v2121_v51  ;;  %v6568_v14 = vpop.f32.mrf.mxu1  ;;  %v2149_v22 = vld [vmem:[%s7516_s9 + $0x9d8] sm:$0xff] }
 0x1a5   : > { %3199 = vmatpush.msrb.mxu1 %v2153_v16  ;;  %3145 = vmatpush.msra.mxu3 %v2081_v26  ;;  %v2077_v51 = vld [vmem:[%s7516_s9 + $0x798] sm:$0xff]  ;;  %v6584_v16 = vpop.f32.mrf.mxu3  ;;  %v2043_v26 = vld [vmem:[%s7516_s9 + $0x688] sm:$0xff] }
 0x1a6   : > { %3117 = vmatpush.msra.mxu2 %v2047_v4  ;;  %3171 = vmatpush.msrb.mxu0 %v2119_v5  ;;  %v2115_v4 = vld [vmem:[%s7516_s9 + $0x8c8] sm:$0xff] }
 0x1a7   : > { %3200 = vmatpush.msrb.mxu1 %v2151_v1  ;;  %3146 = vmatpush.msra.mxu3 %v2079_v11  ;;  %v2147_v5 = vld [vmem:[%s7516_s9 + $0x9c8] sm:$0xff]  ;;  %v2041_v11 = vld [vmem:[%s7516_s9 + $0x678] sm:$0xff] }
 0x1a8   : > { %3118 = vmatpush.msra.mxu2 %v2045_v49  ;;  %3172 = vmatpush.msrb.mxu0 %v2117_v34  ;;  %v2075_v1 = vld [vmem:[%s7516_s9 + $0x788] sm:$0xff]  ;;  %v2113_v49 = vld [vmem:[%s7516_s9 + $0x8b8] sm:$0xff] }
 0x1a9   : > { %3201 = vmatpush.msrb.mxu1 %v2149_v22  ;;  %3147 = vmatpush.msra.mxu3 %v2077_v51  ;;  %v2145_v22 = vld [vmem:[%s7516_s9 + $0x9b8] sm:$0xff] }
 0x1aa   : > { %3119 = vmatpush.msra.mxu2 %v2043_v26  ;;  %3173 = vmatpush.msrb.mxu0 %v2115_v4  ;;  %v2039_v26 = vld [vmem:[%s7516_s9 + $0x668] sm:$0xff] }
 0x1ab   : > { %3202 = vmatpush.msrb.mxu1 %v2147_v5  ;;  %3073 = vmatmul.f32.gmra.mxu0 %v5488_v29  ;;  %v2073_v29 = vld [vmem:[%s7516_s9 + $0x778] sm:$0xff]  ;;  %v2143_v4 = vld [vmem:[%s7516_s9 + $0x9a8] sm:$0xff] }
 0x1ac   : > { %v6605_v34 = vpop.f32.mrf.mxu0  ;;  %3102 = vmatmul.f32.gmra.mxu1 %v5494_v39  ;;  %3148 = vmatpush.msra.mxu3 %v2075_v1  ;;  %v2111_v39 = vld [vmem:[%s7516_s9 + $0x8a8] sm:$0xff]  ;;  %v2109_v5 = vld [vmem:[%s7516_s9 + $0x898] sm:$0xff]  ;;  %v6636_v1 = vpop.f32.mrf.mxu2 }
 0x1ad   : > { %7744 = vst [vmem:[#allocation13_spill] sm:$0xff] %v6605_v34  ;;  %v6614_v51 = vpop.f32.mrf.mxu1  ;;  %3018 = vmatmul.f32.gmra.mxu2 %v5381_v52  ;;  %3047 = vmatmul.f32.gmra.mxu3 %v5387_v57  ;;  %v2071_v52 = vld [vmem:[%s7516_s9 + $0x768] sm:$0xff]  ;;  %v2037_v57 = vld [vmem:[%s7516_s9 + $0x658] sm:$0xff] }
 0x1ae   : > { %7745 = vst [vmem:[#allocation14_spill] sm:$0xff] %v6614_v51  ;;  %3120 = vmatpush.msra.mxu2 %v2041_v11  ;;  %3174 = vmatpush.msrb.mxu0 %v2113_v49  ;;  %v2141_v11 = vld [vmem:[%s7516_s9 + $0x998] sm:$0xff] }
 0x1af   : > { %3203 = vmatpush.msrb.mxu1 %v2145_v22  ;;  %3149 = vmatpush.msra.mxu3 %v2073_v29  ;;  %v2069_v49 = vld [vmem:[%s7516_s9 + $0x758] sm:$0xff]  ;;  %v6644_v22 = vpop.f32.mrf.mxu3  ;;  %v2035_v29 = vld [vmem:[%s7516_s9 + $0x648] sm:$0xff] }
 0x1b0   : > { %3121 = vmatpush.msra.mxu2 %v2039_v26  ;;  %3175 = vmatpush.msrb.mxu0 %v2111_v39  ;;  %v2107_v26 = vld [vmem:[%s7516_s9 + $0x888] sm:$0xff] }
 0x1b1   : > { %3204 = vmatpush.msrb.mxu1 %v2143_v4  ;;  %3150 = vmatpush.msra.mxu3 %v2071_v52  ;;  %v2139_v39 = vld [vmem:[%s7516_s9 + $0x988] sm:$0xff] }
 0x1b2   : > { %3122 = vmatpush.msra.mxu2 %v2037_v57  ;;  %3176 = vmatpush.msrb.mxu0 %v2109_v5  ;;  %v2067_v4 = vld [vmem:[%s7516_s9 + $0x748] sm:$0xff]  ;;  %v2033_v57 = vld [vmem:[%s7516_s9 + $0x638] sm:$0xff] }
 0x1b3   : > { %3205 = vmatpush.msrb.mxu1 %v2141_v11  ;;  %3151 = vmatpush.msra.mxu3 %v2069_v49  ;;  %v2105_v5 = vld [vmem:[%s7516_s9 + $0x878] sm:$0xff] }
 0x1b4   : > { %v6658_v52 = vpop.f32.mrf.mxu0  ;;  %3123 = vmatpush.msra.mxu2 %v2035_v29  ;;  %3177 = vmatpush.msrb.mxu0 %v2107_v26  ;;  %v2137_v11 = vld [vmem:[%s7516_s9 + $0x978] sm:$0xff]  ;;  %v2135_v29 = vld [vmem:[%s7516_s9 + $0x968] sm:$0xff] }
 0x1b5   : > { %v6660_v51 = vpop.f32.mrf.mxu1  ;;  %3206 = vmatpush.msrb.mxu1 %v2139_v39  ;;  %3076 = vmatmul.f32.gmra.mxu0 %v5555_v37  ;;  %v2065_v49 = vld [vmem:[%s7516_s9 + $0x738] sm:$0xff]  ;;  %v2031_v37 = vld [vmem:[%s7516_s9 + $0x628] sm:$0xff]  ;;  %v6696_v39 = vpop.f32.mrf.mxu2 }
 0x1b6   : > { %3105 = vmatmul.f32.gmra.mxu1 %v5574_v23  ;;  %3152 = vmatpush.msra.mxu3 %v2067_v4  ;;  %v2103_v23 = vld [vmem:[%s7516_s9 + $0x868] sm:$0xff]  ;;  %v2101_v26 = vld [vmem:[%s7516_s9 + $0x858] sm:$0xff] }
 0x1b7   : > { %3021 = vmatmul.f32.gmra.mxu2 %v5549_v10  ;;  %3050 = vmatmul.f32.gmra.mxu3 %v5566_v15  ;;  %v2063_v10 = vld [vmem:[%s7516_s9 + $0x728] sm:$0xff]  ;;  %v2029_v15 = vld [vmem:[%s7516_s9 + $0x618] sm:$0xff] }
 0x1b8   : > { %3124 = vmatpush.msra.mxu2 %v2033_v57  ;;  %3178 = vmatpush.msrb.mxu0 %v2105_v5  ;;  %v2133_v4 = vld [vmem:[%s7516_s9 + $0x958] sm:$0xff]  ;;  %v6704_v5 = vpop.f32.mrf.mxu3 }
 0x1b9   : > { %3207 = vmatpush.msrb.mxu1 %v2137_v11  ;;  %3153 = vmatpush.msra.mxu3 %v2065_v49  ;;  %v2061_v57 = vld [vmem:[%s7516_s9 + $0x718] sm:$0xff]  ;;  %7746 = vst [vmem:[#allocation15_spill] sm:$0xff] %v6704_v5  ;;  %v2027_v11 = vld [vmem:[%s7516_s9 + $0x608] sm:$0xff] }
 0x1ba   : > { %3125 = vmatpush.msra.mxu2 %v2031_v37  ;;  %3179 = vmatpush.msrb.mxu0 %v2103_v23  ;;  %v2099_v49 = vld [vmem:[%s7516_s9 + $0x848] sm:$0xff]  ;;  %v6717_v23 = vld [vmem:[%s7517_s10] sm:$0x3] }
 0x1bb   : > { %3208 = vmatpush.msrb.mxu1 %v2135_v29  ;;  %3154 = vmatpush.msra.mxu3 %v2063_v10  ;;  %v2131_v29 = vld [vmem:[%s7516_s9 + $0x948] sm:$0xff]  ;;  %v6728_v34 = vperm.slane %v6717_v23, 0 }
 0x1bc   : > { %v6712_v37 = vpop.f32.mrf.mxu0  ;;  %3126 = vmatpush.msra.mxu2 %v2029_v15  ;;  %3180 = vmatpush.msrb.mxu0 %v2101_v26  ;;  %v2059_v5 = vld [vmem:[%s7516_s9 + $0x708] sm:$0xff]  ;;  %v2097_v15 = vld [vmem:[%s7516_s9 + $0x838] sm:$0xff] }
 0x1bd   : > { %v6722_v10 = vpop.f32.mrf.mxu1  ;;  %3209 = vmatpush.msrb.mxu1 %v2133_v4  ;;  %3155 = vmatpush.msra.mxu3 %v2061_v57  ;;  %v2129_v26 = vld [vmem:[%s7516_s9 + $0x938] sm:$0xff] }
 0x1be   : > { %3127 = vmatpush.msra.mxu2 %v2027_v11  ;;  %3181 = vmatpush.msrb.mxu0 %v2099_v49  ;;  %v2185_v4 = vld [vmem:[%s7516_s9 + $0xaf8] sm:$0xff] }
 0x1bf   : > { %3210 = vmatpush.msrb.mxu1 %v2131_v29  ;;  %3079 = vmatmul.f32.gmra.mxu0 %v5610_v33  ;;  %v2217_v57 = vld [vmem:[%s7516_s9 + $0xbf8] sm:$0xff]  ;;  %v2095_v33 = vld [vmem:[%s7516_s9 + $0x828] sm:$0xff] }
 0x1c0   : > { %3108 = vmatmul.f32.gmra.mxu1 %v5622_v42  ;;  %3156 = vmatpush.msra.mxu3 %v2059_v5  ;;  %v2127_v42 = vld [vmem:[%s7516_s9 + $0x928] sm:$0xff]  ;;  %v2093_v11 = vld [vmem:[%s7516_s9 + $0x818] sm:$0xff] }
 0x1c1   : > { %3128 = vmatmul.f32.vlgmr.msra.gmra.mxu2 %v6410_v27  ;;  %3157 = vmatmul.f32.vlgmr.msra.gmra.mxu3 %v6419_v24  ;;  %v2183_v5 = vld [vmem:[%s7516_s9 + $0xae8] sm:$0xff]  ;;  %v2434_v24 = vadd.f32 %v6066_v44, %v6728_v34  ;;  %v2125_v49 = vld [vmem:[%s7516_s9 + $0x918] sm:$0xff] }
 0x1c2   : > { %3182 = vmatpush.msrb.mxu0 %v2097_v15  ;;  %3211 = vmatpush.msrb.mxu1 %v2129_v26  ;;  %v2215_v27 = vld [vmem:[%s7516_s9 + $0xbe8] sm:$0xff]  ;;  %v6768_v15 = vpop.f32.mrf.mxu2  ;;  %v2181_v44 = vld [vmem:[%s7516_s9 + $0xad8] sm:$0xff] }
 0x1c3   : > { %3228 = vmatpush.msrb.mxu2 %v2185_v4  ;;  %3257 = vmatpush.msrb.mxu3 %v2217_v57  ;;  %7747 = vst [vmem:[#allocation16_spill] sm:$0xff] %v6768_v15  ;;  %v2213_v26 = vld [vmem:[%s7516_s9 + $0xbd8] sm:$0xff]  ;;  %v6778_v57 = vpop.f32.mrf.mxu3  ;;  %v2091_v15 = vld [vmem:[%s7516_s9 + $0x808] sm:$0xff] }
 0x1c4   : > { %v6766_v29 = vpop.f32.mrf.mxu0  ;;  %3183 = vmatpush.msrb.mxu0 %v2095_v33  ;;  %3212 = vmatpush.msrb.mxu1 %v2127_v42  ;;  %v2123_v33 = vld [vmem:[%s7516_s9 + $0x908] sm:$0xff] }
 0x1c5   : > { %v6776_v4 = vpop.f32.mrf.mxu1  ;;  %3229 = vmatpush.msrb.mxu2 %v2183_v5  ;;  %3258 = vmatpush.msrb.mxu3 %v2215_v27  ;;  %v2179_v42 = vld [vmem:[%s7516_s9 + $0xac8] sm:$0xff]  ;;  %v2177_v27 = vld [vmem:[%s7516_s9 + $0xab8] sm:$0xff] }
 0x1c6   : > { %7748 = vst [vmem:[#allocation17_spill] sm:$0xff] %v6776_v4  ;;  %3184 = vmatpush.msrb.mxu0 %v2093_v11  ;;  %3213 = vmatpush.msrb.mxu1 %v2125_v49  ;;  %v2463_v4 = vadd.f32 %v6068_v56, %v2434_v24  ;;  %v2211_v5 = vld [vmem:[%s7516_s9 + $0xbc8] sm:$0xff]  ;;  %v2249_v11 = vld [vmem:[%s7516_s9 + $0xcf8] sm:$0xff] }
 0x1c7   : > { %3230 = vmatpush.msrb.mxu2 %v2181_v44  ;;  %3259 = vmatpush.msrb.mxu3 %v2213_v26  ;;  %v2281_v56 = vld [vmem:[%s7516_s9 + $0xdf8] sm:$0xff]  ;;  %v2175_v49 = vld [vmem:[%s7516_s9 + $0xaa8] sm:$0xff]  ;;  %v2437_v44 = vadd.f32 %v6129_v6, %v6728_v34 }
 0x1c8   : > { %3185 = vmatpush.msrb.mxu0 %v2091_v15  ;;  %3214 = vmatpush.msrb.mxu1 %v2123_v33  ;;  %v2209_v24 = vld [vmem:[%s7516_s9 + $0xbb8] sm:$0xff] }
 0x1c9   : > { %3231 = vmatpush.msrb.mxu2 %v2179_v42  ;;  %3186 = vmatmul.f32.vlgmr.msrb.gmra.mxu0 %v5658_v3  ;;  %v2492_v3 = vadd.f32 %v6193_v8, %v2463_v4  ;;  %v2279_v8 = vld [vmem:[%s7516_s9 + $0xde8] sm:$0xff]  ;;  %v2173_v26 = vld [vmem:[%s7516_s9 + $0xa98] sm:$0xff] }
 0x1ca   : > { %3215 = vmatmul.f32.vlgmr.msrb.gmra.mxu1 %v5670_v7  ;;  %3260 = vmatpush.msrb.mxu3 %v2211_v5  ;;  %v2247_v7 = vld [vmem:[%s7516_s9 + $0xce8] sm:$0xff]  ;;  %v2245_v4 = vld [vmem:[%s7516_s9 + $0xcd8] sm:$0xff]  ;;  %v6834_v33 = vpop.f32.mrf.mxu2 }
 0x1cb   : > { %3131 = vmatmul.f32.gmra.mxu2 %v6474_v12  ;;  %3160 = vmatmul.f32.gmra.mxu3 %v6483_v59  ;;  %v2207_v12 = vld [vmem:[%s7516_s9 + $0xba8] sm:$0xff]  ;;  %v6836_v42 = vpop.f32.mrf.mxu3  ;;  %v2277_v6 = vld [vmem:[%s7516_s9 + $0xdd8] sm:$0xff] }
 0x1cc   : > { %v6816_v15 = vpop.f32.mrf.mxu0  ;;  %3232 = vmatpush.msrb.mxu2 %v2177_v27  ;;  %3286 = vmatpush.msra.mxu0 %v2249_v11  ;;  %v2205_v5 = vld [vmem:[%s7516_s9 + $0xb98] sm:$0xff]  ;;  %v2521_v27 = vadd.f32 %v6221_v18, %v2492_v3  ;;  %v2171_v11 = vld [vmem:[%s7516_s9 + $0xa88] sm:$0xff] }
 0x1cd   : > { %v6824_v59 = vpop.f32.mrf.mxu1  ;;  %3315 = vmatpush.msra.mxu1 %v2281_v56  ;;  %3261 = vmatpush.msrb.mxu3 %v2209_v24  ;;  %v2243_v56 = vld [vmem:[%s7516_s9 + $0xcc8] sm:$0xff] }
 0x1ce   : > { %3233 = vmatpush.msrb.mxu2 %v2175_v49  ;;  %3287 = vmatpush.msra.mxu0 %v2247_v7  ;;  %v2275_v24 = vld [vmem:[%s7516_s9 + $0xdc8] sm:$0xff]  ;;  %v2466_v49 = vadd.f32 %v6131_v0, %v2437_v44  ;;  %v2550_v18 = vadd.f32 %v6334_v17, %v2521_v27  ;;  %v2169_v7 = vld [vmem:[%s7516_s9 + $0xa78] sm:$0xff] }
 0x1cf   : > { %3316 = vmatpush.msra.mxu1 %v2279_v8  ;;  %3262 = vmatpush.msrb.mxu3 %v2207_v12  ;;  %v2203_v3 = vld [vmem:[%s7516_s9 + $0xb88] sm:$0xff]  ;;  %v2241_v0 = vld [vmem:[%s7516_s9 + $0xcb8] sm:$0xff] }
 0x1d0   : > { %3234 = vmatpush.msrb.mxu2 %v2173_v26  ;;  %3288 = vmatpush.msra.mxu0 %v2245_v4  ;;  %v2273_v8 = vld [vmem:[%s7516_s9 + $0xdb8] sm:$0xff]  ;;  %v2495_v44 = vadd.f32 %v6264_v62, %v2466_v49  ;;  %v2579_v26 = vadd.f32 %v6336_v54, %v2550_v18  ;;  %v6879_v4 = vld [vmem:[#allocation2 + $0x88] sm:$0xff]  ;;  %v2440_v62 = vadd.f32 %v6202_v50, %v6728_v34 }
 0x1d1   : > { %3317 = vmatpush.msra.mxu1 %v2277_v6  ;;  %3263 = vmatpush.msrb.mxu3 %v2205_v5  ;;  %v2167_v6 = vld [vmem:[%s7516_s9 + $0xa68] sm:$0xff]  ;;  %v2237_v50 = vld [vmem:[%s7516_s9 + $0xc98] sm:$0xff] }
 0x1d2   : > { %3235 = vmatpush.msrb.mxu2 %v2171_v11  ;;  %3289 = vmatpush.msra.mxu0 %v2243_v56  ;;  %v2239_v5 = vld [vmem:[%s7516_s9 + $0xca8] sm:$0xff]  ;;  %v2608_v11 = vadd.f32 %v6464_v41, %v2579_v26  ;;  %v2165_v56 = vld [vmem:[%s7516_s9 + $0xa58] sm:$0xff] }
 0x1d3   : > { %3318 = vmatpush.msra.mxu1 %v2275_v24  ;;  %3189 = vmatmul.f32.gmra.mxu0 %v5708_v9  ;;  %v2201_v9 = vld [vmem:[%s7516_s9 + $0xb78] sm:$0xff]  ;;  %v2271_v54 = vld [vmem:[%s7516_s9 + $0xda8] sm:$0xff] }
 0x1d4   : > { %v6866_v17 = vpop.f32.mrf.mxu0  ;;  %3218 = vmatmul.f32.gmra.mxu1 %v5720_v40  ;;  %3264 = vmatpush.msrb.mxu3 %v2203_v3  ;;  %v6882_v40 = vld [vmem:[#allocation2 + $0x40] sm:$0xff]  ;;  %v2199_v27 = vld [vmem:[%s7516_s9 + $0xb68] sm:$0xff]  ;;  %v2269_v41 = vld [vmem:[%s7516_s9 + $0xd98] sm:$0xff]  ;;  %v2524_v3 = vadd.f32 %v6294_v35, %v2495_v44  ;;  %v2637_v44 = vadd.f32 %v6469_v58, %v2608_v11 }
 0x1d5   : > { %v6875_v12 = vpop.f32.mrf.mxu1  ;;  %3134 = vmatmul.f32.gmra.mxu2 %v6879_v4  ;;  %3163 = vmatmul.f32.gmra.mxu3 %v6882_v40  ;;  %v6906_v24 = vpop.f32.mrf.mxu2  ;;  %v2197_v18 = vld [vmem:[%s7516_s9 + $0xb58] sm:$0xff]  ;;  %v2195_v26 = vld [vmem:[%s7516_s9 + $0xb48] sm:$0xff] }
 0x1d6   : > { %3236 = vmatpush.msrb.mxu2 %v2169_v7  ;;  %3290 = vmatpush.msra.mxu0 %v2241_v0  ;;  %v6908_v49 = vpop.f32.mrf.mxu3  ;;  %v2163_v7 = vld [vmem:[%s7516_s9 + $0xa48] sm:$0xff]  ;;  %v2553_v35 = vadd.f32 %v6388_v32, %v2524_v3  ;;  %v2161_v58 = vld [vmem:[%s7516_s9 + $0xa38] sm:$0xff] }
 0x1d7   : > { %3319 = vmatpush.msra.mxu1 %v2273_v8  ;;  %3265 = vmatpush.msrb.mxu3 %v2201_v9  ;;  %v2235_v0 = vld [vmem:[%s7516_s9 + $0xc88] sm:$0xff]  ;;  %v2469_v8 = vadd.f32 %v6204_v43, %v2440_v62  ;;  %v2233_v32 = vld [vmem:[%s7516_s9 + $0xc78] sm:$0xff] }
 0x1d8   : > { %3237 = vmatpush.msrb.mxu2 %v2167_v6  ;;  %3291 = vmatpush.msra.mxu0 %v2239_v5  ;;  %v2267_v9 = vld [vmem:[%s7516_s9 + $0xd88] sm:$0xff]  ;;  %v2666_v5 = vadd.f32 %v6576_v19, %v2637_v44  ;;  %v2265_v19 = vld [vmem:[%s7516_s9 + $0xd78] sm:$0xff] }
 0x1d9   : > { %3320 = vmatpush.msra.mxu1 %v2271_v54  ;;  %3266 = vmatpush.msrb.mxu3 %v2199_v27  ;;  %v2498_v62 = vadd.f32 %v6345_v21, %v2469_v8  ;;  %v2582_v54 = vadd.f32 %v6390_v30, %v2553_v35  ;;  %v6953_v27 = vld [vmem:[#allocation2 + $0x50] sm:$0xff]  ;;  %v6956_v11 = vld [vmem:[#allocation2 + $0x28] sm:$0xff]  ;;  %v2229_v3 = vld [vmem:[%s7516_s9 + $0xc58] sm:$0xff] }
 0x1da   : > { %3238 = vmatpush.msrb.mxu2 %v2165_v56  ;;  %3292 = vmatpush.msra.mxu0 %v2237_v50  ;;  %v2231_v21 = vld [vmem:[%s7516_s9 + $0xc68] sm:$0xff] }
 0x1db   : > { %3321 = vmatpush.msra.mxu1 %v2269_v41  ;;  %3267 = vmatpush.msrb.mxu3 %v2197_v18  ;;  %v2263_v30 = vld [vmem:[%s7516_s9 + $0xd68] sm:$0xff]  ;;  %v2611_v50 = vadd.f32 %v6512_v45, %v2582_v54  ;;  %v2695_v41 = vadd.f32 %v6584_v16, %v2666_v5  ;;  %v2157_v18 = vld [vmem:[%s7516_s9 + $0xa18] sm:$0xff]  ;;  %v2527_v8 = vadd.f32 %v6354_v53, %v2498_v62 }
 0x1dc   : > { %v6932_v6 = vpop.f32.mrf.mxu0  ;;  %3239 = vmatpush.msrb.mxu2 %v2163_v7  ;;  %3293 = vmatpush.msra.mxu0 %v2235_v0  ;;  %v2191_v56 = vld [vmem:[%s7516_s9 + $0xb28] sm:$0xff]  ;;  %v2443_v45 = vadd.f32 %v6273_v63, %v6728_v34  ;;  %v2261_v16 = vld [vmem:[%s7516_s9 + $0xd58] sm:$0xff] }
 0x1dd   : > { %v6934_v43 = vpop.f32.mrf.mxu1  ;;  %3322 = vmatpush.msra.mxu1 %v2267_v9  ;;  %3192 = vmatmul.f32.gmra.mxu0 %v5762_v61  ;;  %v2193_v61 = vld [vmem:[%s7516_s9 + $0xb38] sm:$0xff]  ;;  %v2724_v35 = vadd.f32 %v6658_v52, %v2695_v41  ;;  %v2155_v53 = vld [vmem:[%s7516_s9 + $0xa08] sm:$0xff]  ;;  %v2556_v44 = vadd.f32 %v6448_v48, %v2527_v8  ;;  %v2640_v5 = vadd.f32 %v6522_v25, %v2611_v50  ;;  %v7749_v8 = vld [vmem:[#allocation12_spill] sm:$0xff] }
 0x1de   : > { %3221 = vmatmul.f32.gmra.mxu1 %v5774_v36  ;;  %3268 = vmatpush.msrb.mxu3 %v2195_v26  ;;  %v2159_v36 = vld [vmem:[%s7516_s9 + $0xa28] sm:$0xff]  ;;  %v2189_v9 = vld [vmem:[%s7516_s9 + $0xb18] sm:$0xff] }
 0x1df   : > { %3137 = vmatmul.f32.gmra.mxu2 %v6953_v27  ;;  %3166 = vmatmul.f32.gmra.mxu3 %v6956_v11  ;;  %v6979_v7 = vpop.f32.mrf.mxu2  ;;  %v6981_v0 = vpop.f32.mrf.mxu3  ;;  %v2227_v63 = vld [vmem:[%s7516_s9 + $0xc48] sm:$0xff]  ;;  %v2669_v48 = vadd.f32 %v6636_v1, %v2640_v5  ;;  %v2753_v62 = vadd.f32 %v6660_v51, %v2724_v35  ;;  %v2225_v25 = vld [vmem:[%s7516_s9 + $0xc38] sm:$0xff] }
 0x1e0   : > { %3240 = vmatpush.msrb.mxu2 %v2161_v58  ;;  %3294 = vmatpush.msra.mxu0 %v2233_v32  ;;  %v2259_v52 = vld [vmem:[%s7516_s9 + $0xd48] sm:$0xff]  ;;  %v2472_v32 = vadd.f32 %v6275_v38, %v2443_v45  ;;  %v2585_v38 = vadd.f32 %v6456_v28, %v2556_v44  ;;  %v2313_v51 = vld [vmem:[%s7516_s9 + $0xef8] sm:$0xff] }
 0x1e1   : > { %3323 = vmatpush.msra.mxu1 %v2265_v19  ;;  %3269 = vmatpush.msrb.mxu3 %v2193_v61  ;;  %v2187_v58 = vld [vmem:[%s7516_s9 + $0xb08] sm:$0xff]  ;;  %v2257_v19 = vld [vmem:[%s7516_s9 + $0xd38] sm:$0xff]  ;;  %v2782_v28 = vadd.f32 %v6834_v33, %v2753_v62  ;;  %v2698_v54 = vadd.f32 %v6644_v22, %v2669_v48 }
 0x1e2   : > { %3241 = vmatpush.msrb.mxu2 %v2159_v36  ;;  %3295 = vmatpush.msra.mxu0 %v2231_v21  ;;  %v2501_v61 = vadd.f32 %v6398_v46, %v2472_v32  ;;  %v2223_v46 = vld [vmem:[%s7516_s9 + $0xc28] sm:$0xff]  ;;  %v2614_v1 = vadd.f32 %v6560_v13, %v2585_v38  ;;  %v2221_v33 = vld [vmem:[%s7516_s9 + $0xc18] sm:$0xff] }
 0x1e3   : > { %3324 = vmatpush.msra.mxu1 %v2263_v30  ;;  %3270 = vmatpush.msrb.mxu3 %v2191_v56  ;;  %v2253_v13 = vld [vmem:[%s7516_s9 + $0xd18] sm:$0xff]  ;;  %v2727_v41 = vadd.f32 %v6712_v37, %v2698_v54  ;;  %v2307_v37 = vld [vmem:[%s7516_s9 + $0xec8] sm:$0xff] }
 0x1e4   : > { %v6999_v34 = vpop.f32.mrf.mxu0  ;;  %3242 = vmatpush.msrb.mxu2 %v2157_v18  ;;  %3296 = vmatpush.msra.mxu0 %v2229_v3  ;;  %v2530_v30 = vadd.f32 %v6408_v20, %v2501_v61  ;;  %v2309_v22 = vld [vmem:[%s7516_s9 + $0xed8] sm:$0xff]  ;;  %v2811_v18 = vadd.f32 %v6836_v42, %v2782_v28  ;;  %v2219_v20 = vld [vmem:[%s7516_s9 + $0xc08] sm:$0xff] }
 0x1e5   : > { %v7005_v26 = vpop.f32.mrf.mxu1  ;;  %3325 = vmatpush.msra.mxu1 %v2261_v16  ;;  %3271 = vmatpush.msrb.mxu3 %v2189_v9  ;;  %v2341_v56 = vld [vmem:[%s7516_s9 + $0xfd8] sm:$0xff]  ;;  %v2251_v3 = vld [vmem:[%s7516_s9 + $0xd08] sm:$0xff]  ;;  %v2643_v16 = vadd.f32 %v6568_v14, %v2614_v1  ;;  %v2756_v14 = vadd.f32 %v6722_v10, %v2727_v41 }
 0x1e6   : > { %3243 = vmatpush.msrb.mxu2 %v2155_v53  ;;  %3297 = vmatpush.msra.mxu0 %v2227_v63  ;;  %v2559_v45 = vadd.f32 %v7749_v8, %v2530_v30  ;;  %v2840_v9 = vadd.f32 %v6866_v17, %v2811_v18  ;;  %v2339_v35 = vld [vmem:[%s7516_s9 + $0xfc8] sm:$0xff]  ;;  %v2305_v63 = vld [vmem:[%s7516_s9 + $0xeb8] sm:$0xff] }
 0x1e7   : > { %3326 = vmatpush.msra.mxu1 %v2259_v52  ;;  %3195 = vmatmul.f32.gmra.mxu0 %v5858_v55  ;;  %v2345_v55 = vld [vmem:[%s7516_s9 + $0xff8] sm:$0xff]  ;;  %v2672_v53 = vadd.f32 %v6696_v39, %v2643_v16  ;;  %v7750_v52 = vld [vmem:[#allocation24_spill] sm:$0xff]  ;;  %v7753_v62 = vld [vmem:[#allocation15_spill] sm:$0xff] }
 0x1e8   : > { %3224 = vmatmul.f32.gmra.mxu1 %v5866_v31  ;;  %3272 = vmatpush.msrb.mxu3 %v2187_v58  ;;  %v2255_v31 = vld [vmem:[%s7516_s9 + $0xd28] sm:$0xff]  ;;  %v7094_v17 = vld [vmem:[%s7516_s9 + $0x10f8] sm:$0xff]  ;;  %v2588_v44 = vadd.f32 %v6524_v2, %v2559_v45  ;;  %v2785_v58 = vadd.f32 %v6906_v24, %v2756_v14 }
 0x1e9   : > { %3244 = vmatmul.f32.vlgmr.msrb.gmra.mxu2 %v5816_v60  ;;  %3273 = vmatmul.f32.vlgmr.msrb.gmra.mxu3 %v5827_v47  ;;  %v2311_v60 = vld [vmem:[%s7516_s9 + $0xee8] sm:$0xff]  ;;  %v7053_v36 = vpop.f32.mrf.mxu2  ;;  %v7055_v21 = vpop.f32.mrf.mxu3  ;;  %v7101_v39 = vld [vmem:[%s7516_s9 + $0x11f8] sm:$0xff] }
 0x1ea   : > { %3298 = vmatpush.msra.mxu0 %v2225_v25  ;;  %3327 = vmatpush.msra.mxu1 %v2257_v19  ;;  %v2343_v47 = vld [vmem:[%s7516_s9 + $0xfe8] sm:$0xff]  ;;  %v2337_v10 = vld [vmem:[%s7516_s9 + $0xfb8] sm:$0xff] }
 0x1eb   : > { %3344 = vmatpush.msra.mxu2 %v2313_v51  ;;  %3373 = vmatpush.msra.mxu3 %v2345_v55  ;;  %v7751_v5 = vld [vmem:[#allocation25_spill] sm:$0xff]  ;;  %v2303_v2 = vld [vmem:[%s7516_s9 + $0xea8] sm:$0xff] }
 0x1ec   : > { %3299 = vmatpush.msra.mxu0 %v2223_v46  ;;  %3328 = vmatpush.msra.mxu1 %v2255_v31  ;;  %v7064_v50 = vpop.f32.mrf.mxu0  ;;  %v7752_v32 = vld [vmem:[#allocation13_spill] sm:$0xff]  ;;  %v7124_v25 = vld [vmem:[%s7516_s9 + $0x11e8] sm:$0xff]  ;;  %v7139_v46 = vperm.slane %v6717_v23, 1 }
 0x1ed   : > { %3345 = vmatpush.msra.mxu2 %v2311_v60  ;;  %3374 = vmatpush.msra.mxu3 %v2343_v47  ;;  %v7079_v42 = vpop.f32.mrf.mxu1  ;;  %v2617_v48 = vadd.f32 %v7752_v32, %v2588_v44  ;;  %v2335_v19 = vld [vmem:[%s7516_s9 + $0xfa8] sm:$0xff]  ;;  %v2301_v24 = vld [vmem:[%s7516_s9 + $0xe98] sm:$0xff]  ;;  %v2814_v60 = vadd.f32 %v6908_v49, %v2785_v58 }
 0x1ee   : > { %3300 = vmatpush.msra.mxu0 %v2221_v33  ;;  %3329 = vmatpush.msra.mxu1 %v2253_v13  ;;  %v7136_v51 = vld [vmem:[%s7516_s9 + $0x10d8] sm:$0xff]  ;;  %v7165_v47 = vld [vmem:[%s7516_s9 + $0x10c8] sm:$0xff]  ;;  %v7754_v13 = vld [vmem:[#allocation14_spill] sm:$0xff] }
 0x1ef   : > { %3346 = vmatpush.msra.mxu2 %v2309_v22  ;;  %3375 = vmatpush.msra.mxu3 %v2341_v56  ;;  %v7152_v28 = vld [vmem:[%s7516_s9 + $0x11d8] sm:$0xff]  ;;  %v2646_v30 = vadd.f32 %v7754_v13, %v2617_v48  ;;  %v7175_v49 = vld [vmem:[%s7516_s9 + $0x11c8] sm:$0xff]  ;;  %v2843_v56 = vadd.f32 %v6932_v6, %v2814_v60  ;;  %v3936_v60 = vld [vmem:[#allocation2] sm:$0xff] }
 0x1f0   : > { %3301 = vmatpush.msra.mxu0 %v2219_v20  ;;  %3330 = vmatpush.msra.mxu1 %v2251_v3  ;;  %v2333_v23 = vld [vmem:[%s7516_s9 + $0xf98] sm:$0xff]  ;;  %v2331_v41 = vld [vmem:[%s7516_s9 + $0xf88] sm:$0xff]  ;;  %v7755_v20 = vld [vmem:[#allocation16_spill] sm:$0xff] }
 0x1f1   : > { %3347 = vmatpush.msra.mxu2 %v2307_v37  ;;  %3302 = vmatmul.f32.vlgmr.msra.gmra.mxu0 %v6879_v4  ;;  %v2869_v4 = vadd.f32 %v6875_v12, %v2840_v9  ;;  %v2701_v12 = vadd.f32 %v7753_v62, %v2672_v53  ;;  %v2675_v3 = vadd.f32 %v7755_v20, %v2646_v30  ;;  %v7756_v8 = vld [vmem:[#allocation17_spill] sm:$0xff]  ;;  %v7217_v14 = vld [vmem:[%s7516_s9 + $0x10a8] sm:$0xff]  ;;  %v7759_v20 = vld [vmem:[#allocation32_spill] sm:$0xff] }
 0x1f2   : > { %3331 = vmatmul.f32.vlgmr.msra.gmra.mxu1 %v6882_v40  ;;  %3376 = vmatpush.msra.mxu3 %v2339_v35  ;;  %v7115_v40 = vld [vmem:[%s7516_s9 + $0x10e8] sm:$0xff]  ;;  %v2297_v6 = vld [vmem:[%s7516_s9 + $0xe78] sm:$0xff]  ;;  %v2872_v9 = vadd.f32 %v6934_v43, %v2843_v56  ;;  %v7757_v35 = vld [vmem:[#allocation28_spill] sm:$0xff] }
 0x1f3   : > { %3247 = vmatmul.f32.gmra.mxu2 %v7750_v52  ;;  %3276 = vmatmul.f32.gmra.mxu3 %v7751_v5  ;;  %v2730_v31 = vadd.f32 %v6766_v29, %v2701_v12  ;;  %v2299_v29 = vld [vmem:[%s7516_s9 + $0xe88] sm:$0xff]  ;;  %v7197_v16 = vld [vmem:[%s7516_s9 + $0x10b8] sm:$0xff]  ;;  %v2704_v44 = vadd.f32 %v6778_v57, %v2675_v3 }
 0x1f4   : > { %3348 = vmatpush.msra.mxu2 %v2305_v63  ;;  %3402 = vmatpush.msrb.mxu0 %v7094_v17  ;;  %v2897_v61 = vpop.f32.mrf.mxu2  ;;  %v2926_v38 = vpop.f32.mrf.mxu3  ;;  %v7203_v37 = vld [vmem:[%s7516_s9 + $0x11b8] sm:$0xff]  ;;  %v7225_v43 = vld [vmem:[%s7516_s9 + $0x11a8] sm:$0xff] }
 0x1f5   : > { %3431 = vmatpush.msrb.mxu1 %v7101_v39  ;;  %3377 = vmatpush.msra.mxu3 %v2337_v10  ;;  %v2898_v55 = vadd.f32 %v2897_v61, %v2869_v4  ;;  %v2759_v45 = vadd.f32 %v7756_v8, %v2730_v31  ;;  %v7758_v53 = vld [vmem:[#allocation29_spill] sm:$0xff]  ;;  %v2327_v10 = vld [vmem:[%s7516_s9 + $0xf68] sm:$0xff] }
 0x1f6   : > { %3349 = vmatpush.msra.mxu2 %v2303_v2  ;;  %3403 = vmatpush.msrb.mxu0 %v7115_v40  ;;  %v2955_v1 = vpop.f32.mrf.mxu0  ;;  %v2293_v57 = vld [vmem:[%s7516_s9 + $0xe58] sm:$0xff]  ;;  %v2733_v2 = vadd.f32 %v6816_v15, %v2704_v44  ;;  %v2291_v15 = vld [vmem:[%s7516_s9 + $0xe48] sm:$0xff] }
 0x1f7   : > { %3432 = vmatpush.msrb.mxu1 %v7124_v25  ;;  %3378 = vmatpush.msra.mxu3 %v2335_v19  ;;  %v7167_v54 = vadd.f32 %v2926_v38, %v2898_v55  ;;  %v2956_v33 = vadd.f32 %v2955_v1, %v7139_v46  ;;  %v2984_v22 = vpop.f32.mrf.mxu1  ;;  %v2788_v63 = vadd.f32 %v6979_v7, %v2759_v45  ;;  %v7237_v7 = vld [vmem:[%s7516_s9 + $0x1098] sm:$0xff]  ;;  %v7257_v12 = vld [vmem:[%s7516_s9 + $0x1088] sm:$0xff] }
 0x1f8   : > { %3350 = vmatpush.msra.mxu2 %v2301_v24  ;;  %3404 = vmatpush.msrb.mxu0 %v7136_v51  ;;  %v7244_v58 = vld [vmem:[%s7516_s9 + $0x1198] sm:$0xff]  ;;  %v2323_v55 = vld [vmem:[%s7516_s9 + $0xf48] sm:$0xff]  ;;  %v2762_v1 = vadd.f32 %v6824_v59, %v2733_v2 }
 0x1f9   : > { %3433 = vmatpush.msrb.mxu1 %v7152_v28  ;;  %3379 = vmatpush.msra.mxu3 %v2333_v23  ;;  %3460 = vst [vmem:[%s7145_s14] sm:$0xff] %v7167_v54  ;;  %v7184_v18 = vadd.f32 %v2984_v22, %v2956_v33  ;;  %v2325_v32 = vld [vmem:[%s7516_s9 + $0xf58] sm:$0xff]  ;;  %v2817_v62 = vadd.f32 %v6981_v0, %v2788_v63  ;;  %v7264_v0 = vld [vmem:[%s7516_s9 + $0x1188] sm:$0xff] }
 0x1fa   : > { %3351 = vmatpush.msra.mxu2 %v2299_v29  ;;  %3405 = vmatpush.msrb.mxu0 %v7165_v47  ;;  %v7283_v29 = vld [vmem:[%s7516_s9 + $0x1078] sm:$0xff]  ;;  %v3514_v33 = vmul.f32 %v7167_v54, %v7167_v54  ;;  %v2791_v56 = vadd.f32 %v7053_v36, %v2762_v1  ;;  %v7306_v8 = vld [vmem:[%s7516_s9 + $0x1068] sm:$0xff] }
 0x1fb   : > { %3434 = vmatpush.msrb.mxu1 %v7175_v49  ;;  %3305 = vmatmul.f32.gmra.mxu0 %v6953_v27  ;;  %v2329_v27 = vld [vmem:[%s7516_s9 + $0xf78] sm:$0xff]  ;;  %v2846_v24 = vadd.f32 %v6999_v34, %v2817_v62  ;;  %v2319_v36 = vld [vmem:[%s7516_s9 + $0xf28] sm:$0xff] }
 0x1fc   : > { %3334 = vmatmul.f32.gmra.mxu1 %v6956_v11  ;;  %3380 = vmatpush.msra.mxu3 %v2331_v41  ;;  %v2295_v11 = vld [vmem:[%s7516_s9 + $0xe68] sm:$0xff]  ;;  %v2289_v34 = vld [vmem:[%s7516_s9 + $0xe38] sm:$0xff] }
 0x1fd   : > { %3250 = vmatmul.f32.gmra.mxu2 %v7757_v35  ;;  %3279 = vmatmul.f32.gmra.mxu3 %v7758_v53  ;;  %v7291_v30 = vld [vmem:[%s7516_s9 + $0x1178] sm:$0xff]  ;;  %v2875_v41 = vadd.f32 %v7005_v26, %v2846_v24  ;;  %v7312_v26 = vld [vmem:[%s7516_s9 + $0x1168] sm:$0xff] }
 0x1fe   : > { %3352 = vmatpush.msra.mxu2 %v2297_v6  ;;  %3406 = vmatpush.msrb.mxu0 %v7197_v16  ;;  %v2900_v4 = vpop.f32.mrf.mxu2  ;;  %v2929_v52 = vpop.f32.mrf.mxu3  ;;  %v2321_v22 = vld [vmem:[%s7516_s9 + $0xf38] sm:$0xff]  ;;  %v7351_v2 = vld [vmem:[%s7516_s9 + $0x1148] sm:$0xff] }
 0x1ff   : > { %3435 = vmatpush.msrb.mxu1 %v7203_v37  ;;  %3381 = vmatpush.msra.mxu3 %v2329_v27  ;;  %v2901_v5 = vadd.f32 %v2900_v4, %v2872_v9  ;;  %v7760_v3 = vld [vmem:[#allocation33_spill] sm:$0xff]  ;;  %v2283_v4 = vld [vmem:[%s7516_s9 + $0xe08] sm:$0xff] }
 0x200   : > { %3353 = vmatpush.msra.mxu2 %v2295_v11  ;;  %3407 = vmatpush.msrb.mxu0 %v7217_v14  ;;  %v2958_v48 = vpop.f32.mrf.mxu0  ;;  %v2285_v9 = vld [vmem:[%s7516_s9 + $0xe18] sm:$0xff]  ;;  %v2820_v11 = vadd.f32 %v7055_v21, %v2791_v56  ;;  %v7343_v21 = vld [vmem:[%s7516_s9 + $0x1048] sm:$0xff] }
 0x201   : > { %3436 = vmatpush.msrb.mxu1 %v7225_v43  ;;  %3382 = vmatpush.msra.mxu3 %v2327_v10  ;;  %v2930_v19 = vadd.f32 %v2929_v52, %v2901_v5  ;;  %v2959_v61 = vadd.f32 %v2958_v48, %v7139_v46  ;;  %v2987_v38 = vpop.f32.mrf.mxu1  ;;  %v7324_v35 = vld [vmem:[%s7516_s9 + $0x1058] sm:$0xff]  ;;  %v2315_v48 = vld [vmem:[%s7516_s9 + $0xf08] sm:$0xff] }
 0x202   : > { %3354 = vmatpush.msra.mxu2 %v2293_v57  ;;  %3408 = vmatpush.msrb.mxu0 %v7237_v7  ;;  %v7331_v63 = vld [vmem:[%s7516_s9 + $0x1158] sm:$0xff]  ;;  %v2849_v5 = vadd.f32 %v7064_v50, %v2820_v11  ;;  %v7378_v1 = vld [vmem:[%s7516_s9 + $0x1028] sm:$0xff] }
 0x203   : > { %3437 = vmatpush.msrb.mxu1 %v7244_v58  ;;  %3383 = vmatpush.msra.mxu3 %v2325_v32  ;;  %3462 = vst [vmem:[%s7145_s14 + $0x10] sm:$0xff] %v2930_v19  ;;  %v3479_v31 = vmul.f32 0.0, %v2930_v19  ;;  %v7272_v23 = vadd.f32 %v2987_v38, %v2959_v61  ;;  %v2317_v44 = vld [vmem:[%s7516_s9 + $0xf18] sm:$0xff]  ;;  %v7414_v56 = vld [vmem:[%s7516_s9 + $0x1108] sm:$0xff] }
 0x204   : > { %3355 = vmatpush.msra.mxu2 %v2291_v15  ;;  %3409 = vmatpush.msrb.mxu0 %v7257_v12  ;;  %v7365_v19 = vld [vmem:[%s7516_s9 + $0x1038] sm:$0xff]  ;;  %v2878_v24 = vadd.f32 %v7079_v42, %v2849_v5 }
 0x205   : > { %3438 = vmatpush.msrb.mxu1 %v7264_v0  ;;  %3308 = vmatmul.f32.gmra.mxu0 %v3936_v60  ;;  %v3485_v59 = vadd.f32 %v3479_v31, %v7167_v54  ;;  %v3516_v13 = vmul.f32 %v3479_v31, %v3479_v31  ;;  %v2287_v54 = vld [vmem:[%s7516_s9 + $0xe28] sm:$0xff]  ;;  %v7370_v38 = vld [vmem:[%s7516_s9 + $0x1138] sm:$0xff]  ;;  %v7762_v31 = vld [vmem:[#allocation36_spill] sm:$0xff] }
 0x206   : > { %3337 = vmatmul.f32.gmra.mxu1 %v3936_v60  ;;  %3384 = vmatpush.msra.mxu3 %v2323_v55  ;;  %v7761_v55 = vld [vmem:[#allocation35_spill] sm:$0xff] }
 0x207   : > { %3253 = vmatmul.f32.gmra.mxu2 %v7759_v20  ;;  %3282 = vmatmul.f32.gmra.mxu3 %v7760_v3  ;;  %v3522_v45 = vadd.f32 %v3516_v13, %v3514_v33  ;;  %v7392_v33 = vld [vmem:[%s7516_s9 + $0x1018] sm:$0xff] }
 0x208   : > { %3356 = vmatpush.msra.mxu2 %v2289_v34  ;;  %3410 = vmatpush.msrb.mxu0 %v7283_v29  ;;  %v2903_v6 = vpop.f32.mrf.mxu2  ;;  %v2932_v27 = vpop.f32.mrf.mxu3 }
 0x209   : > { %3439 = vmatpush.msrb.mxu1 %v7291_v30  ;;  %3385 = vmatpush.msra.mxu3 %v2321_v22  ;;  %v2904_v53 = vadd.f32 %v2903_v6, %v2875_v41 }
 0x20a   : > { %3357 = vmatpush.msra.mxu2 %v2287_v54  ;;  %3411 = vmatpush.msrb.mxu0 %v7306_v8  ;;  %v2961_v10 = vpop.f32.mrf.mxu0  ;;  %v7764_v54 = vld [vmem:[#allocation6_spill] sm:$0xff] }
 0x20b   : > { %3440 = vmatpush.msrb.mxu1 %v7312_v26  ;;  %3386 = vmatpush.msra.mxu3 %v2319_v36  ;;  %v2933_v52 = vadd.f32 %v2932_v27, %v2904_v53  ;;  %v2962_v57 = vadd.f32 %v2961_v10, %v7139_v46  ;;  %v2990_v32 = vpop.f32.mrf.mxu1 }
 0x20c   : > { %3358 = vmatpush.msra.mxu2 %v2285_v9  ;;  %3412 = vmatpush.msrb.mxu0 %v7324_v35 }
 0x20d   : > { %3441 = vmatpush.msrb.mxu1 %v7331_v63  ;;  %3387 = vmatpush.msra.mxu3 %v2317_v44  ;;  %3464 = vst [vmem:[%s7145_s14 + $0x20] sm:$0xff] %v2933_v52  ;;  %v3486_v62 = vadd.f32 %v3485_v59, %v2933_v52  ;;  %v3518_v15 = vmul.f32 %v2933_v52, %v2933_v52  ;;  %v7768_v44 = vld [vmem:[#allocation9_spill] sm:$0xff] }
 0x20e   : > { %v7358_v50 = vadd.f32 %v2990_v32, %v2962_v57  ;;  %3359 = vmatpush.msra.mxu2 %v2283_v4  ;;  %3413 = vmatpush.msrb.mxu0 %v7343_v21  ;;  %v7772_v4 = vld [vmem:[#allocation7_spill] sm:$0xff] }
 0x20f   : > { %3442 = vmatpush.msrb.mxu1 %v7351_v2  ;;  %3311 = vmatmul.f32.gmra.mxu0 %v3936_v60  ;;  %v3523_v61 = vadd.f32 %v3522_v45, %v3518_v15  ;;  %v7765_v45 = vld [vmem:[#allocation38_spill] sm:$0xff] }
 0x210   : > { %3340 = vmatmul.f32.gmra.mxu1 %v3936_v60  ;;  %3388 = vmatpush.msra.mxu3 %v2315_v48  ;;  %v7385_v60 = vld [vmem:[%s7516_s9 + $0x1128] sm:$0xff]  ;;  %v7773_v48 = vld [vmem:[#allocation10_spill] sm:$0xff] }
 0x211   : > { %3360 = vmatmul.f32.vlgmr.msra.gmra.mxu2 %v7761_v55  ;;  %3389 = vmatmul.f32.vlgmr.msra.gmra.mxu3 %v7762_v31 }
 0x212   : > { %3870 = vmatpush.msrb.mxu2 %v7094_v17  ;;  %3414 = vmatpush.msrb.mxu0 %v7365_v19  ;;  %v2906_v34 = vpop.f32.mrf.mxu2  ;;  %v2935_v42 = vpop.f32.mrf.mxu3  ;;  %v7399_v17 = vld [vmem:[%s7516_s9 + $0x1118] sm:$0xff] }
 0x213   : > { %3443 = vmatpush.msrb.mxu1 %v7370_v38  ;;  %3886 = vmatpush.msrb.mxu3 %v7101_v39  ;;  %v2907_v59 = vadd.f32 %v2906_v34, %v2878_v24  ;;  %v7406_v39 = vld [vmem:[%s7516_s9 + $0x1008] sm:$0xff] }
 0x214   : > { %3871 = vmatpush.msrb.mxu2 %v7115_v40  ;;  %3415 = vmatpush.msrb.mxu0 %v7378_v1  ;;  %v2964_v13 = vpop.f32.mrf.mxu0 }
 0x215   : > { %3444 = vmatpush.msrb.mxu1 %v7385_v60  ;;  %3887 = vmatpush.msrb.mxu3 %v7124_v25  ;;  %v2936_v22 = vadd.f32 %v2935_v42, %v2907_v59  ;;  %v2965_v40 = vadd.f32 %v2964_v13, %v7139_v46  ;;  %v2993_v41 = vpop.f32.mrf.mxu1 }
 0x216   : > { %3872 = vmatpush.msrb.mxu2 %v7136_v51  ;;  %3416 = vmatpush.msrb.mxu0 %v7392_v33  ;;  %v7763_v51 = vld [vmem:[#allocation5_spill] sm:$0xff] }
 0x217   : > { %3445 = vmatpush.msrb.mxu1 %v7399_v17  ;;  %3888 = vmatpush.msrb.mxu3 %v7152_v28  ;;  %3466 = vst [vmem:[%s7145_s14 + $0x30] sm:$0xff] %v2936_v22  ;;  %v3483_v25 = vmul.f32 0.0, %v2936_v22  ;;  %v7419_v20 = vadd.f32 %v2993_v41, %v2965_v40  ;;  %v7766_v28 = vld [vmem:[#allocation39_spill] sm:$0xff] }
 0x218   : > { %3873 = vmatpush.msrb.mxu2 %v7165_v47  ;;  %3417 = vmatpush.msrb.mxu0 %v7406_v39 }
 0x219   : > { %3446 = vmatpush.msrb.mxu1 %v7414_v56  ;;  %3418 = vmatmul.f32.vlgmr.msrb.gmra.mxu0 %v7763_v51  ;;  %v7425_v46 = vadd.f32 %v3486_v62, %v3483_v25  ;;  %v3520_v3 = vmul.f32 %v3483_v25, %v3483_v25 }
 0x21a   : > { %3447 = vmatmul.f32.vlgmr.msrb.gmra.mxu1 %v7764_v54  ;;  %3363 = vmatmul.f32.gmra.mxu2 %v7765_v45 }
 0x21b   : > { %3392 = vmatmul.f32.gmra.mxu3 %v7766_v28  ;;  %3874 = vmatpush.msrb.mxu2 %v7197_v16  ;;  %v7431_v36 = vadd.f32 %v3523_v61, %v3520_v3  ;;  %v7767_v16 = vld [vmem:[#allocation8_spill] sm:$0xff] }
 0x21c   : > { %3889 = vmatpush.msrb.mxu3 %v7175_v49  ;;  %v3013_v47 = vpop.f32.mrf.mxu2  ;;  %v3042_v6 = vpop.f32.mrf.mxu3 }
 0x21d   : > { %3875 = vmatpush.msrb.mxu2 %v7217_v14  ;;  %v3014_v27 = vadd.f32 %v3013_v47, %v7184_v18  ;;  %v7769_v14 = vld [vmem:[#allocation37_spill] sm:$0xff] }
 0x21e   : > { %3890 = vmatpush.msrb.mxu3 %v7203_v37  ;;  %v3071_v9 = vpop.f32.mrf.mxu0 }
 0x21f   : > { %3876 = vmatpush.msrb.mxu2 %v7237_v7  ;;  %v3043_v53 = vadd.f32 %v3042_v6, %v3014_v27  ;;  %v3100_v49 = vpop.f32.mrf.mxu1 }
 0x220   : > { %3891 = vmatpush.msrb.mxu3 %v7225_v43 }
 0x221   : > { %3877 = vmatpush.msrb.mxu2 %v7257_v12  ;;  %3421 = vmatmul.f32.gmra.mxu0 %v7767_v16  ;;  %v3072_v11 = vadd.f32 %v3071_v9, %v3043_v53 }
 0x222   : > { %3892 = vmatpush.msrb.mxu3 %v7244_v58  ;;  %3450 = vmatmul.f32.gmra.mxu1 %v7768_v44 }
 0x223   : > { %3366 = vmatmul.f32.gmra.mxu2 %v7769_v14  ;;  %3395 = vmatmul.f32.gmra.mxu3 %v7769_v14  ;;  %v7445_v18 = vadd.f32 %v3100_v49, %v3072_v11 }
 0x224   : > { %3878 = vmatpush.msrb.mxu2 %v7283_v29  ;;  %3893 = vmatpush.msrb.mxu3 %v7264_v0  ;;  %v7770_v29 = vld [vmem:[#allocation40_spill] sm:$0xff] }
 0x225   : > { %v7771_v0 = vld [vmem:[#allocation4_spill] sm:$0xff] }
 0x226   : > { %3879 = vmatpush.msrb.mxu2 %v7306_v8  ;;  %3894 = vmatpush.msrb.mxu3 %v7291_v30  ;;  %v3016_v37 = vpop.f32.mrf.mxu2  ;;  %v3045_v43 = vpop.f32.mrf.mxu3 }
 0x227   : > { %v3017_v7 = vadd.f32 %v3016_v37, %v7272_v23 }
 0x228   : > { %3880 = vmatpush.msrb.mxu2 %v7324_v35  ;;  %3895 = vmatpush.msrb.mxu3 %v7312_v26  ;;  %v3074_v58 = vpop.f32.mrf.mxu0 }
 0x229   : > { %v3046_v12 = vadd.f32 %v3045_v43, %v3017_v7  ;;  %v3103_v30 = vpop.f32.mrf.mxu1 }
 0x22a   : > { %3881 = vmatpush.msrb.mxu2 %v7343_v21  ;;  %3896 = vmatpush.msrb.mxu3 %v7331_v63 }
 0x22b   : > { %3369 = vmatmul.f32.gmra.mxu2 %v7770_v29  ;;  %3398 = vmatmul.f32.gmra.mxu3 %v7771_v0  ;;  %v3075_v8 = vadd.f32 %v3074_v58, %v3046_v12 }
 0x22c   : > { %3882 = vmatpush.msrb.mxu2 %v7365_v19  ;;  %3897 = vmatpush.msrb.mxu3 %v7351_v2 }
 0x22d   : > { %v3104_v23 = vadd.f32 %v3103_v30, %v3075_v8 }
 0x22e   : > { %3883 = vmatpush.msrb.mxu2 %v7378_v1  ;;  %3898 = vmatpush.msrb.mxu3 %v7370_v38 }
 0x230   : > { %3884 = vmatpush.msrb.mxu2 %v7392_v33  ;;  %3899 = vmatpush.msrb.mxu3 %v7385_v60  ;;  %v3019_v26 = vpop.f32.mrf.mxu2  ;;  %v3048_v35 = vpop.f32.mrf.mxu3 }
 0x231   : > { %v3020_v63 = vadd.f32 %v3019_v26, %v7358_v50  ;;  %v7774_v50 = vld [vmem:[#allocation11_spill] sm:$0xff] }
 0x232   : > { %3885 = vmatpush.msrb.mxu2 %v7406_v39  ;;  %3900 = vmatpush.msrb.mxu3 %v7399_v17  ;;  %v3077_v10 = vpop.f32.mrf.mxu0 }
 0x233   : > { %3424 = vmatmul.f32.vlgmr.msrb.gmra.mxu2 %v7772_v4  ;;  %v3049_v21 = vadd.f32 %v3048_v35, %v3020_v63  ;;  %v3106_v57 = vpop.f32.mrf.mxu1 }
 0x234   : > { %3901 = vmatpush.msrb.mxu3 %v7414_v56 }
 0x235   : > { %3453 = vmatmul.f32.vlgmr.msrb.gmra.mxu3 %v7772_v4  ;;  %v3078_v52 = vadd.f32 %v3077_v10, %v3049_v21 }
 0x237   : > { %v7470_v5 = vadd.f32 %v3106_v57, %v3078_v52 }
 0x23a   : > { %v3022_v2 = vpop.f32.mrf.mxu2  ;;  %v3051_v32 = vpop.f32.mrf.mxu3 }
 0x23b   : > { %3427 = vmatmul.f32.gmra.mxu2 %v7773_v48  ;;  %v3023_v62 = vadd.f32 %v3022_v2, %v7419_v20 }
 0x23c   : > { %v3080_v15 = vpop.f32.mrf.mxu0 }
 0x23d   : > { %3456 = vmatmul.f32.gmra.mxu3 %v7774_v50  ;;  %v3052_v19 = vadd.f32 %v3051_v32, %v3023_v62  ;;  %v3109_v38 = vpop.f32.mrf.mxu1 }
 0x23f   : > { %v3081_v61 = vadd.f32 %v3080_v15, %v3052_v19 }
 0x241   : > { %v7475_v24 = vadd.f32 %v3109_v38, %v3081_v61 }
 0x244   : > { %v3129_v55 = vpop.f32.mrf.mxu2  ;;  %v3158_v31 = vpop.f32.mrf.mxu3 }
 0x245   : > { %v3130_v27 = vadd.f32 %v3129_v55, %v7445_v18 }
 0x246   : > { %v3187_v1 = vpop.f32.mrf.mxu0 }
 0x247   : > { %v3216_v60 = vpop.f32.mrf.mxu1  ;;  %v3159_v16 = vadd.f32 %v3158_v31, %v3130_v27 }
 0x249   : > { %v3188_v49 = vadd.f32 %v3187_v1, %v3159_v16 }
 0x24b   : > { %v3217_v37 = vadd.f32 %v3216_v60, %v3188_v49 }
 0x24e   : > { %v3132_v34 = vpop.f32.mrf.mxu2  ;;  %v3161_v42 = vpop.f32.mrf.mxu3 }
 0x24f   : > { %v3133_v14 = vadd.f32 %v3132_v34, %v3104_v23 }
 0x250   : > { %v3190_v33 = vpop.f32.mrf.mxu0 }
 0x251   : > { %v3219_v59 = vpop.f32.mrf.mxu1  ;;  %v3162_v7 = vadd.f32 %v3161_v42, %v3133_v14 }
 0x253   : > { %v3191_v29 = vadd.f32 %v3190_v33, %v3162_v7 }
 0x255   : > { %v3220_v35 = vadd.f32 %v3219_v59, %v3191_v29 }
 0x258   : > { %v3135_v17 = vpop.f32.mrf.mxu2  ;;  %v3164_v13 = vpop.f32.mrf.mxu3 }
 0x259   : > { %v3136_v32 = vadd.f32 %v3135_v17, %v7470_v5 }
 0x25a   : > { %v3193_v39 = vpop.f32.mrf.mxu0 }
 0x25b   : > { %v3222_v22 = vpop.f32.mrf.mxu1  ;;  %v3165_v19 = vadd.f32 %v3164_v13, %v3136_v32 }
 0x25d   : > { %v3194_v31 = vadd.f32 %v3193_v39, %v3165_v19 }
 0x25f   : > { %v3223_v33 = vadd.f32 %v3222_v22, %v3194_v31 }
 0x262   : > { %v3138_v40 = vpop.f32.mrf.mxu2  ;;  %v3167_v56 = vpop.f32.mrf.mxu3 }
 0x263   : > { %v3139_v34 = vadd.f32 %v3138_v40, %v7475_v24 }
 0x264   : > { %v3196_v41 = vpop.f32.mrf.mxu0 }
 0x265   : > { %v7477_v25 = vpop.f32.mrf.mxu1  ;;  %v3168_v5 = vadd.f32 %v3167_v56, %v3139_v34 }
 0x267   : > { %v3197_v13 = vadd.f32 %v3196_v41, %v3168_v5 }
 0x269   : > { %v3226_v27 = vadd.f32 %v7477_v25, %v3197_v13 }
 0x26c   : > { %v3245_v20 = vpop.f32.mrf.mxu2  ;;  %v3274_v51 = vpop.f32.mrf.mxu3 }
 0x26d   : > { %v3246_v43 = vadd.f32 %v3245_v20, %v3217_v37 }
 0x26e   : > { %v3303_v3 = vpop.f32.mrf.mxu0 }
 0x26f   : > { %v3332_v54 = vpop.f32.mrf.mxu1  ;;  %v3275_v8 = vadd.f32 %v3274_v51, %v3246_v43 }
 0x271   : > { %v3304_v30 = vadd.f32 %v3303_v3, %v3275_v8 }
 0x273   : > { %v3333_v63 = vadd.f32 %v3332_v54, %v3304_v30 }
 0x276   : > { %v3248_v45 = vpop.f32.mrf.mxu2  ;;  %v3277_v28 = vpop.f32.mrf.mxu3 }
 0x277   : > { %v3249_v18 = vadd.f32 %v3248_v45, %v3220_v35 }
 0x278   : > { %v3306_v47 = vpop.f32.mrf.mxu0 }
 0x279   : > { %v3335_v6 = vpop.f32.mrf.mxu1  ;;  %v3278_v52 = vadd.f32 %v3277_v28, %v3249_v18  ;;  %v3488_v18 = vrot.slane %v7425_v46, 4 }
 0x27b   : > { %v3307_v2 = vadd.f32 %v3306_v47, %v3278_v52 }
 0x27d   : > { %v3336_v50 = vadd.f32 %v3335_v6, %v3307_v2 }
 0x280   : > { %v3251_v9 = vpop.f32.mrf.mxu2  ;;  %v3280_v53 = vpop.f32.mrf.mxu3 }
 0x281   : > { %v3252_v17 = vadd.f32 %v3251_v9, %v3223_v33 }
 0x282   : > { %v3309_v11 = vpop.f32.mrf.mxu0 }
 0x283   : > { %v3338_v44 = vpop.f32.mrf.mxu1  ;;  %v3281_v6 = vadd.f32 %v3280_v53, %v3252_v17 }
 0x285   : > { %v3310_v24 = vadd.f32 %v3309_v11, %v3281_v6 }
 0x287   : > { %v3339_v49 = vadd.f32 %v3338_v44, %v3310_v24 }
 0x28a   : > { %v3254_v58 = vpop.f32.mrf.mxu2  ;;  %v3283_v12 = vpop.f32.mrf.mxu3 }
 0x28b   : > { %v3255_v40 = vadd.f32 %v3254_v58, %v3226_v27 }
 0x28c   : > { %v3312_v0 = vpop.f32.mrf.mxu0 }
 0x28d   : > { %v3341_v26 = vpop.f32.mrf.mxu1  ;;  %v3284_v56 = vadd.f32 %v3283_v12, %v3255_v40 }
 0x28f   : > { %v3313_v14 = vadd.f32 %v3312_v0, %v3284_v56  ;;  %v3525_v0 = vrot.slane %v7431_v36, 4 }
 0x291   : > { %v3342_v7 = vadd.f32 %v3341_v26, %v3313_v14  ;;  %v3489_v26 = vadd.f32 %v3488_v18, %v7425_v46 }
 0x294   : > { %v3361_v10 = vpop.f32.mrf.mxu2  ;;  %v3390_v4 = vpop.f32.mrf.mxu3 }
 0x295   : > { %v3362_v21 = vadd.f32 %v3361_v10, %v3333_v63 }
 0x296   : > { %v3419_v57 = vpop.f32.mrf.mxu0 }
 0x297   : > { %v3391_v23 = vadd.f32 %v3390_v4, %v3362_v21  ;;  %v3448_v62 = vpop.f32.mrf.mxu1  ;;  %v3526_v4 = vadd.f32 %v3525_v0, %v7431_v36 }
 0x299   : > { %v3420_v48 = vadd.f32 %v3419_v57, %v3391_v23  ;;  %v3490_v57 = vrot.slane %v3489_v26, 2  ;;  %v3527_v32 = vrot.slane %v3526_v4, 2 }
 0x29b   : > { %v3449_v15 = vadd.f32 %v3448_v62, %v3420_v48 }
 0x29d   : > { %3461 = vst [vmem:[%s7145_s14 + $0x8] sm:$0xff] %v3449_v15  ;;  %v3364_v61 = vpop.f32.mrf.mxu2  ;;  %v3515_v45 = vmul.f32 %v3449_v15, %v3449_v15 }
 0x29e   : > { %v3365_v38 = vadd.f32 %v3364_v61, %v3336_v50  ;;  %v3393_v55 = vpop.f32.mrf.mxu3  ;;  %v3422_v1 = vpop.f32.mrf.mxu0  ;;  %v3528_v61 = vadd.f32 %v3527_v32, %v3526_v4 }
 0x29f   : > { %v3451_v59 = vpop.f32.mrf.mxu1 }
 0x2a0   : > { %v3394_v60 = vadd.f32 %v3393_v55, %v3365_v38  ;;  %v3529_v36 = vrot.slane %v3528_v61, 1 }
 0x2a2   : > { %v3423_v42 = vadd.f32 %v3422_v1, %v3394_v60  ;;  %v3509_v1 = vlaneseq  ;;  %v3530_v5 = vadd.f32 %v3529_v36, %v3528_v61 }
 0x2a4   : > { %v3452_v20 = vadd.f32 %v3451_v59, %v3423_v42  ;;  %vm3511_vm3 = vcmp.lt.s32.totalorder %v3509_v1, 256 }
 0x2a6   : > { %3463 = vst [vmem:[%s7145_s14 + $0x18] sm:$0xff] %v3452_v20  ;;  %v3480_v51 = vmul.f32 0.0, %v3452_v20  ;;  %v3367_v3 = vpop.f32.mrf.mxu2  ;;  %v3396_v54 = vpop.f32.mrf.mxu3 }
 0x2a7   : > { %v3368_v9 = vadd.f32 %v3367_v3, %v3339_v49 }
 0x2a8   : > { %v3494_v28 = vadd.f32 %v3480_v51, %v3449_v15  ;;  %v3517_v47 = vmul.f32 %v3480_v51, %v3480_v51  ;;  %v3491_v15 = vadd.f32 %v3490_v57, %v3489_v26 }
 0x2a9   : > { %v3397_v37 = vadd.f32 %v3396_v54, %v3368_v9 }
 0x2aa   : > { %v3531_v39 = vadd.f32 %v3517_v47, %v3515_v45  ;;  %v3492_v46 = vrot.slane %v3491_v15, 1 }
 0x2ac   : > { %v3493_v33 = vadd.f32 %v3492_v46, %v3491_v15 }
 0x2ae   : > { %v3370_v22 = vpop.f32.mrf.mxu2  ;;  %v3399_v16 = vpop.f32.mrf.mxu3 }
 0x2af   : > { %v3371_v8 = vadd.f32 %v3370_v22, %v3342_v7 }
 0x2b1   : > { %v3400_v35 = vadd.f32 %v3399_v16, %v3371_v8 }
 0x2b6   : > { %v3425_v43 = vpop.f32.mrf.mxu2 }
 0x2b7   : > { %v3426_v41 = vadd.f32 %v3425_v43, %v3397_v37 }
 0x2b8   : > { %v3454_v29 = vpop.f32.mrf.mxu3 }
 0x2b9   : > { %v3455_v53 = vadd.f32 %v3454_v29, %v3426_v41 }
 0x2bb   : > { %3465 = vst [vmem:[%s7145_s14 + $0x28] sm:$0xff] %v3455_v53  ;;  %v3495_v30 = vadd.f32 %v3494_v28, %v3455_v53  ;;  %v3519_v25 = vmul.f32 %v3455_v53, %v3455_v53 }
 0x2bd   : > { %v3532_v11 = vadd.f32 %v3531_v39, %v3519_v25 }
 0x2be   : > { %v3428_v58 = vpop.f32.mrf.mxu2 }
 0x2bf   : > { %v3429_v44 = vadd.f32 %v3428_v58, %v3400_v35 }
 0x2c0   : > { %v3457_v12 = vpop.f32.mrf.mxu3 }
 0x2c1   : > { %v3458_v63 = vadd.f32 %v3457_v12, %v3429_v44 }
 0x2c3   : > { %3467 = vst [vmem:[%s7145_s14 + $0x38] sm:$0xff] %v3458_v63  ;;  %v3484_v10 = vmul.f32 0.0, %v3458_v63  ;;  %s3851_s14 = sshll.u32 %s7780_s25, 1 }
 0x2c4   : > { %s759_s22 = scalar_lea.vmem %s7519_s12, %s3851_s14  ;;  %s767_s16 = scalar_lea.vmem %s7520_s13, %s3851_s14 }
 0x2c5   : > { %v3496_v21 = vadd.f32 %v3495_v30, %v3484_v10  ;;  %v3521_v52 = vmul.f32 %v3484_v10, %v3484_v10 }
 0x2c7   : > { %v3497_v23 = vrot.slane %v3496_v21, 4  ;;  %v3533_v2 = vadd.f32 %v3532_v11, %v3521_v52 }
 0x2c9   : > { %v3498_v48 = vadd.f32 %v3497_v23, %v3496_v21  ;;  %v3534_v62 = vrot.slane %v3533_v2, 4 }
 0x2cb   : > { %v3499_v50 = vrot.slane %v3498_v48, 2  ;;  %v3535_v19 = vadd.f32 %v3534_v62, %v3533_v2 }
 0x2cd   : > { %v3500_v38 = vadd.f32 %v3499_v50, %v3498_v48  ;;  %v3536_v55 = vrot.slane %v3535_v19, 2 }
 0x2cf   : > { %v3501_v31 = vrot.slane %v3500_v38, 1  ;;  %v3537_v60 = vadd.f32 %v3536_v55, %v3535_v19 }
 0x2d1   : > { %v3502_v34 = vadd.f32 %v3501_v31, %v3500_v38  ;;  %v3538_v42 = vrot.slane %v3537_v60, 1 }
 0x2d3   : > { %v3505_v59 = vrot.slane %v3502_v34, 7  ;;  %v3539_v20 = vadd.f32 %v3538_v42, %v3537_v60 }
 0x2d5   : > { %v3507_v17 = vsel %vm3506_vm2, %v3493_v33, %v3505_v59  ;;  %v3542_v51 = vrot.slane %v3539_v20, 7 }
 0x2d6   : > { %3513 = vst.msk [vmem:[%s759_s22] sm:$0x3] %vm3511_vm3, %v3507_v17 }
 0x2d7   : > { %v3543_v3 = vsel %vm3506_vm2, %v3530_v5, %v3542_v51 }
 0x2d8   : > { %3545 = vst.msk [vmem:[%s767_s16] sm:$0x3] %vm3511_vm3, %v3543_v3 }
 0x2d9 PF: > { %s24_s27 = sadd.s32 1, %s3959_s27   ;;  %s7775_s25 = smov %s3955_s26 }
 0x2da   : > { %p21_p5 = scmp.ge.s32.totalorder %s24_s27, 4   ;;  %s7776_s26 = smov %s7778_s28 }
 0x2dc   :  { %23 = sbr.rel (!%p21_p5) target bundleno = 2 (0x2), region = 137 }

</bundles_post_ra>
